<compile_context>
chip_gen: v7x
topology: tpu7x:2x2x1
jax: 0.10.0
libtpu: 0.0.40
codegen_flags: <defaults>
</compile_context>

<pallas_src>
import functools

import jax
import jax.numpy as jnp
from jax import lax
from jax.experimental import pallas as pl
from jax.experimental.pallas import tpu as pltpu


def _round_up(x, m):
    return (x + m - 1) // m * m


def _pad_to(a, shape):
    pads = tuple((0, t - s) for s, t in zip(a.shape, shape))
    if any(p for _, p in pads):
        a = jnp.pad(a, pads)
    return a


# -----------------------------------------------------------------------------
# Tiled GEMM + bias kernel (bf16 operands, f32 accumulate) for the vocab
# projection: Y @ W_lin + b_lin.
# -----------------------------------------------------------------------------
def _matmul_bias_kernel(x_ref, w_ref, b_ref, o_ref, acc_ref):
    @pl.when(pl.program_id(2) == 0)
    def _():
        acc_ref[...] = jnp.zeros_like(acc_ref)

    acc_ref[...] += jnp.dot(x_ref[...], w_ref[...],
                            preferred_element_type=jnp.float32)

    @pl.when(pl.program_id(2) == pl.num_programs(2) - 1)
    def _():
        o_ref[...] = acc_ref[...] + b_ref[...]


def matmul_bias(x, w, b, *, tm=512, tn=1024, tk=512):
    """(M,K) @ (K,N) + b -> (M,N) f32.  Pads M/K/N to tile multiples."""
    M, K = x.shape
    Kw, N = w.shape
    assert K == Kw
    Mp, Kp, Np = _round_up(M, 8), _round_up(K, 128), _round_up(N, 128)
    tm, tk, tn = min(tm, Mp), min(tk, Kp), min(tn, Np)
    Mp, Kp, Np = _round_up(Mp, tm), _round_up(Kp, tk), _round_up(Np, tn)

    xp = _pad_to(x, (Mp, Kp))
    if xp.dtype != jnp.bfloat16:
        xp = xp.astype(jnp.bfloat16)
    wp = _pad_to(w, (Kp, Np))
    if wp.dtype != jnp.bfloat16:
        wp = wp.astype(jnp.bfloat16)
    bp = _pad_to(jnp.reshape(b, (1, -1)).astype(jnp.float32), (1, Np))

    # Explicit scoped-VMEM budget: 2x-buffered x/w/bias/out tiles + f32 acc.
    est = (2 * tm * tk * 2 + 2 * tk * tn * 2 + 2 * tn * 4
           + 2 * tm * tn * 4 + tm * tn * 4) + (2 << 20)
    vmem_limit = int(min(max(est, 32 << 20), 96 << 20))

    out = pl.pallas_call(
        _matmul_bias_kernel,
        out_shape=jax.ShapeDtypeStruct((Mp, Np), jnp.float32),
        grid_spec=pltpu.PrefetchScalarGridSpec(
            num_scalar_prefetch=0,
            grid=(Mp // tm, Np // tn, Kp // tk),
            in_specs=[
                pl.BlockSpec((tm, tk), lambda i, j, k: (i, k)),
                pl.BlockSpec((tk, tn), lambda i, j, k: (k, j)),
                pl.BlockSpec((1, tn), lambda i, j, k: (0, j)),
            ],
            out_specs=pl.BlockSpec((tm, tn), lambda i, j, k: (i, j)),
            scratch_shapes=[pltpu.VMEM((tm, tn), jnp.float32)],
        ),
        compiler_params=pltpu.CompilerParams(
            dimension_semantics=("parallel", "parallel", "arbitrary"),
            vmem_limit_bytes=vmem_limit),
    )(xp, wp, bp)
    return out[:M, :N]


# -----------------------------------------------------------------------------
# Time-chunked fused multi-layer LSTM recurrence kernel.
#   grid = (num_chunks,), "arbitrary".  Per chunk:
#     layer 0 gates = x_chunk @ W_ih0 + b0               (fused input GEMM)
#     layer l gates = ybuf @ W_ih[l] + b[l]              (VMEM-resident acts)
#     recurrence: h @ W_hh[l] + gates, gate math in f32, chunk steps in a
#     partially-unrolled fori_loop.
#   h/c state for all layers is carried across chunks in the resident
#   hn/cn output blocks (constant block index -> stays in VMEM, one HBM
#   writeback at the end).
# -----------------------------------------------------------------------------
def _lstm_stack_kernel(*refs, num_layers, chunk, Bp, Hp, seq_len, needs_mask,
                       unroll):
    if num_layers == 1:
        (x_ref, wih0_ref, b0_ref, whh_ref, h0_ref, c0_ref,
         y_ref, hn_ref, cn_ref, gbuf, ybuf) = refs
        wih_rest_ref = b_rest_ref = None
    else:
        (x_ref, wih0_ref, b0_ref, wih_rest_ref, b_rest_ref, whh_ref,
         h0_ref, c0_ref, y_ref, hn_ref, cn_ref, gbuf, ybuf) = refs

    t_chunk = pl.program_id(0)

    # Initialise the cross-chunk state carry once.
    @pl.when(t_chunk == 0)
    def _():
        hn_ref[...] = h0_ref[...]
        cn_ref[...] = c0_ref[...]

    def run_layer(l):
        base = t_chunk * chunk

        def step(i, carry):
            h, c = carry
            off = pl.multiple_of(i * Bp, Bp)
            gates = (gbuf[pl.ds(off, Bp), :]
                     + jnp.dot(h.astype(jnp.bfloat16), whh_ref[l],
                               preferred_element_type=jnp.float32))
            i_g = jax.nn.sigmoid(gates[:, 0 * Hp:1 * Hp])
            f_g = jax.nn.sigmoid(gates[:, 1 * Hp:2 * Hp])
            g_g = jnp.tanh(gates[:, 2 * Hp:3 * Hp])
            o_g = jax.nn.sigmoid(gates[:, 3 * Hp:4 * Hp])
            c_new = f_g * c + i_g * g_g
            h_new = o_g * jnp.tanh(c_new)
            if needs_mask:
                # Padded tail timesteps: carry state through unchanged.
                m = ((base + i) < seq_len).astype(h_new.dtype)
                h_new = h + m * (h_new - h)
                c_new = c + m * (c_new - c)
            ybuf[pl.ds(off, Bp), :] = h_new
            return h_new, c_new

        h_fin, c_fin = lax.fori_loop(0, chunk, step,
                                     (hn_ref[l], cn_ref[l]), unroll=unroll)
        hn_ref[l] = h_fin
        cn_ref[l] = c_fin

    # Layer 0: fused per-chunk input GEMM (no HBM gate-slab round trip).
    gbuf[...] = (jnp.dot(x_ref[...], wih0_ref[...],
                         preferred_element_type=jnp.float32) + b0_ref[...])
    run_layer(0)

    # Layers 1..L-1: hoisted per-chunk input GEMM from the previous layer's
    # activations; inter-layer activations never leave VMEM.
    for l in range(1, num_layers):
        gbuf[...] = (jnp.dot(ybuf[...].astype(jnp.bfloat16),
                             wih_rest_ref[l - 1],
                             preferred_element_type=jnp.float32)
                     + b_rest_ref[l - 1])
        run_layer(l)

    # Lane-dense bf16 store of the last layer's activations for this chunk.
    y_ref[...] = ybuf[...].astype(jnp.bfloat16)


def _plan_time_chunks(S, Bp, Hp, Ep, L, chunk):
    """Pick a time-chunk length whose VMEM footprint fits comfortably (v7x)."""
    budget = 40 << 20

    def est(c):
        cb = c * Bp
        e = 2 * cb * Ep * 2                 # x chunk, double-buffered, bf16
        e += 2 * cb * Hp * 2                # y chunk, double-buffered, bf16
        e += cb * 4 * Hp * 4                # gbuf scratch (f32)
        e += cb * Hp * 4                    # ybuf scratch (f32)
        w = Ep * 4 * Hp * 2 + L * Hp * 4 * Hp * 2
        if L > 1:
            w += (L - 1) * Hp * 4 * Hp * 2
        e += 2 * w                          # weights (assume double-buffered)
        e += 2 * 4 * L * Bp * Hp * 4        # h0/c0 inputs + hn/cn outputs
        return e

    C = max(1, min(chunk, S))
    while est(C) > budget and C > 8:
        nc = max(8, _round_up(C // 2, 8))
        if nc >= C:
            break
        C = nc
    if C < S and C % 2:
        C += 1                              # keep bf16 blocks 16-row aligned
    Sp = _round_up(S, C)
    needs_mask = Sp != S
    if C <= 16:
        unroll = True
    elif C % 4 == 0:
        unroll = 4
    elif C % 2 == 0:
        unroll = 2
    else:
        unroll = 1
    vmem_limit = int(min(max(est(C) + (8 << 20), 32 << 20), 96 << 20))
    return C, Sp, needs_mask, unroll, vmem_limit


def lstm_stack(xin, wih0, b0, wih_rest, b_rest, whh, h0, c0, *,
               seq_len, Sp, C, Bp, Hp, Ep, num_layers, needs_mask, unroll,
               vmem_limit):
    CB = C * Bp
    num_chunks = Sp // C
    kernel = functools.partial(
        _lstm_stack_kernel, num_layers=num_layers, chunk=C, Bp=Bp, Hp=Hp,
        seq_len=seq_len, needs_mask=needs_mask, unroll=unroll)

    in_specs = [
        pl.BlockSpec((CB, Ep), lambda t: (t, 0)),                     # x chunk
        pl.BlockSpec((Ep, 4 * Hp), lambda t: (0, 0)),                 # wih0
        pl.BlockSpec((1, 4 * Hp), lambda t: (0, 0)),                  # b0
    ]
    inputs = [xin, wih0, b0]
    if num_layers > 1:
        in_specs += [
            pl.BlockSpec((num_layers - 1, Hp, 4 * Hp), lambda t: (0, 0, 0)),
            pl.BlockSpec((num_layers - 1, 1, 4 * Hp), lambda t: (0, 0, 0)),
        ]
        inputs += [wih_rest, b_rest]
    in_specs += [
        pl.BlockSpec((num_layers, Hp, 4 * Hp), lambda t: (0, 0, 0)),  # whh
        pl.BlockSpec((num_layers, Bp, Hp), lambda t: (0, 0, 0)),      # h0
        pl.BlockSpec((num_layers, Bp, Hp), lambda t: (0, 0, 0)),      # c0
    ]
    inputs += [whh, h0, c0]

    return pl.pallas_call(
        kernel,
        out_shape=(
            jax.ShapeDtypeStruct((Sp * Bp, Hp), jnp.bfloat16),            # y
            jax.ShapeDtypeStruct((num_layers, Bp, Hp), jnp.float32),      # h_n
            jax.ShapeDtypeStruct((num_layers, Bp, Hp), jnp.float32),      # c_n
        ),
        grid_spec=pltpu.PrefetchScalarGridSpec(
            num_scalar_prefetch=0,
            grid=(num_chunks,),
            in_specs=in_specs,
            out_specs=[
                pl.BlockSpec((CB, Hp), lambda t: (t, 0)),
                pl.BlockSpec((num_layers, Bp, Hp), lambda t: (0, 0, 0)),
                pl.BlockSpec((num_layers, Bp, Hp), lambda t: (0, 0, 0)),
            ],
            scratch_shapes=[
                pltpu.VMEM((CB, 4 * Hp), jnp.float32),   # per-layer gate slab
                pltpu.VMEM((CB, Hp), jnp.float32),       # inter-layer acts
            ],
        ),
        compiler_params=pltpu.CompilerParams(
            dimension_semantics=("arbitrary",),
            vmem_limit_bytes=vmem_limit),
    )(*inputs)


# -----------------------------------------------------------------------------
# Parameter init (PyTorch-layout-equivalent, stored transposed: (in, 4H)).
# -----------------------------------------------------------------------------
def init_params(key, vocab_size, embedding_dim, hidden_dim, num_layers):
    keys = jax.random.split(key, 3 + 4 * num_layers)
    params = {
        "embedding": 0.1 * jax.random.normal(
            keys[0], (vocab_size, embedding_dim), jnp.float32),
        "lin_w": 0.1 * jax.random.normal(
            keys[1], (hidden_dim, vocab_size), jnp.float32),
        "lin_b": 0.1 * jax.random.normal(keys[2], (vocab_size,), jnp.float32),
        "lstm": [],
    }
    for layer in range(num_layers):
        in_dim = embedding_dim if layer == 0 else hidden_dim
        k0, k1, k2, k3 = keys[3 + 4 * layer: 7 + 4 * layer]
        params["lstm"].append({
            # gate order i, f, g, o (matches torch.nn.LSTM)
            "w_ih": 0.1 * jax.random.normal(k0, (in_dim, 4 * hidden_dim), jnp.float32),
            "w_hh": 0.1 * jax.random.normal(k1, (hidden_dim, 4 * hidden_dim), jnp.float32),
            "b_ih": 0.1 * jax.random.normal(k2, (4 * hidden_dim,), jnp.float32),
            "b_hh": 0.1 * jax.random.normal(k3, (4 * hidden_dim,), jnp.float32),
        })
    return params


# -----------------------------------------------------------------------------
# Model builder: packs/pads params ONCE (bf16 weights, per-gate lane padding)
# and returns forward(x, hidden=None) matching PoetryModel.forward semantics.
# -----------------------------------------------------------------------------
def make_poetry_model(params, chunk=128):
    L = len(params["lstm"])
    H = params["lstm"][0]["w_hh"].shape[0]
    E = params["embedding"].shape[1]
    V = params["lin_w"].shape[1]
    Hp = _round_up(H, 128)          # lane-align each gate block
    Ep = _round_up(E, 128)

    # Embedding table stored bf16 and lane-padded once -> the gather output
    # feeds the fused layer-0 GEMM with no per-call cast/pad passes.
    emb = _pad_to(params["embedding"], (params["embedding"].shape[0], Ep)
                  ).astype(jnp.bfloat16)

    def pad_gate_cols(w):
        # (..., 4H) -> (..., 4Hp): zero-pad each gate block i|f|g|o to Hp.
        parts = jnp.split(w, 4, axis=-1)
        padw = [(0, 0)] * (w.ndim - 1) + [(0, Hp - H)]
        return jnp.concatenate([jnp.pad(p, padw) for p in parts], axis=-1)

    wih_l, whh_l, b_l = [], [], []
    for lp in params["lstm"]:
        wih_l.append(pad_gate_cols(lp["w_ih"]))                                  # (in, 4Hp)
        whh_l.append(jnp.pad(pad_gate_cols(lp["w_hh"]), ((0, Hp - H), (0, 0))))  # (Hp, 4Hp)
        b_l.append(pad_gate_cols((lp["b_ih"] + lp["b_hh"]).reshape(1, -1)))      # (1, 4Hp)

    wih0 = jnp.pad(wih_l[0], ((0, Ep - E), (0, 0))).astype(jnp.bfloat16)         # (Ep, 4Hp)
    b0 = b_l[0].astype(jnp.float32)
    if L > 1:
        wih_rest = jnp.stack(
            [jnp.pad(w, ((0, Hp - H), (0, 0))) for w in wih_l[1:]]
        ).astype(jnp.bfloat16)                                                   # (L-1, Hp, 4Hp)
        b_rest = jnp.stack(b_l[1:]).astype(jnp.float32)                          # (L-1, 1, 4Hp)
    else:
        wih_rest = b_rest = None
    whh = jnp.stack(whh_l).astype(jnp.bfloat16)                                  # (L, Hp, 4Hp)
    lin_w = jnp.pad(params["lin_w"], ((0, Hp - H), (0, 0))).astype(jnp.bfloat16)  # (Hp, V)
    lin_b = params["lin_b"].astype(jnp.float32)

    def forward(x, hidden=None):
        S, B = x.shape
        Bp = _round_up(B, 8)        # sublane-align batch
        C, Sp, needs_mask, unroll, vmem_limit = _plan_time_chunks(
            S, Bp, Hp, Ep, L, chunk)

        # Embedding lookup (gather) -- plain-JAX glue.
        embeds = jnp.take(emb, x, axis=0)                             # (S, B, Ep) bf16
        embeds = jnp.pad(embeds, ((0, Sp - S), (0, Bp - B), (0, 0)))  # (Sp, Bp, Ep)
        xin = embeds.reshape(Sp * Bp, Ep)

        if hidden is None:
            h0 = jnp.zeros((L, Bp, Hp), jnp.float32)
            c0 = jnp.zeros((L, Bp, Hp), jnp.float32)
        else:
            h0_u, c0_u = hidden                                       # (L, B, H)
            pad = ((0, 0), (0, Bp - B), (0, Hp - H))
            h0 = jnp.pad(h0_u.astype(jnp.float32), pad)
            c0 = jnp.pad(c0_u.astype(jnp.float32), pad)

        y, h_n, c_n = lstm_stack(
            xin, wih0, b0, wih_rest, b_rest, whh, h0, c0,
            seq_len=S, Sp=Sp, C=C, Bp=Bp, Hp=Hp, Ep=Ep, num_layers=L,
            needs_mask=needs_mask, unroll=unroll, vmem_limit=vmem_limit)

        # Tiled vocab projection on the padded bf16 hidden slab.
        logits = matmul_bias(y, lin_w, lin_b)                         # (Sp*Bp, V) f32
        logits = logits.reshape(Sp, Bp, V)[:S, :B, :].reshape(S * B, V)
        return logits, (h_n[:, :B, :H], c_n[:, :B, :H])

    return forward


# -----------------------------------------------------------------------------
# Pure-JAX f32 reference (for a sanity check)
# -----------------------------------------------------------------------------
def _reference_forward(params, x, hidden=None):
    S, B = x.shape
    L = len(params["lstm"])
    H = params["lstm"][0]["w_hh"].shape[0]
    layer_in = jnp.take(params["embedding"], x, axis=0)
    if hidden is None:
        h0 = jnp.zeros((L, B, H), jnp.float32)
        c0 = jnp.zeros((L, B, H), jnp.float32)
    else:
        h0, c0 = hidden
    h_ns, c_ns = [], []
    for layer in range(L):
        lp = params["lstm"][layer]
        b = lp["b_ih"] + lp["b_hh"]

        def step(carry, x_t, lp=lp, b=b):
            h, c = carry
            gates = x_t @ lp["w_ih"] + h @ lp["w_hh"] + b
            i, f, g, o = jnp.split(gates, 4, axis=-1)
            c = jax.nn.sigmoid(f) * c + jax.nn.sigmoid(i) * jnp.tanh(g)
            h = jax.nn.sigmoid(o) * jnp.tanh(c)
            return (h, c), h

        (h_f, c_f), ys = jax.lax.scan(step, (h0[layer], c0[layer]), layer_in)
        layer_in = ys
        h_ns.append(h_f)
        c_ns.append(c_f)
    logits = layer_in.reshape(S * B, H) @ params["lin_w"] + params["lin_b"]
    return logits, jnp.stack(h_ns), jnp.stack(c_ns)


if __name__ == "__main__":
    vocab_size, embedding_dim, hidden_dim, num_layers = 32, 32, 32, 2
    seq_len, batch = 8, 2

    key = jax.random.PRNGKey(0)
    pkey, xkey, hkey, ckey = jax.random.split(key, 4)
    params = init_params(pkey, vocab_size, embedding_dim, hidden_dim, num_layers)
    x = jax.random.randint(xkey, (seq_len, batch), 0, vocab_size, dtype=jnp.int32)

    # --- 1) default path: single time chunk, hidden=None ------------------
    forward = jax.jit(make_poetry_model(params))
    logits, (h_n, c_n) = forward(x)
    jax.block_until_ready((logits, h_n, c_n))

    assert logits.shape == (seq_len * batch, vocab_size)
    assert h_n.shape == (num_layers, batch, hidden_dim)
    assert c_n.shape == (num_layers, batch, hidden_dim)

    ref_logits, ref_h, ref_c = _reference_forward(params, x)
    # bf16 matmul operands, f32 accumulation / gate math -> small tolerance.
    assert jnp.allclose(logits, ref_logits, rtol=2e-2, atol=2e-2), "logits mismatch"
    assert jnp.allclose(h_n, ref_h, rtol=2e-2, atol=2e-2), "h_n mismatch"
    assert jnp.allclose(c_n, ref_c, rtol=2e-2, atol=2e-2), "c_n mismatch"

    # --- 2) multi-chunk + masked-tail path, hidden state provided ----------
    h0 = 0.1 * jax.random.normal(hkey, (num_layers, batch, hidden_dim), jnp.float32)
    c0 = 0.1 * jax.random.normal(ckey, (num_layers, batch, hidden_dim), jnp.float32)
    forward_chunked = jax.jit(make_poetry_model(params, chunk=6))   # Sp=12 > S=8
    logits2, (h_n2, c_n2) = forward_chunked(x, (h0, c0))
    jax.block_until_ready((logits2, h_n2, c_n2))
    ref_logits2, ref_h2, ref_c2 = _reference_forward(params, x, (h0, c0))
    assert jnp.allclose(logits2, ref_logits2, rtol=2e-2, atol=2e-2), "chunked logits mismatch"
    assert jnp.allclose(h_n2, ref_h2, rtol=2e-2, atol=2e-2), "chunked h_n mismatch"
    assert jnp.allclose(c_n2, ref_c2, rtol=2e-2, atol=2e-2), "chunked c_n mismatch"

    # --- 3) single-layer path (no wih_rest/b_rest inputs) ------------------
    params1 = init_params(pkey, vocab_size, embedding_dim, hidden_dim, 1)
    forward1 = jax.jit(make_poetry_model(params1))
    logits3, (h_n3, c_n3) = forward1(x)
    jax.block_until_ready((logits3, h_n3, c_n3))
    ref_logits3, ref_h3, ref_c3 = _reference_forward(params1, x)
    assert jnp.allclose(logits3, ref_logits3, rtol=2e-2, atol=2e-2), "L=1 logits mismatch"
    assert jnp.allclose(h_n3, ref_h3, rtol=2e-2, atol=2e-2), "L=1 h_n mismatch"
    assert jnp.allclose(c_n3, ref_c3, rtol=2e-2, atol=2e-2), "L=1 c_n mismatch"

    print("KERNEL_OK")
</pallas_src>

<mosaic_0001>
module attributes {stable_mosaic.version = 11 : i64} {
  func.func @_matmul_bias_kernel(%arg0: i32, %arg1: i32, %arg2: i32, %arg3: memref<64x128xbf16, #tpu.memory_space<vmem>>, %arg4: memref<128x128xbf16, #tpu.memory_space<vmem>>, %arg5: memref<1x128xf32, #tpu.memory_space<vmem>>, %arg6: memref<64x128xf32, #tpu.memory_space<vmem>>, %arg7: memref<64x128xf32, #tpu.memory_space<vmem>>) attributes {dimension_semantics = [#tpu.dimension_semantics<parallel>, #tpu.dimension_semantics<parallel>, #tpu.dimension_semantics<arbitrary>], iteration_bounds = array<i64: 1, 1, 1>, scalar_prefetch = 0 : i64, scratch_operands = 1 : i64, tpu.core_type = #tpu.core_type<tc>, window_params = [{transform_indices = @transform_0, window_bounds = array<i64: 64, 128>}, {transform_indices = @transform_1, window_bounds = array<i64: 128, 128>}, {transform_indices = @transform_2, window_bounds = array<i64: 1, 128>}, {transform_indices = @transform_3, window_bounds = array<i64: 64, 128>}]} {
    %c0_i32 = arith.constant 0 : i32
    %0 = arith.cmpi eq, %arg2, %c0_i32 : i32
    %1 = arith.extui %0 : i1 to i32
    %c0_i32_0 = arith.constant 0 : i32
    %2 = arith.cmpi ne, %1, %c0_i32_0 : i32
    scf.if %2 {
      %cst_10 = arith.constant 0.000000e+00 : f32
      %12 = vector.broadcast %cst_10 : f32 to vector<64x128xf32>
      %c0_11 = arith.constant 0 : index
      %c0_12 = arith.constant 0 : index
      %13 = vector.load %arg7[%c0_11, %c0_12] : memref<64x128xf32, #tpu.memory_space<vmem>>, vector<64x128xf32>
      tpu.vector_store %arg7[%c0_11, %c0_12], %12 {strides = array<i32>} : memref<64x128xf32, #tpu.memory_space<vmem>>, vector<64x128xf32>,
    } else {
    }
    %c0 = arith.constant 0 : index
    %c0_1 = arith.constant 0 : index
    %3 = vector.load %arg7[%c0, %c0_1] : memref<64x128xf32, #tpu.memory_space<vmem>>, vector<64x128xf32>
    %c0_2 = arith.constant 0 : index
    %c0_3 = arith.constant 0 : index
    %4 = vector.load %arg3[%c0_2, %c0_3] : memref<64x128xbf16, #tpu.memory_space<vmem>>, vector<64x128xbf16>
    %c0_4 = arith.constant 0 : index
    %c0_5 = arith.constant 0 : index
    %5 = vector.load %arg4[%c0_4, %c0_5] : memref<128x128xbf16, #tpu.memory_space<vmem>>, vector<128x128xbf16>
    %cst = arith.constant dense<0.000000e+00> : vector<64x128xf32>
    %6 = tpu.matmul %4, %5, %cst {dimension_numbers = #tpu.dot_dimension_numbers<[1], [0], [0], [1], [0, 0, 1, 1], [], []>} : vector<64x128xbf16>, vector<128x128xbf16>, vector<64x128xf32> -> vector<64x128xf32>
    %7 = arith.addf %3, %6 : vector<64x128xf32>
    %c0_6 = arith.constant 0 : index
    %c0_7 = arith.constant 0 : index
    %8 = vector.load %arg7[%c0_6, %c0_7] : memref<64x128xf32, #tpu.memory_space<vmem>>, vector<64x128xf32>
    tpu.vector_store %arg7[%c0_6, %c0_7], %7 {strides = array<i32>} : memref<64x128xf32, #tpu.memory_space<vmem>>, vector<64x128xf32>,
    %c0_i32_8 = arith.constant 0 : i32
    %9 = arith.cmpi eq, %arg2, %c0_i32_8 : i32
    %10 = arith.extui %9 : i1 to i32
    %c0_i32_9 = arith.constant 0 : i32
    %11 = arith.cmpi ne, %10, %c0_i32_9 : i32
    scf.if %11 {
      %c0_10 = arith.constant 0 : index
      %c0_11 = arith.constant 0 : index
      %12 = vector.load %arg7[%c0_10, %c0_11] : memref<64x128xf32, #tpu.memory_space<vmem>>, vector<64x128xf32>
      %c0_12 = arith.constant 0 : index
      %c0_13 = arith.constant 0 : index
      %13 = vector.load %arg5[%c0_12, %c0_13] : memref<1x128xf32, #tpu.memory_space<vmem>>, vector<1x128xf32>
      %14 = vector.broadcast %13 : vector<1x128xf32> to vector<64x128xf32>
      %15 = arith.addf %12, %14 : vector<64x128xf32>
      %c0_14 = arith.constant 0 : index
      %c0_15 = arith.constant 0 : index
      %16 = vector.load %arg6[%c0_14, %c0_15] : memref<64x128xf32, #tpu.memory_space<vmem>>, vector<64x128xf32>
      tpu.vector_store %arg6[%c0_14, %c0_15], %15 {strides = array<i32>} : memref<64x128xf32, #tpu.memory_space<vmem>>, vector<64x128xf32>,
    } else {
    }
    return
  }
  func.func @transform_0(%arg0: i32, %arg1: i32, %arg2: i32) -> (i32, i32) {
    %c0_i32 = arith.constant 0 : i32
    return %arg0, %arg2 : i32, i32
  }
  func.func @transform_1(%arg0: i32, %arg1: i32, %arg2: i32) -> (i32, i32) {
    %c0_i32 = arith.constant 0 : i32
    return %arg2, %arg1 : i32, i32
  }
  func.func @transform_2(%arg0: i32, %arg1: i32, %arg2: i32) -> (i32, i32) {
    %c0_i32 = arith.constant 0 : i32
    %c0_i32_0 = arith.constant 0 : i32
    return %c0_i32, %arg1 : i32, i32
  }
  func.func @transform_3(%arg0: i32, %arg1: i32, %arg2: i32) -> (i32, i32) {
    %c0_i32 = arith.constant 0 : i32
    return %arg0, %arg1 : i32, i32
  }
}

module attributes {stable_mosaic.version = 11 : i64} {
  func.func @_lstm_stack_kernel(%arg0: i32, %arg1: memref<64x128xbf16, #tpu.memory_space<vmem>>, %arg2: memref<128x512xbf16, #tpu.memory_space<vmem>>, %arg3: memref<1x512xf32, #tpu.memory_space<vmem>>, %arg4: memref<1x128x512xbf16, #tpu.memory_space<vmem>>, %arg5: memref<1x1x512xf32, #tpu.memory_space<vmem>>, %arg6: memref<2x128x512xbf16, #tpu.memory_space<vmem>>, %arg7: memref<2x8x128xf32, #tpu.memory_space<vmem>>, %arg8: memref<2x8x128xf32, #tpu.memory_space<vmem>>, %arg9: memref<64x128xbf16, #tpu.memory_space<vmem>>, %arg10: memref<2x8x128xf32, #tpu.memory_space<vmem>>, %arg11: memref<2x8x128xf32, #tpu.memory_space<vmem>>, %arg12: memref<64x512xf32, #tpu.memory_space<vmem>>, %arg13: memref<64x128xf32, #tpu.memory_space<vmem>>) attributes {dimension_semantics = [#tpu.dimension_semantics<arbitrary>], iteration_bounds = array<i64: 1>, scalar_prefetch = 0 : i64, scratch_operands = 2 : i64, tpu.core_type = #tpu.core_type<tc>, window_params = [{transform_indices = @transform_0, window_bounds = array<i64: 64, 128>}, {pipeline_mode = #tpu.pipeline_mode<synchronous>, transform_indices = @transform_1, window_bounds = array<i64: 128, 512>}, {pipeline_mode = #tpu.pipeline_mode<synchronous>, transform_indices = @transform_2, window_bounds = array<i64: 1, 512>}, {pipeline_mode = #tpu.pipeline_mode<synchronous>, transform_indices = @transform_3, window_bounds = array<i64: 1, 128, 512>}, {pipeline_mode = #tpu.pipeline_mode<synchronous>, transform_indices = @transform_4, window_bounds = array<i64: 1, 1, 512>}, {pipeline_mode = #tpu.pipeline_mode<synchronous>, transform_indices = @transform_5, window_bounds = array<i64: 2, 128, 512>}, {pipeline_mode = #tpu.pipeline_mode<synchronous>, transform_indices = @transform_6, window_bounds = array<i64: 2, 8, 128>}, {pipeline_mode = #tpu.pipeline_mode<synchronous>, transform_indices = @transform_7, window_bounds = array<i64: 2, 8, 128>}, {transform_indices = @transform_8, window_bounds = array<i64: 64, 128>}, {pipeline_mode = #tpu.pipeline_mode<synchronous>, transform_indices = @transform_9, window_bounds = array<i64: 2, 8, 128>}, {pipeline_mode = #tpu.pipeline_mode<synchronous>, transform_indices = @transform_10, window_bounds = array<i64: 2, 8, 128>}]} {
    %c0_i32 = arith.constant 0 : i32
    %0 = arith.cmpi eq, %arg0, %c0_i32 : i32
    %1 = arith.extui %0 : i1 to i32
    %c0_i32_0 = arith.constant 0 : i32
    %2 = arith.cmpi ne, %1, %c0_i32_0 : i32
    scf.if %2 {
      %c0_216 = arith.constant 0 : index
      %c0_217 = arith.constant 0 : index
      %c0_218 = arith.constant 0 : index
      %619 = vector.load %arg7[%c0_216, %c0_217, %c0_218] : memref<2x8x128xf32, #tpu.memory_space<vmem>>, vector<2x8x128xf32>
      %c0_219 = arith.constant 0 : index
      %c0_220 = arith.constant 0 : index
      %c0_221 = arith.constant 0 : index
      %620 = vector.load %arg10[%c0_219, %c0_220, %c0_221] : memref<2x8x128xf32, #tpu.memory_space<vmem>>, vector<2x8x128xf32>
      tpu.vector_store %arg10[%c0_219, %c0_220, %c0_221], %619 {strides = array<i32>} : memref<2x8x128xf32, #tpu.memory_space<vmem>>, vector<2x8x128xf32>,
      %c0_222 = arith.constant 0 : index
      %c0_223 = arith.constant 0 : index
      %c0_224 = arith.constant 0 : index
      %621 = vector.load %arg8[%c0_222, %c0_223, %c0_224] : memref<2x8x128xf32, #tpu.memory_space<vmem>>, vector<2x8x128xf32>
      %c0_225 = arith.constant 0 : index
      %c0_226 = arith.constant 0 : index
      %c0_227 = arith.constant 0 : index
      %622 = vector.load %arg11[%c0_225, %c0_226, %c0_227] : memref<2x8x128xf32, #tpu.memory_space<vmem>>, vector<2x8x128xf32>
      tpu.vector_store %arg11[%c0_225, %c0_226, %c0_227], %621 {strides = array<i32>} : memref<2x8x128xf32, #tpu.memory_space<vmem>>, vector<2x8x128xf32>,
    } else {
    }
    %c0 = arith.constant 0 : index
    %c0_1 = arith.constant 0 : index
    %3 = vector.load %arg1[%c0, %c0_1] : memref<64x128xbf16, #tpu.memory_space<vmem>>, vector<64x128xbf16>
    %c0_2 = arith.constant 0 : index
    %c0_3 = arith.constant 0 : index
    %4 = vector.load %arg2[%c0_2, %c0_3] : memref<128x512xbf16, #tpu.memory_space<vmem>>, vector<128x512xbf16>
    %cst = arith.constant dense<0.000000e+00> : vector<64x512xf32>
    %5 = tpu.matmul %3, %4, %cst {dimension_numbers = #tpu.dot_dimension_numbers<[1], [0], [0], [1], [0, 0, 1, 1], [], []>} : vector<64x128xbf16>, vector<128x512xbf16>, vector<64x512xf32> -> vector<64x512xf32>
    %c0_4 = arith.constant 0 : index
    %c0_5 = arith.constant 0 : index
    %6 = vector.load %arg3[%c0_4, %c0_5] : memref<1x512xf32, #tpu.memory_space<vmem>>, vector<1x512xf32>
    %7 = vector.broadcast %6 : vector<1x512xf32> to vector<64x512xf32>
    %8 = arith.addf %5, %7 : vector<64x512xf32>
    %c0_6 = arith.constant 0 : index
    %c0_7 = arith.constant 0 : index
    %9 = vector.load %arg12[%c0_6, %c0_7] : memref<64x512xf32, #tpu.memory_space<vmem>>, vector<64x512xf32>
    tpu.vector_store %arg12[%c0_6, %c0_7], %8 {strides = array<i32>} : memref<64x512xf32, #tpu.memory_space<vmem>>, vector<64x512xf32>,
    %c0_8 = arith.constant 0 : index
    %c0_9 = arith.constant 0 : index
    %c0_10 = arith.constant 0 : index
    %10 = vector.load %arg10[%c0_8, %c0_9, %c0_10] : memref<2x8x128xf32, #tpu.memory_space<vmem>>, vector<1x8x128xf32>
    %11 = vector.shape_cast %10 : vector<1x8x128xf32> to vector<8x128xf32>
    %c0_11 = arith.constant 0 : index
    %c0_12 = arith.constant 0 : index
    %c0_13 = arith.constant 0 : index
    %12 = vector.load %arg11[%c0_11, %c0_12, %c0_13] : memref<2x8x128xf32, #tpu.memory_space<vmem>>, vector<1x8x128xf32>
    %13 = vector.shape_cast %12 : vector<1x8x128xf32> to vector<8x128xf32>
    %c0_i32_14 = arith.constant 0 : i32
    %c8_i32 = arith.constant 8 : i32
    %14 = arith.muli %c0_i32_14, %c8_i32 : i32
    %15 = tpu.assume_multiple %14, 8 : i32
    %16 = arith.index_cast %15 : i32 to index
    %c0_15 = arith.constant 0 : index
    %17 = vector.load %arg12[%16, %c0_15] : memref<64x512xf32, #tpu.memory_space<vmem>>, vector<8x512xf32>
    %18 = arith.truncf %11 : vector<8x128xf32> to vector<8x128xbf16>
    %c0_16 = arith.constant 0 : index
    %c0_17 = arith.constant 0 : index
    %c0_18 = arith.constant 0 : index
    %19 = vector.load %arg6[%c0_16, %c0_17, %c0_18] : memref<2x128x512xbf16, #tpu.memory_space<vmem>>, vector<1x128x512xbf16>
    %20 = vector.shape_cast %19 : vector<1x128x512xbf16> to vector<128x512xbf16>
    %cst_19 = arith.constant dense<0.000000e+00> : vector<8x512xf32>
    %21 = tpu.matmul %18, %20, %cst_19 {dimension_numbers = #tpu.dot_dimension_numbers<[1], [0], [0], [1], [0, 0, 1, 1], [], []>} : vector<8x128xbf16>, vector<128x512xbf16>, vector<8x512xf32> -> vector<8x512xf32>
    %22 = arith.addf %17, %21 : vector<8x512xf32>
    %23 = vector.extract_strided_slice %22 {offsets = [0, 0], sizes = [8, 128], strides = [1, 1]} : vector<8x512xf32> to vector<8x128xf32>
    %24 = arith.negf %23 : vector<8x128xf32>
    %25 = math.exp %24 : vector<8x128xf32>
    %cst_20 = arith.constant 1.000000e+00 : f32
    %26 = vector.broadcast %cst_20 : f32 to vector<8x128xf32>
    %27 = arith.addf %26, %25 : vector<8x128xf32>
    %28 = arith.divf %26, %27 : vector<8x128xf32>
    %29 = vector.extract_strided_slice %22 {offsets = [0, 128], sizes = [8, 128], strides = [1, 1]} : vector<8x512xf32> to vector<8x128xf32>
    %30 = arith.negf %29 : vector<8x128xf32>
    %31 = math.exp %30 : vector<8x128xf32>
    %cst_21 = arith.constant 1.000000e+00 : f32
    %32 = vector.broadcast %cst_21 : f32 to vector<8x128xf32>
    %33 = arith.addf %32, %31 : vector<8x128xf32>
    %34 = arith.divf %32, %33 : vector<8x128xf32>
    %35 = vector.extract_strided_slice %22 {offsets = [0, 256], sizes = [8, 128], strides = [1, 1]} : vector<8x512xf32> to vector<8x128xf32>
    %36 = math.tanh %35 : vector<8x128xf32>
    %37 = vector.extract_strided_slice %22 {offsets = [0, 384], sizes = [8, 128], strides = [1, 1]} : vector<8x512xf32> to vector<8x128xf32>
    %38 = arith.negf %37 : vector<8x128xf32>
    %39 = math.exp %38 : vector<8x128xf32>
    %cst_22 = arith.constant 1.000000e+00 : f32
    %40 = vector.broadcast %cst_22 : f32 to vector<8x128xf32>
    %41 = arith.addf %40, %39 : vector<8x128xf32>
    %42 = arith.divf %40, %41 : vector<8x128xf32>
    %43 = arith.mulf %34, %13 : vector<8x128xf32>
    %44 = arith.mulf %28, %36 : vector<8x128xf32>
    %45 = arith.addf %43, %44 : vector<8x128xf32>
    %46 = math.tanh %45 : vector<8x128xf32>
    %47 = arith.mulf %42, %46 : vector<8x128xf32>
    %48 = arith.index_cast %15 : i32 to index
    %c0_23 = arith.constant 0 : index
    %49 = vector.load %arg13[%48, %c0_23] : memref<64x128xf32, #tpu.memory_space<vmem>>, vector<8x128xf32>
    tpu.vector_store %arg13[%48, %c0_23], %47 {strides = array<i32>} : memref<64x128xf32, #tpu.memory_space<vmem>>, vector<8x128xf32>,
    %c1_i32 = arith.constant 1 : i32
    %c8_i32_24 = arith.constant 8 : i32
    %50 = arith.muli %c1_i32, %c8_i32_24 : i32
    %51 = tpu.assume_multiple %50, 8 : i32
    %52 = arith.index_cast %51 : i32 to index
    %c0_25 = arith.constant 0 : index
    %53 = vector.load %arg12[%52, %c0_25] : memref<64x512xf32, #tpu.memory_space<vmem>>, vector<8x512xf32>
    %54 = arith.truncf %47 : vector<8x128xf32> to vector<8x128xbf16>
    %c0_26 = arith.constant 0 : index
    %c0_27 = arith.constant 0 : index
    %c0_28 = arith.constant 0 : index
    %55 = vector.load %arg6[%c0_26, %c0_27, %c0_28] : memref<2x128x512xbf16, #tpu.memory_space<vmem>>, vector<1x128x512xbf16>
    %56 = vector.shape_cast %55 : vector<1x128x512xbf16> to vector<128x512xbf16>
    %cst_29 = arith.constant dense<0.000000e+00> : vector<8x512xf32>
    %57 = tpu.matmul %54, %56, %cst_29 {dimension_numbers = #tpu.dot_dimension_numbers<[1], [0], [0], [1], [0, 0, 1, 1], [], []>} : vector<8x128xbf16>, vector<128x512xbf16>, vector<8x512xf32> -> vector<8x512xf32>
    %58 = arith.addf %53, %57 : vector<8x512xf32>
    %59 = vector.extract_strided_slice %58 {offsets = [0, 0], sizes = [8, 128], strides = [1, 1]} : vector<8x512xf32> to vector<8x128xf32>
    %60 = arith.negf %59 : vector<8x128xf32>
    %61 = math.exp %60 : vector<8x128xf32>
    %cst_30 = arith.constant 1.000000e+00 : f32
    %62 = vector.broadcast %cst_30 : f32 to vector<8x128xf32>
    %63 = arith.addf %62, %61 : vector<8x128xf32>
    %64 = arith.divf %62, %63 : vector<8x128xf32>
    %65 = vector.extract_strided_slice %58 {offsets = [0, 128], sizes = [8, 128], strides = [1, 1]} : vector<8x512xf32> to vector<8x128xf32>
    %66 = arith.negf %65 : vector<8x128xf32>
    %67 = math.exp %66 : vector<8x128xf32>
    %cst_31 = arith.constant 1.000000e+00 : f32
    %68 = vector.broadcast %cst_31 : f32 to vector<8x128xf32>
    %69 = arith.addf %68, %67 : vector<8x128xf32>
    %70 = arith.divf %68, %69 : vector<8x128xf32>
    %71 = vector.extract_strided_slice %58 {offsets = [0, 256], sizes = [8, 128], strides = [1, 1]} : vector<8x512xf32> to vector<8x128xf32>
    %72 = math.tanh %71 : vector<8x128xf32>
    %73 = vector.extract_strided_slice %58 {offsets = [0, 384], sizes = [8, 128], strides = [1, 1]} : vector<8x512xf32> to vector<8x128xf32>
    %74 = arith.negf %73 : vector<8x128xf32>
    %75 = math.exp %74 : vector<8x128xf32>
    %cst_32 = arith.constant 1.000000e+00 : f32
    %76 = vector.broadcast %cst_32 : f32 to vector<8x128xf32>
    %77 = arith.addf %76, %75 : vector<8x128xf32>
    %78 = arith.divf %76, %77 : vector<8x128xf32>
    %79 = arith.mulf %70, %45 : vector<8x128xf32>
    %80 = arith.mulf %64, %72 : vector<8x128xf32>
    %81 = arith.addf %79, %80 : vector<8x128xf32>
    %82 = math.tanh %81 : vector<8x128xf32>
    %83 = arith.mulf %78, %82 : vector<8x128xf32>
    %84 = arith.index_cast %51 : i32 to index
    %c0_33 = arith.constant 0 : index
    %85 = vector.load %arg13[%84, %c0_33] : memref<64x128xf32, #tpu.memory_space<vmem>>, vector<8x128xf32>
    tpu.vector_store %arg13[%84, %c0_33], %83 {strides = array<i32>} : memref<64x128xf32, #tpu.memory_space<vmem>>, vector<8x128xf32>,
    %c2_i32 = arith.constant 2 : i32
    %c8_i32_34 = arith.constant 8 : i32
    %86 = arith.muli %c2_i32, %c8_i32_34 : i32
    %87 = tpu.assume_multiple %86, 8 : i32
    %88 = arith.index_cast %87 : i32 to index
    %c0_35 = arith.constant 0 : index
    %89 = vector.load %arg12[%88, %c0_35] : memref<64x512xf32, #tpu.memory_space<vmem>>, vector<8x512xf32>
    %90 = arith.truncf %83 : vector<8x128xf32> to vector<8x128xbf16>
    %c0_36 = arith.constant 0 : index
    %c0_37 = arith.constant 0 : index
    %c0_38 = arith.constant 0 : index
    %91 = vector.load %arg6[%c0_36, %c0_37, %c0_38] : memref<2x128x512xbf16, #tpu.memory_space<vmem>>, vector<1x128x512xbf16>
    %92 = vector.shape_cast %91 : vector<1x128x512xbf16> to vector<128x512xbf16>
    %cst_39 = arith.constant dense<0.000000e+00> : vector<8x512xf32>
    %93 = tpu.matmul %90, %92, %cst_39 {dimension_numbers = #tpu.dot_dimension_numbers<[1], [0], [0], [1], [0, 0, 1, 1], [], []>} : vector<8x128xbf16>, vector<128x512xbf16>, vector<8x512xf32> -> vector<8x512xf32>
    %94 = arith.addf %89, %93 : vector<8x512xf32>
    %95 = vector.extract_strided_slice %94 {offsets = [0, 0], sizes = [8, 128], strides = [1, 1]} : vector<8x512xf32> to vector<8x128xf32>
    %96 = arith.negf %95 : vector<8x128xf32>
    %97 = math.exp %96 : vector<8x128xf32>
    %cst_40 = arith.constant 1.000000e+00 : f32
    %98 = vector.broadcast %cst_40 : f32 to vector<8x128xf32>
    %99 = arith.addf %98, %97 : vector<8x128xf32>
    %100 = arith.divf %98, %99 : vector<8x128xf32>
    %101 = vector.extract_strided_slice %94 {offsets = [0, 128], sizes = [8, 128], strides = [1, 1]} : vector<8x512xf32> to vector<8x128xf32>
    %102 = arith.negf %101 : vector<8x128xf32>
    %103 = math.exp %102 : vector<8x128xf32>
    %cst_41 = arith.constant 1.000000e+00 : f32
    %104 = vector.broadcast %cst_41 : f32 to vector<8x128xf32>
    %105 = arith.addf %104, %103 : vector<8x128xf32>
    %106 = arith.divf %104, %105 : vector<8x128xf32>
    %107 = vector.extract_strided_slice %94 {offsets = [0, 256], sizes = [8, 128], strides = [1, 1]} : vector<8x512xf32> to vector<8x128xf32>
    %108 = math.tanh %107 : vector<8x128xf32>
    %109 = vector.extract_strided_slice %94 {offsets = [0, 384], sizes = [8, 128], strides = [1, 1]} : vector<8x512xf32> to vector<8x128xf32>
    %110 = arith.negf %109 : vector<8x128xf32>
    %111 = math.exp %110 : vector<8x128xf32>
    %cst_42 = arith.constant 1.000000e+00 : f32
    %112 = vector.broadcast %cst_42 : f32 to vector<8x128xf32>
    %113 = arith.addf %112, %111 : vector<8x128xf32>
    %114 = arith.divf %112, %113 : vector<8x128xf32>
    %115 = arith.mulf %106, %81 : vector<8x128xf32>
    %116 = arith.mulf %100, %108 : vector<8x128xf32>
    %117 = arith.addf %115, %116 : vector<8x128xf32>
    %118 = math.tanh %117 : vector<8x128xf32>
    %119 = arith.mulf %114, %118 : vector<8x128xf32>
    %120 = arith.index_cast %87 : i32 to index
    %c0_43 = arith.constant 0 : index
    %121 = vector.load %arg13[%120, %c0_43] : memref<64x128xf32, #tpu.memory_space<vmem>>, vector<8x128xf32>
    tpu.vector_store %arg13[%120, %c0_43], %119 {strides = array<i32>} : memref<64x128xf32, #tpu.memory_space<vmem>>, vector<8x128xf32>,
    %c3_i32 = arith.constant 3 : i32
    %c8_i32_44 = arith.constant 8 : i32
    %122 = arith.muli %c3_i32, %c8_i32_44 : i32
    %123 = tpu.assume_multiple %122, 8 : i32
    %124 = arith.index_cast %123 : i32 to index
    %c0_45 = arith.constant 0 : index
    %125 = vector.load %arg12[%124, %c0_45] : memref<64x512xf32, #tpu.memory_space<vmem>>, vector<8x512xf32>
    %126 = arith.truncf %119 : vector<8x128xf32> to vector<8x128xbf16>
    %c0_46 = arith.constant 0 : index
    %c0_47 = arith.constant 0 : index
    %c0_48 = arith.constant 0 : index
    %127 = vector.load %arg6[%c0_46, %c0_47, %c0_48] : memref<2x128x512xbf16, #tpu.memory_space<vmem>>, vector<1x128x512xbf16>
    %128 = vector.shape_cast %127 : vector<1x128x512xbf16> to vector<128x512xbf16>
    %cst_49 = arith.constant dense<0.000000e+00> : vector<8x512xf32>
    %129 = tpu.matmul %126, %128, %cst_49 {dimension_numbers = #tpu.dot_dimension_numbers<[1], [0], [0], [1], [0, 0, 1, 1], [], []>} : vector<8x128xbf16>, vector<128x512xbf16>, vector<8x512xf32> -> vector<8x512xf32>
    %130 = arith.addf %125, %129 : vector<8x512xf32>
    %131 = vector.extract_strided_slice %130 {offsets = [0, 0], sizes = [8, 128], strides = [1, 1]} : vector<8x512xf32> to vector<8x128xf32>
    %132 = arith.negf %131 : vector<8x128xf32>
    %133 = math.exp %132 : vector<8x128xf32>
    %cst_50 = arith.constant 1.000000e+00 : f32
    %134 = vector.broadcast %cst_50 : f32 to vector<8x128xf32>
    %135 = arith.addf %134, %133 : vector<8x128xf32>
    %136 = arith.divf %134, %135 : vector<8x128xf32>
    %137 = vector.extract_strided_slice %130 {offsets = [0, 128], sizes = [8, 128], strides = [1, 1]} : vector<8x512xf32> to vector<8x128xf32>
    %138 = arith.negf %137 : vector<8x128xf32>
    %139 = math.exp %138 : vector<8x128xf32>
    %cst_51 = arith.constant 1.000000e+00 : f32
    %140 = vector.broadcast %cst_51 : f32 to vector<8x128xf32>
    %141 = arith.addf %140, %139 : vector<8x128xf32>
    %142 = arith.divf %140, %141 : vector<8x128xf32>
    %143 = vector.extract_strided_slice %130 {offsets = [0, 256], sizes = [8, 128], strides = [1, 1]} : vector<8x512xf32> to vector<8x128xf32>
    %144 = math.tanh %143 : vector<8x128xf32>
    %145 = vector.extract_strided_slice %130 {offsets = [0, 384], sizes = [8, 128], strides = [1, 1]} : vector<8x512xf32> to vector<8x128xf32>
    %146 = arith.negf %145 : vector<8x128xf32>
    %147 = math.exp %146 : vector<8x128xf32>
    %cst_52 = arith.constant 1.000000e+00 : f32
    %148 = vector.broadcast %cst_52 : f32 to vector<8x128xf32>
    %149 = arith.addf %148, %147 : vector<8x128xf32>
    %150 = arith.divf %148, %149 : vector<8x128xf32>
    %151 = arith.mulf %142, %117 : vector<8x128xf32>
    %152 = arith.mulf %136, %144 : vector<8x128xf32>
    %153 = arith.addf %151, %152 : vector<8x128xf32>
    %154 = math.tanh %153 : vector<8x128xf32>
    %155 = arith.mulf %150, %154 : vector<8x128xf32>
    %156 = arith.index_cast %123 : i32 to index
    %c0_53 = arith.constant 0 : index
    %157 = vector.load %arg13[%156, %c0_53] : memref<64x128xf32, #tpu.memory_space<vmem>>, vector<8x128xf32>
    tpu.vector_store %arg13[%156, %c0_53], %155 {strides = array<i32>} : memref<64x128xf32, #tpu.memory_space<vmem>>, vector<8x128xf32>,
    %c4_i32 = arith.constant 4 : i32
    %c8_i32_54 = arith.constant 8 : i32
    %158 = arith.muli %c4_i32, %c8_i32_54 : i32
    %159 = tpu.assume_multiple %158, 8 : i32
    %160 = arith.index_cast %159 : i32 to index
    %c0_55 = arith.constant 0 : index
    %161 = vector.load %arg12[%160, %c0_55] : memref<64x512xf32, #tpu.memory_space<vmem>>, vector<8x512xf32>
    %162 = arith.truncf %155 : vector<8x128xf32> to vector<8x128xbf16>
    %c0_56 = arith.constant 0 : index
    %c0_57 = arith.constant 0 : index
    %c0_58 = arith.constant 0 : index
    %163 = vector.load %arg6[%c0_56, %c0_57, %c0_58] : memref<2x128x512xbf16, #tpu.memory_space<vmem>>, vector<1x128x512xbf16>
    %164 = vector.shape_cast %163 : vector<1x128x512xbf16> to vector<128x512xbf16>
    %cst_59 = arith.constant dense<0.000000e+00> : vector<8x512xf32>
    %165 = tpu.matmul %162, %164, %cst_59 {dimension_numbers = #tpu.dot_dimension_numbers<[1], [0], [0], [1], [0, 0, 1, 1], [], []>} : vector<8x128xbf16>, vector<128x512xbf16>, vector<8x512xf32> -> vector<8x512xf32>
    %166 = arith.addf %161, %165 : vector<8x512xf32>
    %167 = vector.extract_strided_slice %166 {offsets = [0, 0], sizes = [8, 128], strides = [1, 1]} : vector<8x512xf32> to vector<8x128xf32>
    %168 = arith.negf %167 : vector<8x128xf32>
    %169 = math.exp %168 : vector<8x128xf32>
    %cst_60 = arith.constant 1.000000e+00 : f32
    %170 = vector.broadcast %cst_60 : f32 to vector<8x128xf32>
    %171 = arith.addf %170, %169 : vector<8x128xf32>
    %172 = arith.divf %170, %171 : vector<8x128xf32>
    %173 = vector.extract_strided_slice %166 {offsets = [0, 128], sizes = [8, 128], strides = [1, 1]} : vector<8x512xf32> to vector<8x128xf32>
    %174 = arith.negf %173 : vector<8x128xf32>
    %175 = math.exp %174 : vector<8x128xf32>
    %cst_61 = arith.constant 1.000000e+00 : f32
    %176 = vector.broadcast %cst_61 : f32 to vector<8x128xf32>
    %177 = arith.addf %176, %175 : vector<8x128xf32>
    %178 = arith.divf %176, %177 : vector<8x128xf32>
    %179 = vector.extract_strided_slice %166 {offsets = [0, 256], sizes = [8, 128], strides = [1, 1]} : vector<8x512xf32> to vector<8x128xf32>
    %180 = math.tanh %179 : vector<8x128xf32>
    %181 = vector.extract_strided_slice %166 {offsets = [0, 384], sizes = [8, 128], strides = [1, 1]} : vector<8x512xf32> to vector<8x128xf32>
    %182 = arith.negf %181 : vector<8x128xf32>
    %183 = math.exp %182 : vector<8x128xf32>
    %cst_62 = arith.constant 1.000000e+00 : f32
    %184 = vector.broadcast %cst_62 : f32 to vector<8x128xf32>
    %185 = arith.addf %184, %183 : vector<8x128xf32>
    %186 = arith.divf %184, %185 : vector<8x128xf32>
    %187 = arith.mulf %178, %153 : vector<8x128xf32>
    %188 = arith.mulf %172, %180 : vector<8x128xf32>
    %189 = arith.addf %187, %188 : vector<8x128xf32>
    %190 = math.tanh %189 : vector<8x128xf32>
    %191 = arith.mulf %186, %190 : vector<8x128xf32>
    %192 = arith.index_cast %159 : i32 to index
    %c0_63 = arith.constant 0 : index
    %193 = vector.load %arg13[%192, %c0_63] : memref<64x128xf32, #tpu.memory_space<vmem>>, vector<8x128xf32>
    tpu.vector_store %arg13[%192, %c0_63], %191 {strides = array<i32>} : memref<64x128xf32, #tpu.memory_space<vmem>>, vector<8x128xf32>,
    %c5_i32 = arith.constant 5 : i32
    %c8_i32_64 = arith.constant 8 : i32
    %194 = arith.muli %c5_i32, %c8_i32_64 : i32
    %195 = tpu.assume_multiple %194, 8 : i32
    %196 = arith.index_cast %195 : i32 to index
    %c0_65 = arith.constant 0 : index
    %197 = vector.load %arg12[%196, %c0_65] : memref<64x512xf32, #tpu.memory_space<vmem>>, vector<8x512xf32>
    %198 = arith.truncf %191 : vector<8x128xf32> to vector<8x128xbf16>
    %c0_66 = arith.constant 0 : index
    %c0_67 = arith.constant 0 : index
    %c0_68 = arith.constant 0 : index
    %199 = vector.load %arg6[%c0_66, %c0_67, %c0_68] : memref<2x128x512xbf16, #tpu.memory_space<vmem>>, vector<1x128x512xbf16>
    %200 = vector.shape_cast %199 : vector<1x128x512xbf16> to vector<128x512xbf16>
    %cst_69 = arith.constant dense<0.000000e+00> : vector<8x512xf32>
    %201 = tpu.matmul %198, %200, %cst_69 {dimension_numbers = #tpu.dot_dimension_numbers<[1], [0], [0], [1], [0, 0, 1, 1], [], []>} : vector<8x128xbf16>, vector<128x512xbf16>, vector<8x512xf32> -> vector<8x512xf32>
    %202 = arith.addf %197, %201 : vector<8x512xf32>
    %203 = vector.extract_strided_slice %202 {offsets = [0, 0], sizes = [8, 128], strides = [1, 1]} : vector<8x512xf32> to vector<8x128xf32>
    %204 = arith.negf %203 : vector<8x128xf32>
    %205 = math.exp %204 : vector<8x128xf32>
    %cst_70 = arith.constant 1.000000e+00 : f32
    %206 = vector.broadcast %cst_70 : f32 to vector<8x128xf32>
    %207 = arith.addf %206, %205 : vector<8x128xf32>
    %208 = arith.divf %206, %207 : vector<8x128xf32>
    %209 = vector.extract_strided_slice %202 {offsets = [0, 128], sizes = [8, 128], strides = [1, 1]} : vector<8x512xf32> to vector<8x128xf32>
    %210 = arith.negf %209 : vector<8x128xf32>
    %211 = math.exp %210 : vector<8x128xf32>
    %cst_71 = arith.constant 1.000000e+00 : f32
    %212 = vector.broadcast %cst_71 : f32 to vector<8x128xf32>
    %213 = arith.addf %212, %211 : vector<8x128xf32>
    %214 = arith.divf %212, %213 : vector<8x128xf32>
    %215 = vector.extract_strided_slice %202 {offsets = [0, 256], sizes = [8, 128], strides = [1, 1]} : vector<8x512xf32> to vector<8x128xf32>
    %216 = math.tanh %215 : vector<8x128xf32>
    %217 = vector.extract_strided_slice %202 {offsets = [0, 384], sizes = [8, 128], strides = [1, 1]} : vector<8x512xf32> to vector<8x128xf32>
    %218 = arith.negf %217 : vector<8x128xf32>
    %219 = math.exp %218 : vector<8x128xf32>
    %cst_72 = arith.constant 1.000000e+00 : f32
    %220 = vector.broadcast %cst_72 : f32 to vector<8x128xf32>
    %221 = arith.addf %220, %219 : vector<8x128xf32>
    %222 = arith.divf %220, %221 : vector<8x128xf32>
    %223 = arith.mulf %214, %189 : vector<8x128xf32>
    %224 = arith.mulf %208, %216 : vector<8x128xf32>
    %225 = arith.addf %223, %224 : vector<8x128xf32>
    %226 = math.tanh %225 : vector<8x128xf32>
    %227 = arith.mulf %222, %226 : vector<8x128xf32>
    %228 = arith.index_cast %195 : i32 to index
    %c0_73 = arith.constant 0 : index
    %229 = vector.load %arg13[%228, %c0_73] : memref<64x128xf32, #tpu.memory_space<vmem>>, vector<8x128xf32>
    tpu.vector_store %arg13[%228, %c0_73], %227 {strides = array<i32>} : memref<64x128xf32, #tpu.memory_space<vmem>>, vector<8x128xf32>,
    %c6_i32 = arith.constant 6 : i32
    %c8_i32_74 = arith.constant 8 : i32
    %230 = arith.muli %c6_i32, %c8_i32_74 : i32
    %231 = tpu.assume_multiple %230, 8 : i32
    %232 = arith.index_cast %231 : i32 to index
    %c0_75 = arith.constant 0 : index
    %233 = vector.load %arg12[%232, %c0_75] : memref<64x512xf32, #tpu.memory_space<vmem>>, vector<8x512xf32>
    %234 = arith.truncf %227 : vector<8x128xf32> to vector<8x128xbf16>
    %c0_76 = arith.constant 0 : index
    %c0_77 = arith.constant 0 : index
    %c0_78 = arith.constant 0 : index
    %235 = vector.load %arg6[%c0_76, %c0_77, %c0_78] : memref<2x128x512xbf16, #tpu.memory_space<vmem>>, vector<1x128x512xbf16>
    %236 = vector.shape_cast %235 : vector<1x128x512xbf16> to vector<128x512xbf16>
    %cst_79 = arith.constant dense<0.000000e+00> : vector<8x512xf32>
    %237 = tpu.matmul %234, %236, %cst_79 {dimension_numbers = #tpu.dot_dimension_numbers<[1], [0], [0], [1], [0, 0, 1, 1], [], []>} : vector<8x128xbf16>, vector<128x512xbf16>, vector<8x512xf32> -> vector<8x512xf32>
    %238 = arith.addf %233, %237 : vector<8x512xf32>
    %239 = vector.extract_strided_slice %238 {offsets = [0, 0], sizes = [8, 128], strides = [1, 1]} : vector<8x512xf32> to vector<8x128xf32>
    %240 = arith.negf %239 : vector<8x128xf32>
    %241 = math.exp %240 : vector<8x128xf32>
    %cst_80 = arith.constant 1.000000e+00 : f32
    %242 = vector.broadcast %cst_80 : f32 to vector<8x128xf32>
    %243 = arith.addf %242, %241 : vector<8x128xf32>
    %244 = arith.divf %242, %243 : vector<8x128xf32>
    %245 = vector.extract_strided_slice %238 {offsets = [0, 128], sizes = [8, 128], strides = [1, 1]} : vector<8x512xf32> to vector<8x128xf32>
    %246 = arith.negf %245 : vector<8x128xf32>
    %247 = math.exp %246 : vector<8x128xf32>
    %cst_81 = arith.constant 1.000000e+00 : f32
    %248 = vector.broadcast %cst_81 : f32 to vector<8x128xf32>
    %249 = arith.addf %248, %247 : vector<8x128xf32>
    %250 = arith.divf %248, %249 : vector<8x128xf32>
    %251 = vector.extract_strided_slice %238 {offsets = [0, 256], sizes = [8, 128], strides = [1, 1]} : vector<8x512xf32> to vector<8x128xf32>
    %252 = math.tanh %251 : vector<8x128xf32>
    %253 = vector.extract_strided_slice %238 {offsets = [0, 384], sizes = [8, 128], strides = [1, 1]} : vector<8x512xf32> to vector<8x128xf32>
    %254 = arith.negf %253 : vector<8x128xf32>
    %255 = math.exp %254 : vector<8x128xf32>
    %cst_82 = arith.constant 1.000000e+00 : f32
    %256 = vector.broadcast %cst_82 : f32 to vector<8x128xf32>
    %257 = arith.addf %256, %255 : vector<8x128xf32>
    %258 = arith.divf %256, %257 : vector<8x128xf32>
    %259 = arith.mulf %250, %225 : vector<8x128xf32>
    %260 = arith.mulf %244, %252 : vector<8x128xf32>
    %261 = arith.addf %259, %260 : vector<8x128xf32>
    %262 = math.tanh %261 : vector<8x128xf32>
    %263 = arith.mulf %258, %262 : vector<8x128xf32>
    %264 = arith.index_cast %231 : i32 to index
    %c0_83 = arith.constant 0 : index
    %265 = vector.load %arg13[%264, %c0_83] : memref<64x128xf32, #tpu.memory_space<vmem>>, vector<8x128xf32>
    tpu.vector_store %arg13[%264, %c0_83], %263 {strides = array<i32>} : memref<64x128xf32, #tpu.memory_space<vmem>>, vector<8x128xf32>,
    %c7_i32 = arith.constant 7 : i32
    %c8_i32_84 = arith.constant 8 : i32
    %266 = arith.muli %c7_i32, %c8_i32_84 : i32
    %267 = tpu.assume_multiple %266, 8 : i32
    %268 = arith.index_cast %267 : i32 to index
    %c0_85 = arith.constant 0 : index
    %269 = vector.load %arg12[%268, %c0_85] : memref<64x512xf32, #tpu.memory_space<vmem>>, vector<8x512xf32>
    %270 = arith.truncf %263 : vector<8x128xf32> to vector<8x128xbf16>
    %c0_86 = arith.constant 0 : index
    %c0_87 = arith.constant 0 : index
    %c0_88 = arith.constant 0 : index
    %271 = vector.load %arg6[%c0_86, %c0_87, %c0_88] : memref<2x128x512xbf16, #tpu.memory_space<vmem>>, vector<1x128x512xbf16>
    %272 = vector.shape_cast %271 : vector<1x128x512xbf16> to vector<128x512xbf16>
    %cst_89 = arith.constant dense<0.000000e+00> : vector<8x512xf32>
    %273 = tpu.matmul %270, %272, %cst_89 {dimension_numbers = #tpu.dot_dimension_numbers<[1], [0], [0], [1], [0, 0, 1, 1], [], []>} : vector<8x128xbf16>, vector<128x512xbf16>, vector<8x512xf32> -> vector<8x512xf32>
    %274 = arith.addf %269, %273 : vector<8x512xf32>
    %275 = vector.extract_strided_slice %274 {offsets = [0, 0], sizes = [8, 128], strides = [1, 1]} : vector<8x512xf32> to vector<8x128xf32>
    %276 = arith.negf %275 : vector<8x128xf32>
    %277 = math.exp %276 : vector<8x128xf32>
    %cst_90 = arith.constant 1.000000e+00 : f32
    %278 = vector.broadcast %cst_90 : f32 to vector<8x128xf32>
    %279 = arith.addf %278, %277 : vector<8x128xf32>
    %280 = arith.divf %278, %279 : vector<8x128xf32>
    %281 = vector.extract_strided_slice %274 {offsets = [0, 128], sizes = [8, 128], strides = [1, 1]} : vector<8x512xf32> to vector<8x128xf32>
    %282 = arith.negf %281 : vector<8x128xf32>
    %283 = math.exp %282 : vector<8x128xf32>
    %cst_91 = arith.constant 1.000000e+00 : f32
    %284 = vector.broadcast %cst_91 : f32 to vector<8x128xf32>
    %285 = arith.addf %284, %283 : vector<8x128xf32>
    %286 = arith.divf %284, %285 : vector<8x128xf32>
    %287 = vector.extract_strided_slice %274 {offsets = [0, 256], sizes = [8, 128], strides = [1, 1]} : vector<8x512xf32> to vector<8x128xf32>
    %288 = math.tanh %287 : vector<8x128xf32>
    %289 = vector.extract_strided_slice %274 {offsets = [0, 384], sizes = [8, 128], strides = [1, 1]} : vector<8x512xf32> to vector<8x128xf32>
    %290 = arith.negf %289 : vector<8x128xf32>
    %291 = math.exp %290 : vector<8x128xf32>
    %cst_92 = arith.constant 1.000000e+00 : f32
    %292 = vector.broadcast %cst_92 : f32 to vector<8x128xf32>
    %293 = arith.addf %292, %291 : vector<8x128xf32>
    %294 = arith.divf %292, %293 : vector<8x128xf32>
    %295 = arith.mulf %286, %261 : vector<8x128xf32>
    %296 = arith.mulf %280, %288 : vector<8x128xf32>
    %297 = arith.addf %295, %296 : vector<8x128xf32>
    %298 = math.tanh %297 : vector<8x128xf32>
    %299 = arith.mulf %294, %298 : vector<8x128xf32>
    %300 = arith.index_cast %267 : i32 to index
    %c0_93 = arith.constant 0 : index
    %301 = vector.load %arg13[%300, %c0_93] : memref<64x128xf32, #tpu.memory_space<vmem>>, vector<8x128xf32>
    tpu.vector_store %arg13[%300, %c0_93], %299 {strides = array<i32>} : memref<64x128xf32, #tpu.memory_space<vmem>>, vector<8x128xf32>,
    %c8_i32_94 = arith.constant 8 : i32
    %c0_95 = arith.constant 0 : index
    %c0_96 = arith.constant 0 : index
    %c0_97 = arith.constant 0 : index
    %302 = vector.load %arg10[%c0_95, %c0_96, %c0_97] : memref<2x8x128xf32, #tpu.memory_space<vmem>>, vector<1x8x128xf32>
    %303 = vector.shape_cast %302 : vector<1x8x128xf32> to vector<8x128xf32>
    %304 = vector.shape_cast %299 : vector<8x128xf32> to vector<1x8x128xf32>
    tpu.vector_store %arg10[%c0_95, %c0_96, %c0_97], %304 {strides = array<i32>} : memref<2x8x128xf32, #tpu.memory_space<vmem>>, vector<1x8x128xf32>,
    %c0_98 = arith.constant 0 : index
    %c0_99 = arith.constant 0 : index
    %c0_100 = arith.constant 0 : index
    %305 = vector.load %arg11[%c0_98, %c0_99, %c0_100] : memref<2x8x128xf32, #tpu.memory_space<vmem>>, vector<1x8x128xf32>
    %306 = vector.shape_cast %305 : vector<1x8x128xf32> to vector<8x128xf32>
    %307 = vector.shape_cast %297 : vector<8x128xf32> to vector<1x8x128xf32>
    tpu.vector_store %arg11[%c0_98, %c0_99, %c0_100], %307 {strides = array<i32>} : memref<2x8x128xf32, #tpu.memory_space<vmem>>, vector<1x8x128xf32>,
    %c0_101 = arith.constant 0 : index
    %c0_102 = arith.constant 0 : index
    %308 = vector.load %arg13[%c0_101, %c0_102] : memref<64x128xf32, #tpu.memory_space<vmem>>, vector<64x128xf32>
    %309 = arith.truncf %308 : vector<64x128xf32> to vector<64x128xbf16>
    %c0_103 = arith.constant 0 : index
    %c0_104 = arith.constant 0 : index
    %c0_105 = arith.constant 0 : index
    %310 = vector.load %arg4[%c0_103, %c0_104, %c0_105] : memref<1x128x512xbf16, #tpu.memory_space<vmem>>, vector<1x128x512xbf16>
    %311 = vector.shape_cast %310 : vector<1x128x512xbf16> to vector<128x512xbf16>
    %cst_106 = arith.constant dense<0.000000e+00> : vector<64x512xf32>
    %312 = tpu.matmul %309, %311, %cst_106 {dimension_numbers = #tpu.dot_dimension_numbers<[1], [0], [0], [1], [0, 0, 1, 1], [], []>} : vector<64x128xbf16>, vector<128x512xbf16>, vector<64x512xf32> -> vector<64x512xf32>
    %c0_107 = arith.constant 0 : index
    %c0_108 = arith.constant 0 : index
    %c0_109 = arith.constant 0 : index
    %313 = vector.load %arg5[%c0_107, %c0_108, %c0_109] : memref<1x1x512xf32, #tpu.memory_space<vmem>>, vector<1x1x512xf32>
    %314 = vector.shape_cast %313 : vector<1x1x512xf32> to vector<1x512xf32>
    %315 = vector.broadcast %314 : vector<1x512xf32> to vector<64x512xf32>
    %316 = arith.addf %312, %315 : vector<64x512xf32>
    %c0_110 = arith.constant 0 : index
    %c0_111 = arith.constant 0 : index
    %317 = vector.load %arg12[%c0_110, %c0_111] : memref<64x512xf32, #tpu.memory_space<vmem>>, vector<64x512xf32>
    tpu.vector_store %arg12[%c0_110, %c0_111], %316 {strides = array<i32>} : memref<64x512xf32, #tpu.memory_space<vmem>>, vector<64x512xf32>,
    %c1 = arith.constant 1 : index
    %c0_112 = arith.constant 0 : index
    %c0_113 = arith.constant 0 : index
    %318 = vector.load %arg10[%c1, %c0_112, %c0_113] : memref<2x8x128xf32, #tpu.memory_space<vmem>>, vector<1x8x128xf32>
    %319 = vector.shape_cast %318 : vector<1x8x128xf32> to vector<8x128xf32>
    %c1_114 = arith.constant 1 : index
    %c0_115 = arith.constant 0 : index
    %c0_116 = arith.constant 0 : index
    %320 = vector.load %arg11[%c1_114, %c0_115, %c0_116] : memref<2x8x128xf32, #tpu.memory_space<vmem>>, vector<1x8x128xf32>
    %321 = vector.shape_cast %320 : vector<1x8x128xf32> to vector<8x128xf32>
    %c0_i32_117 = arith.constant 0 : i32
    %c8_i32_118 = arith.constant 8 : i32
    %322 = arith.muli %c0_i32_117, %c8_i32_118 : i32
    %323 = tpu.assume_multiple %322, 8 : i32
    %324 = arith.index_cast %323 : i32 to index
    %c0_119 = arith.constant 0 : index
    %325 = vector.load %arg12[%324, %c0_119] : memref<64x512xf32, #tpu.memory_space<vmem>>, vector<8x512xf32>
    %326 = arith.truncf %319 : vector<8x128xf32> to vector<8x128xbf16>
    %c1_120 = arith.constant 1 : index
    %c0_121 = arith.constant 0 : index
    %c0_122 = arith.constant 0 : index
    %327 = vector.load %arg6[%c1_120, %c0_121, %c0_122] : memref<2x128x512xbf16, #tpu.memory_space<vmem>>, vector<1x128x512xbf16>
    %328 = vector.shape_cast %327 : vector<1x128x512xbf16> to vector<128x512xbf16>
    %cst_123 = arith.constant dense<0.000000e+00> : vector<8x512xf32>
    %329 = tpu.matmul %326, %328, %cst_123 {dimension_numbers = #tpu.dot_dimension_numbers<[1], [0], [0], [1], [0, 0, 1, 1], [], []>} : vector<8x128xbf16>, vector<128x512xbf16>, vector<8x512xf32> -> vector<8x512xf32>
    %330 = arith.addf %325, %329 : vector<8x512xf32>
    %331 = vector.extract_strided_slice %330 {offsets = [0, 0], sizes = [8, 128], strides = [1, 1]} : vector<8x512xf32> to vector<8x128xf32>
    %332 = arith.negf %331 : vector<8x128xf32>
    %333 = math.exp %332 : vector<8x128xf32>
    %cst_124 = arith.constant 1.000000e+00 : f32
    %334 = vector.broadcast %cst_124 : f32 to vector<8x128xf32>
    %335 = arith.addf %334, %333 : vector<8x128xf32>
    %336 = arith.divf %334, %335 : vector<8x128xf32>
    %337 = vector.extract_strided_slice %330 {offsets = [0, 128], sizes = [8, 128], strides = [1, 1]} : vector<8x512xf32> to vector<8x128xf32>
    %338 = arith.negf %337 : vector<8x128xf32>
    %339 = math.exp %338 : vector<8x128xf32>
    %cst_125 = arith.constant 1.000000e+00 : f32
    %340 = vector.broadcast %cst_125 : f32 to vector<8x128xf32>
    %341 = arith.addf %340, %339 : vector<8x128xf32>
    %342 = arith.divf %340, %341 : vector<8x128xf32>
    %343 = vector.extract_strided_slice %330 {offsets = [0, 256], sizes = [8, 128], strides = [1, 1]} : vector<8x512xf32> to vector<8x128xf32>
    %344 = math.tanh %343 : vector<8x128xf32>
    %345 = vector.extract_strided_slice %330 {offsets = [0, 384], sizes = [8, 128], strides = [1, 1]} : vector<8x512xf32> to vector<8x128xf32>
    %346 = arith.negf %345 : vector<8x128xf32>
    %347 = math.exp %346 : vector<8x128xf32>
    %cst_126 = arith.constant 1.000000e+00 : f32
    %348 = vector.broadcast %cst_126 : f32 to vector<8x128xf32>
    %349 = arith.addf %348, %347 : vector<8x128xf32>
    %350 = arith.divf %348, %349 : vector<8x128xf32>
    %351 = arith.mulf %342, %321 : vector<8x128xf32>
    %352 = arith.mulf %336, %344 : vector<8x128xf32>
    %353 = arith.addf %351, %352 : vector<8x128xf32>
    %354 = math.tanh %353 : vector<8x128xf32>
    %355 = arith.mulf %350, %354 : vector<8x128xf32>
    %356 = arith.index_cast %323 : i32 to index
    %c0_127 = arith.constant 0 : index
    %357 = vector.load %arg13[%356, %c0_127] : memref<64x128xf32, #tpu.memory_space<vmem>>, vector<8x128xf32>
    tpu.vector_store %arg13[%356, %c0_127], %355 {strides = array<i32>} : memref<64x128xf32, #tpu.memory_space<vmem>>, vector<8x128xf32>,
    %c1_i32_128 = arith.constant 1 : i32
    %c8_i32_129 = arith.constant 8 : i32
    %358 = arith.muli %c1_i32_128, %c8_i32_129 : i32
    %359 = tpu.assume_multiple %358, 8 : i32
    %360 = arith.index_cast %359 : i32 to index
    %c0_130 = arith.constant 0 : index
    %361 = vector.load %arg12[%360, %c0_130] : memref<64x512xf32, #tpu.memory_space<vmem>>, vector<8x512xf32>
    %362 = arith.truncf %355 : vector<8x128xf32> to vector<8x128xbf16>
    %c1_131 = arith.constant 1 : index
    %c0_132 = arith.constant 0 : index
    %c0_133 = arith.constant 0 : index
    %363 = vector.load %arg6[%c1_131, %c0_132, %c0_133] : memref<2x128x512xbf16, #tpu.memory_space<vmem>>, vector<1x128x512xbf16>
    %364 = vector.shape_cast %363 : vector<1x128x512xbf16> to vector<128x512xbf16>
    %cst_134 = arith.constant dense<0.000000e+00> : vector<8x512xf32>
    %365 = tpu.matmul %362, %364, %cst_134 {dimension_numbers = #tpu.dot_dimension_numbers<[1], [0], [0], [1], [0, 0, 1, 1], [], []>} : vector<8x128xbf16>, vector<128x512xbf16>, vector<8x512xf32> -> vector<8x512xf32>
    %366 = arith.addf %361, %365 : vector<8x512xf32>
    %367 = vector.extract_strided_slice %366 {offsets = [0, 0], sizes = [8, 128], strides = [1, 1]} : vector<8x512xf32> to vector<8x128xf32>
    %368 = arith.negf %367 : vector<8x128xf32>
    %369 = math.exp %368 : vector<8x128xf32>
    %cst_135 = arith.constant 1.000000e+00 : f32
    %370 = vector.broadcast %cst_135 : f32 to vector<8x128xf32>
    %371 = arith.addf %370, %369 : vector<8x128xf32>
    %372 = arith.divf %370, %371 : vector<8x128xf32>
    %373 = vector.extract_strided_slice %366 {offsets = [0, 128], sizes = [8, 128], strides = [1, 1]} : vector<8x512xf32> to vector<8x128xf32>
    %374 = arith.negf %373 : vector<8x128xf32>
    %375 = math.exp %374 : vector<8x128xf32>
    %cst_136 = arith.constant 1.000000e+00 : f32
    %376 = vector.broadcast %cst_136 : f32 to vector<8x128xf32>
    %377 = arith.addf %376, %375 : vector<8x128xf32>
    %378 = arith.divf %376, %377 : vector<8x128xf32>
    %379 = vector.extract_strided_slice %366 {offsets = [0, 256], sizes = [8, 128], strides = [1, 1]} : vector<8x512xf32> to vector<8x128xf32>
    %380 = math.tanh %379 : vector<8x128xf32>
    %381 = vector.extract_strided_slice %366 {offsets = [0, 384], sizes = [8, 128], strides = [1, 1]} : vector<8x512xf32> to vector<8x128xf32>
    %382 = arith.negf %381 : vector<8x128xf32>
    %383 = math.exp %382 : vector<8x128xf32>
    %cst_137 = arith.constant 1.000000e+00 : f32
    %384 = vector.broadcast %cst_137 : f32 to vector<8x128xf32>
    %385 = arith.addf %384, %383 : vector<8x128xf32>
    %386 = arith.divf %384, %385 : vector<8x128xf32>
    %387 = arith.mulf %378, %353 : vector<8x128xf32>
    %388 = arith.mulf %372, %380 : vector<8x128xf32>
    %389 = arith.addf %387, %388 : vector<8x128xf32>
    %390 = math.tanh %389 : vector<8x128xf32>
    %391 = arith.mulf %386, %390 : vector<8x128xf32>
    %392 = arith.index_cast %359 : i32 to index
    %c0_138 = arith.constant 0 : index
    %393 = vector.load %arg13[%392, %c0_138] : memref<64x128xf32, #tpu.memory_space<vmem>>, vector<8x128xf32>
    tpu.vector_store %arg13[%392, %c0_138], %391 {strides = array<i32>} : memref<64x128xf32, #tpu.memory_space<vmem>>, vector<8x128xf32>,
    %c2_i32_139 = arith.constant 2 : i32
    %c8_i32_140 = arith.constant 8 : i32
    %394 = arith.muli %c2_i32_139, %c8_i32_140 : i32
    %395 = tpu.assume_multiple %394, 8 : i32
    %396 = arith.index_cast %395 : i32 to index
    %c0_141 = arith.constant 0 : index
    %397 = vector.load %arg12[%396, %c0_141] : memref<64x512xf32, #tpu.memory_space<vmem>>, vector<8x512xf32>
    %398 = arith.truncf %391 : vector<8x128xf32> to vector<8x128xbf16>
    %c1_142 = arith.constant 1 : index
    %c0_143 = arith.constant 0 : index
    %c0_144 = arith.constant 0 : index
    %399 = vector.load %arg6[%c1_142, %c0_143, %c0_144] : memref<2x128x512xbf16, #tpu.memory_space<vmem>>, vector<1x128x512xbf16>
    %400 = vector.shape_cast %399 : vector<1x128x512xbf16> to vector<128x512xbf16>
    %cst_145 = arith.constant dense<0.000000e+00> : vector<8x512xf32>
    %401 = tpu.matmul %398, %400, %cst_145 {dimension_numbers = #tpu.dot_dimension_numbers<[1], [0], [0], [1], [0, 0, 1, 1], [], []>} : vector<8x128xbf16>, vector<128x512xbf16>, vector<8x512xf32> -> vector<8x512xf32>
    %402 = arith.addf %397, %401 : vector<8x512xf32>
    %403 = vector.extract_strided_slice %402 {offsets = [0, 0], sizes = [8, 128], strides = [1, 1]} : vector<8x512xf32> to vector<8x128xf32>
    %404 = arith.negf %403 : vector<8x128xf32>
    %405 = math.exp %404 : vector<8x128xf32>
    %cst_146 = arith.constant 1.000000e+00 : f32
    %406 = vector.broadcast %cst_146 : f32 to vector<8x128xf32>
    %407 = arith.addf %406, %405 : vector<8x128xf32>
    %408 = arith.divf %406, %407 : vector<8x128xf32>
    %409 = vector.extract_strided_slice %402 {offsets = [0, 128], sizes = [8, 128], strides = [1, 1]} : vector<8x512xf32> to vector<8x128xf32>
    %410 = arith.negf %409 : vector<8x128xf32>
    %411 = math.exp %410 : vector<8x128xf32>
    %cst_147 = arith.constant 1.000000e+00 : f32
    %412 = vector.broadcast %cst_147 : f32 to vector<8x128xf32>
    %413 = arith.addf %412, %411 : vector<8x128xf32>
    %414 = arith.divf %412, %413 : vector<8x128xf32>
    %415 = vector.extract_strided_slice %402 {offsets = [0, 256], sizes = [8, 128], strides = [1, 1]} : vector<8x512xf32> to vector<8x128xf32>
    %416 = math.tanh %415 : vector<8x128xf32>
    %417 = vector.extract_strided_slice %402 {offsets = [0, 384], sizes = [8, 128], strides = [1, 1]} : vector<8x512xf32> to vector<8x128xf32>
    %418 = arith.negf %417 : vector<8x128xf32>
    %419 = math.exp %418 : vector<8x128xf32>
    %cst_148 = arith.constant 1.000000e+00 : f32
    %420 = vector.broadcast %cst_148 : f32 to vector<8x128xf32>
    %421 = arith.addf %420, %419 : vector<8x128xf32>
    %422 = arith.divf %420, %421 : vector<8x128xf32>
    %423 = arith.mulf %414, %389 : vector<8x128xf32>
    %424 = arith.mulf %408, %416 : vector<8x128xf32>
    %425 = arith.addf %423, %424 : vector<8x128xf32>
    %426 = math.tanh %425 : vector<8x128xf32>
    %427 = arith.mulf %422, %426 : vector<8x128xf32>
    %428 = arith.index_cast %395 : i32 to index
    %c0_149 = arith.constant 0 : index
    %429 = vector.load %arg13[%428, %c0_149] : memref<64x128xf32, #tpu.memory_space<vmem>>, vector<8x128xf32>
    tpu.vector_store %arg13[%428, %c0_149], %427 {strides = array<i32>} : memref<64x128xf32, #tpu.memory_space<vmem>>, vector<8x128xf32>,
    %c3_i32_150 = arith.constant 3 : i32
    %c8_i32_151 = arith.constant 8 : i32
    %430 = arith.muli %c3_i32_150, %c8_i32_151 : i32
    %431 = tpu.assume_multiple %430, 8 : i32
    %432 = arith.index_cast %431 : i32 to index
    %c0_152 = arith.constant 0 : index
    %433 = vector.load %arg12[%432, %c0_152] : memref<64x512xf32, #tpu.memory_space<vmem>>, vector<8x512xf32>
    %434 = arith.truncf %427 : vector<8x128xf32> to vector<8x128xbf16>
    %c1_153 = arith.constant 1 : index
    %c0_154 = arith.constant 0 : index
    %c0_155 = arith.constant 0 : index
    %435 = vector.load %arg6[%c1_153, %c0_154, %c0_155] : memref<2x128x512xbf16, #tpu.memory_space<vmem>>, vector<1x128x512xbf16>
    %436 = vector.shape_cast %435 : vector<1x128x512xbf16> to vector<128x512xbf16>
    %cst_156 = arith.constant dense<0.000000e+00> : vector<8x512xf32>
    %437 = tpu.matmul %434, %436, %cst_156 {dimension_numbers = #tpu.dot_dimension_numbers<[1], [0], [0], [1], [0, 0, 1, 1], [], []>} : vector<8x128xbf16>, vector<128x512xbf16>, vector<8x512xf32> -> vector<8x512xf32>
    %438 = arith.addf %433, %437 : vector<8x512xf32>
    %439 = vector.extract_strided_slice %438 {offsets = [0, 0], sizes = [8, 128], strides = [1, 1]} : vector<8x512xf32> to vector<8x128xf32>
    %440 = arith.negf %439 : vector<8x128xf32>
    %441 = math.exp %440 : vector<8x128xf32>
    %cst_157 = arith.constant 1.000000e+00 : f32
    %442 = vector.broadcast %cst_157 : f32 to vector<8x128xf32>
    %443 = arith.addf %442, %441 : vector<8x128xf32>
    %444 = arith.divf %442, %443 : vector<8x128xf32>
    %445 = vector.extract_strided_slice %438 {offsets = [0, 128], sizes = [8, 128], strides = [1, 1]} : vector<8x512xf32> to vector<8x128xf32>
    %446 = arith.negf %445 : vector<8x128xf32>
    %447 = math.exp %446 : vector<8x128xf32>
    %cst_158 = arith.constant 1.000000e+00 : f32
    %448 = vector.broadcast %cst_158 : f32 to vector<8x128xf32>
    %449 = arith.addf %448, %447 : vector<8x128xf32>
    %450 = arith.divf %448, %449 : vector<8x128xf32>
    %451 = vector.extract_strided_slice %438 {offsets = [0, 256], sizes = [8, 128], strides = [1, 1]} : vector<8x512xf32> to vector<8x128xf32>
    %452 = math.tanh %451 : vector<8x128xf32>
    %453 = vector.extract_strided_slice %438 {offsets = [0, 384], sizes = [8, 128], strides = [1, 1]} : vector<8x512xf32> to vector<8x128xf32>
    %454 = arith.negf %453 : vector<8x128xf32>
    %455 = math.exp %454 : vector<8x128xf32>
    %cst_159 = arith.constant 1.000000e+00 : f32
    %456 = vector.broadcast %cst_159 : f32 to vector<8x128xf32>
    %457 = arith.addf %456, %455 : vector<8x128xf32>
    %458 = arith.divf %456, %457 : vector<8x128xf32>
    %459 = arith.mulf %450, %425 : vector<8x128xf32>
    %460 = arith.mulf %444, %452 : vector<8x128xf32>
    %461 = arith.addf %459, %460 : vector<8x128xf32>
    %462 = math.tanh %461 : vector<8x128xf32>
    %463 = arith.mulf %458, %462 : vector<8x128xf32>
    %464 = arith.index_cast %431 : i32 to index
    %c0_160 = arith.constant 0 : index
    %465 = vector.load %arg13[%464, %c0_160] : memref<64x128xf32, #tpu.memory_space<vmem>>, vector<8x128xf32>
    tpu.vector_store %arg13[%464, %c0_160], %463 {strides = array<i32>} : memref<64x128xf32, #tpu.memory_space<vmem>>, vector<8x128xf32>,
    %c4_i32_161 = arith.constant 4 : i32
    %c8_i32_162 = arith.constant 8 : i32
    %466 = arith.muli %c4_i32_161, %c8_i32_162 : i32
    %467 = tpu.assume_multiple %466, 8 : i32
    %468 = arith.index_cast %467 : i32 to index
    %c0_163 = arith.constant 0 : index
    %469 = vector.load %arg12[%468, %c0_163] : memref<64x512xf32, #tpu.memory_space<vmem>>, vector<8x512xf32>
    %470 = arith.truncf %463 : vector<8x128xf32> to vector<8x128xbf16>
    %c1_164 = arith.constant 1 : index
    %c0_165 = arith.constant 0 : index
    %c0_166 = arith.constant 0 : index
    %471 = vector.load %arg6[%c1_164, %c0_165, %c0_166] : memref<2x128x512xbf16, #tpu.memory_space<vmem>>, vector<1x128x512xbf16>
    %472 = vector.shape_cast %471 : vector<1x128x512xbf16> to vector<128x512xbf16>
    %cst_167 = arith.constant dense<0.000000e+00> : vector<8x512xf32>
    %473 = tpu.matmul %470, %472, %cst_167 {dimension_numbers = #tpu.dot_dimension_numbers<[1], [0], [0], [1], [0, 0, 1, 1], [], []>} : vector<8x128xbf16>, vector<128x512xbf16>, vector<8x512xf32> -> vector<8x512xf32>
    %474 = arith.addf %469, %473 : vector<8x512xf32>
    %475 = vector.extract_strided_slice %474 {offsets = [0, 0], sizes = [8, 128], strides = [1, 1]} : vector<8x512xf32> to vector<8x128xf32>
    %476 = arith.negf %475 : vector<8x128xf32>
    %477 = math.exp %476 : vector<8x128xf32>
    %cst_168 = arith.constant 1.000000e+00 : f32
    %478 = vector.broadcast %cst_168 : f32 to vector<8x128xf32>
    %479 = arith.addf %478, %477 : vector<8x128xf32>
    %480 = arith.divf %478, %479 : vector<8x128xf32>
    %481 = vector.extract_strided_slice %474 {offsets = [0, 128], sizes = [8, 128], strides = [1, 1]} : vector<8x512xf32> to vector<8x128xf32>
    %482 = arith.negf %481 : vector<8x128xf32>
    %483 = math.exp %482 : vector<8x128xf32>
    %cst_169 = arith.constant 1.000000e+00 : f32
    %484 = vector.broadcast %cst_169 : f32 to vector<8x128xf32>
    %485 = arith.addf %484, %483 : vector<8x128xf32>
    %486 = arith.divf %484, %485 : vector<8x128xf32>
    %487 = vector.extract_strided_slice %474 {offsets = [0, 256], sizes = [8, 128], strides = [1, 1]} : vector<8x512xf32> to vector<8x128xf32>
    %488 = math.tanh %487 : vector<8x128xf32>
    %489 = vector.extract_strided_slice %474 {offsets = [0, 384], sizes = [8, 128], strides = [1, 1]} : vector<8x512xf32> to vector<8x128xf32>
    %490 = arith.negf %489 : vector<8x128xf32>
    %491 = math.exp %490 : vector<8x128xf32>
    %cst_170 = arith.constant 1.000000e+00 : f32
    %492 = vector.broadcast %cst_170 : f32 to vector<8x128xf32>
    %493 = arith.addf %492, %491 : vector<8x128xf32>
    %494 = arith.divf %492, %493 : vector<8x128xf32>
    %495 = arith.mulf %486, %461 : vector<8x128xf32>
    %496 = arith.mulf %480, %488 : vector<8x128xf32>
    %497 = arith.addf %495, %496 : vector<8x128xf32>
    %498 = math.tanh %497 : vector<8x128xf32>
    %499 = arith.mulf %494, %498 : vector<8x128xf32>
    %500 = arith.index_cast %467 : i32 to index
    %c0_171 = arith.constant 0 : index
    %501 = vector.load %arg13[%500, %c0_171] : memref<64x128xf32, #tpu.memory_space<vmem>>, vector<8x128xf32>
    tpu.vector_store %arg13[%500, %c0_171], %499 {strides = array<i32>} : memref<64x128xf32, #tpu.memory_space<vmem>>, vector<8x128xf32>,
    %c5_i32_172 = arith.constant 5 : i32
    %c8_i32_173 = arith.constant 8 : i32
    %502 = arith.muli %c5_i32_172, %c8_i32_173 : i32
    %503 = tpu.assume_multiple %502, 8 : i32
    %504 = arith.index_cast %503 : i32 to index
    %c0_174 = arith.constant 0 : index
    %505 = vector.load %arg12[%504, %c0_174] : memref<64x512xf32, #tpu.memory_space<vmem>>, vector<8x512xf32>
    %506 = arith.truncf %499 : vector<8x128xf32> to vector<8x128xbf16>
    %c1_175 = arith.constant 1 : index
    %c0_176 = arith.constant 0 : index
    %c0_177 = arith.constant 0 : index
    %507 = vector.load %arg6[%c1_175, %c0_176, %c0_177] : memref<2x128x512xbf16, #tpu.memory_space<vmem>>, vector<1x128x512xbf16>
    %508 = vector.shape_cast %507 : vector<1x128x512xbf16> to vector<128x512xbf16>
    %cst_178 = arith.constant dense<0.000000e+00> : vector<8x512xf32>
    %509 = tpu.matmul %506, %508, %cst_178 {dimension_numbers = #tpu.dot_dimension_numbers<[1], [0], [0], [1], [0, 0, 1, 1], [], []>} : vector<8x128xbf16>, vector<128x512xbf16>, vector<8x512xf32> -> vector<8x512xf32>
    %510 = arith.addf %505, %509 : vector<8x512xf32>
    %511 = vector.extract_strided_slice %510 {offsets = [0, 0], sizes = [8, 128], strides = [1, 1]} : vector<8x512xf32> to vector<8x128xf32>
    %512 = arith.negf %511 : vector<8x128xf32>
    %513 = math.exp %512 : vector<8x128xf32>
    %cst_179 = arith.constant 1.000000e+00 : f32
    %514 = vector.broadcast %cst_179 : f32 to vector<8x128xf32>
    %515 = arith.addf %514, %513 : vector<8x128xf32>
    %516 = arith.divf %514, %515 : vector<8x128xf32>
    %517 = vector.extract_strided_slice %510 {offsets = [0, 128], sizes = [8, 128], strides = [1, 1]} : vector<8x512xf32> to vector<8x128xf32>
    %518 = arith.negf %517 : vector<8x128xf32>
    %519 = math.exp %518 : vector<8x128xf32>
    %cst_180 = arith.constant 1.000000e+00 : f32
    %520 = vector.broadcast %cst_180 : f32 to vector<8x128xf32>
    %521 = arith.addf %520, %519 : vector<8x128xf32>
    %522 = arith.divf %520, %521 : vector<8x128xf32>
    %523 = vector.extract_strided_slice %510 {offsets = [0, 256], sizes = [8, 128], strides = [1, 1]} : vector<8x512xf32> to vector<8x128xf32>
    %524 = math.tanh %523 : vector<8x128xf32>
    %525 = vector.extract_strided_slice %510 {offsets = [0, 384], sizes = [8, 128], strides = [1, 1]} : vector<8x512xf32> to vector<8x128xf32>
    %526 = arith.negf %525 : vector<8x128xf32>
    %527 = math.exp %526 : vector<8x128xf32>
    %cst_181 = arith.constant 1.000000e+00 : f32
    %528 = vector.broadcast %cst_181 : f32 to vector<8x128xf32>
    %529 = arith.addf %528, %527 : vector<8x128xf32>
    %530 = arith.divf %528, %529 : vector<8x128xf32>
    %531 = arith.mulf %522, %497 : vector<8x128xf32>
    %532 = arith.mulf %516, %524 : vector<8x128xf32>
    %533 = arith.addf %531, %532 : vector<8x128xf32>
    %534 = math.tanh %533 : vector<8x128xf32>
    %535 = arith.mulf %530, %534 : vector<8x128xf32>
    %536 = arith.index_cast %503 : i32 to index
    %c0_182 = arith.constant 0 : index
    %537 = vector.load %arg13[%536, %c0_182] : memref<64x128xf32, #tpu.memory_space<vmem>>, vector<8x128xf32>
    tpu.vector_store %arg13[%536, %c0_182], %535 {strides = array<i32>} : memref<64x128xf32, #tpu.memory_space<vmem>>, vector<8x128xf32>,
    %c6_i32_183 = arith.constant 6 : i32
    %c8_i32_184 = arith.constant 8 : i32
    %538 = arith.muli %c6_i32_183, %c8_i32_184 : i32
    %539 = tpu.assume_multiple %538, 8 : i32
    %540 = arith.index_cast %539 : i32 to index
    %c0_185 = arith.constant 0 : index
    %541 = vector.load %arg12[%540, %c0_185] : memref<64x512xf32, #tpu.memory_space<vmem>>, vector<8x512xf32>
    %542 = arith.truncf %535 : vector<8x128xf32> to vector<8x128xbf16>
    %c1_186 = arith.constant 1 : index
    %c0_187 = arith.constant 0 : index
    %c0_188 = arith.constant 0 : index
    %543 = vector.load %arg6[%c1_186, %c0_187, %c0_188] : memref<2x128x512xbf16, #tpu.memory_space<vmem>>, vector<1x128x512xbf16>
    %544 = vector.shape_cast %543 : vector<1x128x512xbf16> to vector<128x512xbf16>
    %cst_189 = arith.constant dense<0.000000e+00> : vector<8x512xf32>
    %545 = tpu.matmul %542, %544, %cst_189 {dimension_numbers = #tpu.dot_dimension_numbers<[1], [0], [0], [1], [0, 0, 1, 1], [], []>} : vector<8x128xbf16>, vector<128x512xbf16>, vector<8x512xf32> -> vector<8x512xf32>
    %546 = arith.addf %541, %545 : vector<8x512xf32>
    %547 = vector.extract_strided_slice %546 {offsets = [0, 0], sizes = [8, 128], strides = [1, 1]} : vector<8x512xf32> to vector<8x128xf32>
    %548 = arith.negf %547 : vector<8x128xf32>
    %549 = math.exp %548 : vector<8x128xf32>
    %cst_190 = arith.constant 1.000000e+00 : f32
    %550 = vector.broadcast %cst_190 : f32 to vector<8x128xf32>
    %551 = arith.addf %550, %549 : vector<8x128xf32>
    %552 = arith.divf %550, %551 : vector<8x128xf32>
    %553 = vector.extract_strided_slice %546 {offsets = [0, 128], sizes = [8, 128], strides = [1, 1]} : vector<8x512xf32> to vector<8x128xf32>
    %554 = arith.negf %553 : vector<8x128xf32>
    %555 = math.exp %554 : vector<8x128xf32>
    %cst_191 = arith.constant 1.000000e+00 : f32
    %556 = vector.broadcast %cst_191 : f32 to vector<8x128xf32>
    %557 = arith.addf %556, %555 : vector<8x128xf32>
    %558 = arith.divf %556, %557 : vector<8x128xf32>
    %559 = vector.extract_strided_slice %546 {offsets = [0, 256], sizes = [8, 128], strides = [1, 1]} : vector<8x512xf32> to vector<8x128xf32>
    %560 = math.tanh %559 : vector<8x128xf32>
    %561 = vector.extract_strided_slice %546 {offsets = [0, 384], sizes = [8, 128], strides = [1, 1]} : vector<8x512xf32> to vector<8x128xf32>
    %562 = arith.negf %561 : vector<8x128xf32>
    %563 = math.exp %562 : vector<8x128xf32>
    %cst_192 = arith.constant 1.000000e+00 : f32
    %564 = vector.broadcast %cst_192 : f32 to vector<8x128xf32>
    %565 = arith.addf %564, %563 : vector<8x128xf32>
    %566 = arith.divf %564, %565 : vector<8x128xf32>
    %567 = arith.mulf %558, %533 : vector<8x128xf32>
    %568 = arith.mulf %552, %560 : vector<8x128xf32>
    %569 = arith.addf %567, %568 : vector<8x128xf32>
    %570 = math.tanh %569 : vector<8x128xf32>
    %571 = arith.mulf %566, %570 : vector<8x128xf32>
    %572 = arith.index_cast %539 : i32 to index
    %c0_193 = arith.constant 0 : index
    %573 = vector.load %arg13[%572, %c0_193] : memref<64x128xf32, #tpu.memory_space<vmem>>, vector<8x128xf32>
    tpu.vector_store %arg13[%572, %c0_193], %571 {strides = array<i32>} : memref<64x128xf32, #tpu.memory_space<vmem>>, vector<8x128xf32>,
    %c7_i32_194 = arith.constant 7 : i32
    %c8_i32_195 = arith.constant 8 : i32
    %574 = arith.muli %c7_i32_194, %c8_i32_195 : i32
    %575 = tpu.assume_multiple %574, 8 : i32
    %576 = arith.index_cast %575 : i32 to index
    %c0_196 = arith.constant 0 : index
    %577 = vector.load %arg12[%576, %c0_196] : memref<64x512xf32, #tpu.memory_space<vmem>>, vector<8x512xf32>
    %578 = arith.truncf %571 : vector<8x128xf32> to vector<8x128xbf16>
    %c1_197 = arith.constant 1 : index
    %c0_198 = arith.constant 0 : index
    %c0_199 = arith.constant 0 : index
    %579 = vector.load %arg6[%c1_197, %c0_198, %c0_199] : memref<2x128x512xbf16, #tpu.memory_space<vmem>>, vector<1x128x512xbf16>
    %580 = vector.shape_cast %579 : vector<1x128x512xbf16> to vector<128x512xbf16>
    %cst_200 = arith.constant dense<0.000000e+00> : vector<8x512xf32>
    %581 = tpu.matmul %578, %580, %cst_200 {dimension_numbers = #tpu.dot_dimension_numbers<[1], [0], [0], [1], [0, 0, 1, 1], [], []>} : vector<8x128xbf16>, vector<128x512xbf16>, vector<8x512xf32> -> vector<8x512xf32>
    %582 = arith.addf %577, %581 : vector<8x512xf32>
    %583 = vector.extract_strided_slice %582 {offsets = [0, 0], sizes = [8, 128], strides = [1, 1]} : vector<8x512xf32> to vector<8x128xf32>
    %584 = arith.negf %583 : vector<8x128xf32>
    %585 = math.exp %584 : vector<8x128xf32>
    %cst_201 = arith.constant 1.000000e+00 : f32
    %586 = vector.broadcast %cst_201 : f32 to vector<8x128xf32>
    %587 = arith.addf %586, %585 : vector<8x128xf32>
    %588 = arith.divf %586, %587 : vector<8x128xf32>
    %589 = vector.extract_strided_slice %582 {offsets = [0, 128], sizes = [8, 128], strides = [1, 1]} : vector<8x512xf32> to vector<8x128xf32>
    %590 = arith.negf %589 : vector<8x128xf32>
    %591 = math.exp %590 : vector<8x128xf32>
    %cst_202 = arith.constant 1.000000e+00 : f32
    %592 = vector.broadcast %cst_202 : f32 to vector<8x128xf32>
    %593 = arith.addf %592, %591 : vector<8x128xf32>
    %594 = arith.divf %592, %593 : vector<8x128xf32>
    %595 = vector.extract_strided_slice %582 {offsets = [0, 256], sizes = [8, 128], strides = [1, 1]} : vector<8x512xf32> to vector<8x128xf32>
    %596 = math.tanh %595 : vector<8x128xf32>
    %597 = vector.extract_strided_slice %582 {offsets = [0, 384], sizes = [8, 128], strides = [1, 1]} : vector<8x512xf32> to vector<8x128xf32>
    %598 = arith.negf %597 : vector<8x128xf32>
    %599 = math.exp %598 : vector<8x128xf32>
    %cst_203 = arith.constant 1.000000e+00 : f32
    %600 = vector.broadcast %cst_203 : f32 to vector<8x128xf32>
    %601 = arith.addf %600, %599 : vector<8x128xf32>
    %602 = arith.divf %600, %601 : vector<8x128xf32>
    %603 = arith.mulf %594, %569 : vector<8x128xf32>
    %604 = arith.mulf %588, %596 : vector<8x128xf32>
    %605 = arith.addf %603, %604 : vector<8x128xf32>
    %606 = math.tanh %605 : vector<8x128xf32>
    %607 = arith.mulf %602, %606 : vector<8x128xf32>
    %608 = arith.index_cast %575 : i32 to index
    %c0_204 = arith.constant 0 : index
    %609 = vector.load %arg13[%608, %c0_204] : memref<64x128xf32, #tpu.memory_space<vmem>>, vector<8x128xf32>
    tpu.vector_store %arg13[%608, %c0_204], %607 {strides = array<i32>} : memref<64x128xf32, #tpu.memory_space<vmem>>, vector<8x128xf32>,
    %c8_i32_205 = arith.constant 8 : i32
    %c1_206 = arith.constant 1 : index
    %c0_207 = arith.constant 0 : index
    %c0_208 = arith.constant 0 : index
    %610 = vector.load %arg10[%c1_206, %c0_207, %c0_208] : memref<2x8x128xf32, #tpu.memory_space<vmem>>, vector<1x8x128xf32>
    %611 = vector.shape_cast %610 : vector<1x8x128xf32> to vector<8x128xf32>
    %612 = vector.shape_cast %607 : vector<8x128xf32> to vector<1x8x128xf32>
    tpu.vector_store %arg10[%c1_206, %c0_207, %c0_208], %612 {strides = array<i32>} : memref<2x8x128xf32, #tpu.memory_space<vmem>>, vector<1x8x128xf32>,
    %c1_209 = arith.constant 1 : index
    %c0_210 = arith.constant 0 : index
    %c0_211 = arith.constant 0 : index
    %613 = vector.load %arg11[%c1_209, %c0_210, %c0_211] : memref<2x8x128xf32, #tpu.memory_space<vmem>>, vector<1x8x128xf32>
    %614 = vector.shape_cast %613 : vector<1x8x128xf32> to vector<8x128xf32>
    %615 = vector.shape_cast %605 : vector<8x128xf32> to vector<1x8x128xf32>
    tpu.vector_store %arg11[%c1_209, %c0_210, %c0_211], %615 {strides = array<i32>} : memref<2x8x128xf32, #tpu.memory_space<vmem>>, vector<1x8x128xf32>,
    %c0_212 = arith.constant 0 : index
    %c0_213 = arith.constant 0 : index
    %616 = vector.load %arg13[%c0_212, %c0_213] : memref<64x128xf32, #tpu.memory_space<vmem>>, vector<64x128xf32>
    %617 = arith.truncf %616 : vector<64x128xf32> to vector<64x128xbf16>
    %c0_214 = arith.constant 0 : index
    %c0_215 = arith.constant 0 : index
    %618 = vector.load %arg9[%c0_214, %c0_215] : memref<64x128xbf16, #tpu.memory_space<vmem>>, vector<64x128xbf16>
    tpu.vector_store %arg9[%c0_214, %c0_215], %617 {strides = array<i32>} : memref<64x128xbf16, #tpu.memory_space<vmem>>, vector<64x128xbf16>,
    return
  }
  func.func @transform_0(%arg0: i32) -> (i32, i32) {
    %c0_i32 = arith.constant 0 : i32
    %c0_i32_0 = arith.constant 0 : i32
    return %arg0, %c0_i32 : i32, i32
  }
  func.func @transform_1(%arg0: i32) -> (i32, i32) {
    %c0_i32 = arith.constant 0 : i32
    %c0_i32_0 = arith.constant 0 : i32
    %c0_i32_1 = arith.constant 0 : i32
    return %c0_i32, %c0_i32_0 : i32, i32
  }
  func.func @transform_2(%arg0: i32) -> (i32, i32) {
    %c0_i32 = arith.constant 0 : i32
    %c0_i32_0 = arith.constant 0 : i32
    %c0_i32_1 = arith.constant 0 : i32
    return %c0_i32, %c0_i32_0 : i32, i32
  }
  func.func @transform_3(%arg0: i32) -> (i32, i32, i32) {
    %c0_i32 = arith.constant 0 : i32
    %c0_i32_0 = arith.constant 0 : i32
    %c0_i32_1 = arith.constant 0 : i32
    %c0_i32_2 = arith.constant 0 : i32
    return %c0_i32, %c0_i32_0, %c0_i32_1 : i32, i32, i32
  }
  func.func @transform_4(%arg0: i32) -> (i32, i32, i32) {
    %c0_i32 = arith.constant 0 : i32
    %c0_i32_0 = arith.constant 0 : i32
    %c0_i32_1 = arith.constant 0 : i32
    %c0_i32_2 = arith.constant 0 : i32
    return %c0_i32, %c0_i32_0, %c0_i32_1 : i32, i32, i32
  }
  func.func @transform_5(%arg0: i32) -> (i32, i32, i32) {
    %c0_i32 = arith.constant 0 : i32
    %c0_i32_0 = arith.constant 0 : i32
    %c0_i32_1 = arith.constant 0 : i32
    %c0_i32_2 = arith.constant 0 : i32
    return %c0_i32, %c0_i32_0, %c0_i32_1 : i32, i32, i32
  }
  func.func @transform_6(%arg0: i32) -> (i32, i32, i32) {
    %c0_i32 = arith.constant 0 : i32
    %c0_i32_0 = arith.constant 0 : i32
    %c0_i32_1 = arith.constant 0 : i32
    %c0_i32_2 = arith.constant 0 : i32
    return %c0_i32, %c0_i32_0, %c0_i32_1 : i32, i32, i32
  }
  func.func @transform_7(%arg0: i32) -> (i32, i32, i32) {
    %c0_i32 = arith.constant 0 : i32
    %c0_i32_0 = arith.constant 0 : i32
    %c0_i32_1 = arith.constant 0 : i32
    %c0_i32_2 = arith.constant 0 : i32
    return %c0_i32, %c0_i32_0, %c0_i32_1 : i32, i32, i32
  }
  func.func @transform_8(%arg0: i32) -> (i32, i32) {
    %c0_i32 = arith.constant 0 : i32
    %c0_i32_0 = arith.constant 0 : i32
    return %arg0, %c0_i32 : i32, i32
  }
  func.func @transform_9(%arg0: i32) -> (i32, i32, i32) {
    %c0_i32 = arith.constant 0 : i32
    %c0_i32_0 = arith.constant 0 : i32
    %c0_i32_1 = arith.constant 0 : i32
    %c0_i32_2 = arith.constant 0 : i32
    return %c0_i32, %c0_i32_0, %c0_i32_1 : i32, i32, i32
  }
  func.func @transform_10(%arg0: i32) -> (i32, i32, i32) {
    %c0_i32 = arith.constant 0 : i32
    %c0_i32_0 = arith.constant 0 : i32
    %c0_i32_1 = arith.constant 0 : i32
    %c0_i32_2 = arith.constant 0 : i32
    return %c0_i32, %c0_i32_0, %c0_i32_1 : i32, i32, i32
  }
}

</mosaic_0001>

<bundles_post_ra>
// kernel: forward.3
= control target key start
LH: loop header
LB: loop body
LE: loop exit
PB: predicated region body
PF: predicated region fallthrough
CT: control target
= control target key end

     0   :  { %s410_s1 = inlined_call_operand.vmem [shape: bf16[128,128], index: 1, kind: input, shape index: {}]   ;;  %s411_s0 = inlined_call_operand.vmem [shape: bf16[64,128], index: 0, kind: input, shape index: {}]   ;;  %s412_s2 = inlined_call_operand.vmem [shape: f32[1,128], index: 2, kind: input, shape index: {}]   ;;  %s413_s3 = inlined_call_operand.vmem [shape: f32[64,128], index: 3, kind: output, shape index: {}]  }
   0x1   :  { %v315_v0 = vld [vmem:[%s410_s1] sm:$0xff]   ;;  %v316_v1 = vld [vmem:[%s410_s1 + $0x8] sm:$0xff]   ;;  %v317_v2 = vld [vmem:[%s410_s1 + $0x10] sm:$0xff]  }
   0x2   :  { %275 = vmatprep.subr.bf16.mxu0 %v315_v0  ;;  %299 = vmatprep.subr.bf16.mxu1 %v315_v0  ;;  %v318_v3 = vld [vmem:[%s410_s1 + $0x18] sm:$0xff]   ;;  %v323_v4 = vld [vmem:[%s411_s0] sm:$0xff]   ;;  %v324_v5 = vld [vmem:[%s411_s0 + $0x10] sm:$0xff]  }
   0x3   :  { %276 = vmatpush3.bf16.msra.mxu0 %v315_v0  ;;  %307 = vmatpush3.bf16.msra.mxu1 %v315_v0  ;;  %v319_v6 = vld [vmem:[%s410_s1 + $0x20] sm:$0xff]   ;;  %v320_v7 = vld [vmem:[%s410_s1 + $0x28] sm:$0xff]   ;;  %v321_v8 = vld [vmem:[%s410_s1 + $0x30] sm:$0xff]  }
   0x4   :  { %277 = vmatprep.subr.bf16.mxu0 %v316_v1  ;;  %300 = vmatprep.subr.bf16.mxu1 %v316_v1  ;;  %v322_v9 = vld [vmem:[%s410_s1 + $0x38] sm:$0xff]   ;;  %v325_v10 = vld [vmem:[%s411_s0 + $0x8] sm:$0xff]   ;;  %v262_v12 = vld [vmem:[%s412_s2] ss:$0 sm:$0xff] }
   0x5   :  { %291 = vmatprep.mubr.bf16.mxu0 %v323_v4  ;;  %295 = vmatprep.mubr.bf16.mxu1 %v324_v5  ;;  %v326_v11 = vld [vmem:[%s411_s0 + $0x18] sm:$0xff]  }
   0x7   :  { %278 = vmatpush3.bf16.msra.mxu0 %v316_v1  ;;  %308 = vmatpush3.bf16.msra.mxu1 %v316_v1 }
   0x8   :  { %279 = vmatprep.subr.bf16.mxu0 %v317_v2  ;;  %301 = vmatprep.subr.bf16.mxu1 %v317_v2 }
   0xb   :  { %280 = vmatpush3.bf16.msra.mxu0 %v317_v2  ;;  %309 = vmatpush3.bf16.msra.mxu1 %v317_v2 }
   0xc   :  { %281 = vmatprep.subr.bf16.mxu0 %v318_v3  ;;  %302 = vmatprep.subr.bf16.mxu1 %v318_v3 }
   0xf   :  { %282 = vmatpush3.bf16.msra.mxu0 %v318_v3  ;;  %310 = vmatpush3.bf16.msra.mxu1 %v318_v3 }
  0x10   :  { %283 = vmatprep.subr.bf16.mxu0 %v319_v6  ;;  %303 = vmatprep.subr.bf16.mxu1 %v319_v6 }
  0x13   :  { %284 = vmatpush3.bf16.msra.mxu0 %v319_v6  ;;  %311 = vmatpush3.bf16.msra.mxu1 %v319_v6 }
  0x14   :  { %285 = vmatprep.subr.bf16.mxu0 %v320_v7  ;;  %304 = vmatprep.subr.bf16.mxu1 %v320_v7 }
  0x17   :  { %286 = vmatpush3.bf16.msra.mxu0 %v320_v7  ;;  %312 = vmatpush3.bf16.msra.mxu1 %v320_v7 }
  0x18   :  { %287 = vmatprep.subr.bf16.mxu0 %v321_v8  ;;  %305 = vmatprep.subr.bf16.mxu1 %v321_v8 }
  0x1b   :  { %288 = vmatpush3.bf16.msra.mxu0 %v321_v8  ;;  %313 = vmatpush3.bf16.msra.mxu1 %v321_v8 }
  0x1c   :  { %289 = vmatprep.subr.bf16.mxu0 %v322_v9  ;;  %306 = vmatprep.subr.bf16.mxu1 %v322_v9 }
  0x1f   :  { %290 = vmatpush3.bf16.msra.mxu0 %v322_v9  ;;  %314 = vmatpush3.bf16.msra.mxu1 %v322_v9 }
  0x22   :  { %292 = vmatmul.mubr.bf16.vlgmr.msra.gmra.mrb[0].mxu0 %v325_v10  ;;  %296 = vmatmul.mubr.bf16.vlgmr.msra.gmra.mrb[0].mxu1 %v326_v11 }
  0xf5   :  { %v293_v13 = vpop.f32.mrb[0].mxu0  ;;  %v297_v14 = vpop.f32.mrb[0].mxu1 }
  0xf6   :  { %v232_v15 = vadd.f32 %v293_v13, %v262_v12  ;;  %v236_v16 = vadd.f32 %v297_v14, %v262_v12  ;;  %v165_v17 = vpop.f32.mrb[1].mxu0  ;;  %v181_v18 = vpop.f32.mrb[1].mxu1 }
  0xf7   :  { %v230_v19 = vadd.f32 %v262_v12, %v165_v17  ;;  %v234_v20 = vadd.f32 %v262_v12, %v181_v18  ;;  %v294_v21 = vpop.f32.mrb[2].mxu0  ;;  %v298_v22 = vpop.f32.mrb[2].mxu1 }
  0xf8   :  { %240 = vst [vmem:[%s413_s3 + $0x10] sm:$0xff] %v232_v15  ;;  %244 = vst [vmem:[%s413_s3 + $0x30] sm:$0xff] %v236_v16  ;;  %v233_v23 = vadd.f32 %v294_v21, %v262_v12  ;;  %v237_v24 = vadd.f32 %v298_v22, %v262_v12  ;;  %v168_v25 = vpop.f32.mrb[3].mxu0  ;;  %v184_v26 = vpop.f32.mrb[3].mxu1 }
  0xf9   :  { %238 = vst [vmem:[%s413_s3] sm:$0xff] %v230_v19  ;;  %242 = vst [vmem:[%s413_s3 + $0x20] sm:$0xff] %v234_v20  ;;  %v231_v27 = vadd.f32 %v262_v12, %v168_v25  ;;  %v235_v28 = vadd.f32 %v262_v12, %v184_v26 }
  0xfa   :  { %241 = vst [vmem:[%s413_s3 + $0x18] sm:$0xff] %v233_v23  ;;  %245 = vst [vmem:[%s413_s3 + $0x38] sm:$0xff] %v237_v24 }
  0xfb   :  { %239 = vst [vmem:[%s413_s3 + $0x8] sm:$0xff] %v231_v27  ;;  %243 = vst [vmem:[%s413_s3 + $0x28] sm:$0xff] %v235_v28 }

// kernel: forward.2
= control target key start
LH: loop header
LB: loop body
LE: loop exit
PB: predicated region body
PF: predicated region fallthrough
CT: control target
= control target key end

     0   :  { %v9285_v1 = vmov 0   ;;  %s9270_s1 = inlined_call_operand.vmem [shape: bf16[128,512], index: 1, kind: input, shape index: {}]   ;;  %s9271_s0 = inlined_call_operand.vmem [shape: bf16[64,128], index: 0, kind: input, shape index: {}]   ;;  %s9272_s5 = inlined_call_operand.vmem [shape: bf16[2,128,512], index: 5, kind: input, shape index: {}]   ;;  %s9273_s9 = inlined_call_operand.vmem [shape: f32[2,8,128], index: 9, kind: output, shape index: {1}]   ;;  %s9274_s6 = inlined_call_operand.vmem [shape: f32[2,8,128], index: 6, kind: input, shape index: {}, may-alias: {6,7}]   ;;  %s9275_s7 = inlined_call_operand.vmem [shape: f32[2,8,128], index: 7, kind: input, shape index: {}, may-alias: {6,7}]   ;;  %s9276_s10 = inlined_call_operand.vmem [shape: f32[2,8,128], index: 10, kind: output, shape index: {2}]   ;;  %s9277_s2 = inlined_call_operand.vmem [shape: f32[1,512], index: 2, kind: input, shape index: {}]   ;;  %s9278_s3 = inlined_call_operand.vmem [shape: bf16[1,128,512], index: 3, kind: input, shape index: {}]   ;;  %s9279_s4 = inlined_call_operand.vmem [shape: f32[1,1,512], index: 4, kind: input, shape index: {}]   ;;  %s9280_s8 = inlined_call_operand.vmem [shape: bf16[64,128], index: 8, kind: output, shape index: {0}]  }
   0x1   :  { %v6838_v0 = vld [vmem:[%s9270_s1 + $0x4] ss:$16 sps:$4 sm:$0xff]   ;;  %323 = vmatprep.mubr.bf16.mxu0 %v9285_v1  ;;  %396 = vmatprep.mubr.bf16.mxu1 %v9285_v1  ;;  %v6840_v2 = vld [vmem:[%s9270_s1 + $0xc] ss:$16 sps:$4 sm:$0xff]   ;;  %v6842_v3 = vld [vmem:[%s9270_s1] ss:$16 sps:$4 sm:$0xff]  }
   0x2   :  { %291 = vmatprep.subr.bf16.mxu0 %v6838_v0  ;;  %v6843_v4 = vld [vmem:[%s9270_s1 + $0x8] ss:$16 sps:$4 sm:$0xff]   ;;  %364 = vmatprep.subr.bf16.mxu1 %v6840_v2  ;;  %v6844_v5 = vld [vmem:[%s9270_s1 + $0x24] ss:$16 sps:$4 sm:$0xff]   ;;  %v6846_v6 = vld [vmem:[%s9270_s1 + $0x2c] ss:$16 sps:$4 sm:$0xff]  }
   0x3   :  { %292 = vmatpush1.bf16.msra.mxu0 %v6842_v3  ;;  %365 = vmatpush1.bf16.msra.mxu1 %v6843_v4  ;;  %v6848_v7 = vld [vmem:[%s9270_s1 + $0x20] ss:$16 sps:$4 sm:$0xff]   ;;  %v6849_v8 = vld [vmem:[%s9270_s1 + $0x28] ss:$16 sps:$4 sm:$0xff]   ;;  %v6850_v9 = vld [vmem:[%s9270_s1 + $0x44] ss:$16 sps:$4 sm:$0xff]  }
   0x4   :  { %293 = vmatprep.subr.bf16.mxu0 %v6844_v5  ;;  %366 = vmatprep.subr.bf16.mxu1 %v6846_v6  ;;  %v6852_v10 = vld [vmem:[%s9270_s1 + $0x4c] ss:$16 sps:$4 sm:$0xff]   ;;  %v6854_v11 = vld [vmem:[%s9270_s1 + $0x40] ss:$16 sps:$4 sm:$0xff]   ;;  %v6855_v12 = vld [vmem:[%s9270_s1 + $0x48] ss:$16 sps:$4 sm:$0xff]  }
   0x5   :  { %v6856_v13 = vld [vmem:[%s9270_s1 + $0x64] ss:$16 sps:$4 sm:$0xff]   ;;  %v6858_v14 = vld [vmem:[%s9270_s1 + $0x6c] ss:$16 sps:$4 sm:$0xff]   ;;  %v6860_v15 = vld [vmem:[%s9270_s1 + $0x60] ss:$16 sps:$4 sm:$0xff]  }
   0x6   :  { %v6861_v16 = vld [vmem:[%s9270_s1 + $0x68] ss:$16 sps:$4 sm:$0xff]   ;;  %v6862_v17 = vld [vmem:[%s9270_s1 + $0x84] ss:$16 sps:$4 sm:$0xff]   ;;  %v6864_v18 = vld [vmem:[%s9270_s1 + $0x8c] ss:$16 sps:$4 sm:$0xff]  }
   0x7   :  { %294 = vmatpush1.bf16.msra.mxu0 %v6848_v7  ;;  %367 = vmatpush1.bf16.msra.mxu1 %v6849_v8  ;;  %v6866_v19 = vld [vmem:[%s9270_s1 + $0x80] ss:$16 sps:$4 sm:$0xff]   ;;  %v6867_v20 = vld [vmem:[%s9270_s1 + $0x88] ss:$16 sps:$4 sm:$0xff]   ;;  %v6868_v21 = vld [vmem:[%s9270_s1 + $0xa4] ss:$16 sps:$4 sm:$0xff]  }
   0x8   :  { %295 = vmatprep.subr.bf16.mxu0 %v6850_v9  ;;  %368 = vmatprep.subr.bf16.mxu1 %v6852_v10  ;;  %v6870_v22 = vld [vmem:[%s9270_s1 + $0xac] ss:$16 sps:$4 sm:$0xff]   ;;  %v6872_v23 = vld [vmem:[%s9270_s1 + $0xa0] ss:$16 sps:$4 sm:$0xff]   ;;  %v6873_v24 = vld [vmem:[%s9270_s1 + $0xa8] ss:$16 sps:$4 sm:$0xff]   ;;  %v87_v10 = vlaneseq }
   0x9   :  { %v6874_v25 = vld [vmem:[%s9270_s1 + $0xc4] ss:$16 sps:$4 sm:$0xff]   ;;  %v6876_v26 = vld [vmem:[%s9270_s1 + $0xcc] ss:$16 sps:$4 sm:$0xff]   ;;  %v6878_v27 = vld [vmem:[%s9270_s1 + $0xc0] ss:$16 sps:$4 sm:$0xff]  }
   0xa   :  { %v6879_v28 = vld [vmem:[%s9270_s1 + $0xc8] ss:$16 sps:$4 sm:$0xff]   ;;  %v6880_v29 = vld [vmem:[%s9270_s1 + $0xe4] ss:$16 sps:$4 sm:$0xff]   ;;  %v6882_v30 = vld [vmem:[%s9270_s1 + $0xec] ss:$16 sps:$4 sm:$0xff]  }
   0xb   :  { %296 = vmatpush1.bf16.msra.mxu0 %v6854_v11  ;;  %369 = vmatpush1.bf16.msra.mxu1 %v6855_v12  ;;  %v6884_v31 = vld [vmem:[%s9270_s1 + $0xe0] ss:$16 sps:$4 sm:$0xff]   ;;  %v6885_v32 = vld [vmem:[%s9270_s1 + $0xe8] ss:$16 sps:$4 sm:$0xff]   ;;  %v7543_v33 = vld [vmem:[%s9272_s5 + $0x4] ss:$16 sps:$4 sm:$0xff]  }
   0xc   :  { %297 = vmatprep.subr.bf16.mxu0 %v6856_v13  ;;  %370 = vmatprep.subr.bf16.mxu1 %v6858_v14  ;;  %v7548_v34 = vld [vmem:[%s9272_s5 + $0xc] ss:$16 sps:$4 sm:$0xff]   ;;  %v6886_v35 = vld [vmem:[%s9271_s0] sm:$0xff]   ;;  %v7561_v37 = vld [vmem:[%s9272_s5 + $0x8] ss:$16 sps:$4 sm:$0xff]   ;;  %v7803_v11 = vshrl.u32 %v87_v10, 7 }
   0xd   :  { %v7556_v36 = vld [vmem:[%s9272_s5] ss:$16 sps:$4 sm:$0xff]   ;;  %v7568_v38 = vld [vmem:[%s9272_s5 + $0x24] ss:$16 sps:$4 sm:$0xff]   ;;  %v7573_v39 = vld [vmem:[%s9272_s5 + $0x2c] ss:$16 sps:$4 sm:$0xff]  }
   0xe   :  { %v7578_v40 = vld [vmem:[%s9272_s5 + $0x20] ss:$16 sps:$4 sm:$0xff]   ;;  %v7585_v41 = vld [vmem:[%s9272_s5 + $0x28] ss:$16 sps:$4 sm:$0xff]   ;;  %v7592_v42 = vld [vmem:[%s9272_s5 + $0x44] ss:$16 sps:$4 sm:$0xff]  }
   0xf   :  { %298 = vmatpush1.bf16.msra.mxu0 %v6860_v15  ;;  %371 = vmatpush1.bf16.msra.mxu1 %v6861_v16  ;;  %v7597_v43 = vld [vmem:[%s9272_s5 + $0x4c] ss:$16 sps:$4 sm:$0xff]   ;;  %v7607_v45 = vld [vmem:[%s9272_s5 + $0x40] ss:$16 sps:$4 sm:$0xff]   ;;  %v7612_v46 = vld [vmem:[%s9272_s5 + $0x48] ss:$16 sps:$4 sm:$0xff]  }
  0x10   :  { %299 = vmatprep.subr.bf16.mxu0 %v6862_v17  ;;  %372 = vmatprep.subr.bf16.mxu1 %v6864_v18  ;;  %v6899_v44 = vld [vmem:[%s9271_s0 + $0x8] sm:$0xff]   ;;  %v7619_v47 = vld [vmem:[%s9272_s5 + $0x64] ss:$16 sps:$4 sm:$0xff]   ;;  %v7631_v49 = vld [vmem:[%s9272_s5 + $0x60] ss:$16 sps:$4 sm:$0xff]   ;;  %9289 = vst [vmem:[#allocation4_spill] sm:$0xff] %v7803_v11 }
  0x11   :  { %v7626_v48 = vld [vmem:[%s9272_s5 + $0x6c] ss:$16 sps:$4 sm:$0xff]   ;;  %v7636_v50 = vld [vmem:[%s9272_s5 + $0x68] ss:$16 sps:$4 sm:$0xff]   ;;  %v7643_v51 = vld [vmem:[%s9272_s5 + $0x84] ss:$16 sps:$4 sm:$0xff]  }
  0x12   :  { %v7650_v52 = vld [vmem:[%s9272_s5 + $0x8c] ss:$16 sps:$4 sm:$0xff]   ;;  %v6912_v53 = vld [vmem:[%s9271_s0 + $0x10] sm:$0xff]   ;;  %v7665_v55 = vld [vmem:[%s9272_s5 + $0x88] ss:$16 sps:$4 sm:$0xff]   ;;  %v9283_v12 = vsub.s32 2, %v7803_v11 }
  0x13   :  { %300 = vmatpush1.bf16.msra.mxu0 %v6866_v19  ;;  %373 = vmatpush1.bf16.msra.mxu1 %v6867_v20  ;;  %v7660_v54 = vld [vmem:[%s9272_s5 + $0x80] ss:$16 sps:$4 sm:$0xff]   ;;  %v7670_v56 = vld [vmem:[%s9272_s5 + $0xa4] ss:$16 sps:$4 sm:$0xff]   ;;  %v7675_v57 = vld [vmem:[%s9272_s5 + $0xac] ss:$16 sps:$4 sm:$0xff]  }
  0x14   :  { %301 = vmatprep.subr.bf16.mxu0 %v6868_v21  ;;  %374 = vmatprep.subr.bf16.mxu1 %v6870_v22  ;;  %v38_v58 = vld [vmem:[%s9274_s6 + $0x8] sm:$0xff]  ;;  %v7690_v59 = vld [vmem:[%s9272_s5 + $0xa0] ss:$16 sps:$4 sm:$0xff]   ;;  %v7700_v61 = vld [vmem:[%s9272_s5 + $0xc4] ss:$16 sps:$4 sm:$0xff]   ;;  %v9281_v13 = vsub.s32 3, %v7803_v11 }
  0x15   :  { %40 = vst [vmem:[%s9273_s9 + $0x8] sm:$0xff] %v38_v58  ;;  %v7695_v60 = vld [vmem:[%s9272_s5 + $0xa8] ss:$16 sps:$4 sm:$0xff]   ;;  %v7705_v62 = vld [vmem:[%s9272_s5 + $0xcc] ss:$16 sps:$4 sm:$0xff]   ;;  %v37_v7 = vld [vmem:[%s9274_s6] sm:$0xff] }
  0x16   :  { %v6925_v63 = vld [vmem:[%s9271_s0 + $0x18] sm:$0xff]   ;;  %v7719_v0 = vld [vmem:[%s9272_s5 + $0xc0] ss:$16 sps:$4 sm:$0xff]   ;;  %v7729_v3 = vld [vmem:[%s9272_s5 + $0xe4] ss:$16 sps:$4 sm:$0xff]   ;;  %v478_v8 = vpack.c.bf16 %v37_v7, %v37_v7  ;;  %v9284_v14 = vsub.s32 0, %v7803_v11 }
  0x17   :  { %302 = vmatpush1.bf16.msra.mxu0 %v6872_v23  ;;  %375 = vmatpush1.bf16.msra.mxu1 %v6873_v24  ;;  %v7724_v2 = vld [vmem:[%s9272_s5 + $0xc8] ss:$16 sps:$4 sm:$0xff]   ;;  %v7734_v4 = vld [vmem:[%s9272_s5 + $0xec] ss:$16 sps:$4 sm:$0xff]   ;;  %v7743_v5 = vld [vmem:[%s9272_s5 + $0xe0] ss:$16 sps:$4 sm:$0xff]  }
  0x18   :  { %303 = vmatprep.subr.bf16.mxu0 %v6874_v25  ;;  %376 = vmatprep.subr.bf16.mxu1 %v6876_v26  ;;  %v7748_v6 = vld [vmem:[%s9272_s5 + $0xe8] ss:$16 sps:$4 sm:$0xff]   ;;  %v85_v15 = vld [vmem:[%s9277_s2] sm:$0xf]  ;;  %v9282_v16 = vsub.s32 1, %v7803_v11 }
  0x19   :  { %v42_v9 = vld [vmem:[%s9275_s7 + $0x8] sm:$0xff]  ;;  %v7814_v17 = vrot.slane %v85_v15, %v9283_v12  ;;  %v7822_v20 = vrot.slane %v85_v15, %v9281_v13  ;;  %v90_v21 = vrot.slane %v85_v15, %v9284_v14 }
  0x1a   :  { %44 = vst [vmem:[%s9276_s10 + $0x8] sm:$0xff] %v42_v9  ;;  %v94_v24 = vrot.slane %v85_v15, %v9282_v16 }
  0x1b   :  { %304 = vmatpush1.bf16.msra.mxu0 %v6878_v27  ;;  %377 = vmatpush1.bf16.msra.mxu1 %v6879_v28 }
  0x1c   :  { %305 = vmatprep.subr.bf16.mxu0 %v6880_v29  ;;  %378 = vmatprep.subr.bf16.mxu1 %v6882_v30 }
  0x1f   :  { %306 = vmatpush1.bf16.msra.mxu0 %v6884_v31  ;;  %379 = vmatpush1.bf16.msra.mxu1 %v6885_v32 }
  0x20   :  { %671 = vmatprep.subr.bf16.mxu0 %v7543_v33  ;;  %712 = vmatprep.subr.bf16.mxu1 %v7548_v34 }
  0x22   :  { %324 = vmatmul.mubr.bf16.vlgmr.msra.gmra.mrb[0].mxu0 %v6886_v35  ;;  %397 = vmatmul.mubr.bf16.vlgmr.msra.gmra.mrb[0].mxu1 %v6886_v35 }
  0x23   :  { %672 = vmatpush1.bf16.msra.mxu0 %v7556_v36  ;;  %713 = vmatpush1.bf16.msra.mxu1 %v7561_v37 }
  0x24   :  { %673 = vmatprep.subr.bf16.mxu0 %v7568_v38  ;;  %714 = vmatprep.subr.bf16.mxu1 %v7573_v39 }
  0x25   :  { %333 = vmatprep.mubr.bf16.mxu0 %v9285_v1  ;;  %406 = vmatprep.mubr.bf16.mxu1 %v9285_v1 }
  0x27   :  { %674 = vmatpush1.bf16.msra.mxu0 %v7578_v40  ;;  %715 = vmatpush1.bf16.msra.mxu1 %v7585_v41 }
  0x28   :  { %675 = vmatprep.subr.bf16.mxu0 %v7592_v42  ;;  %716 = vmatprep.subr.bf16.mxu1 %v7597_v43 }
  0x2a   :  { %334 = vmatmul.mubr.bf16.gmra.mrb[4].mxu0 %v6899_v44  ;;  %407 = vmatmul.mubr.bf16.gmra.mrb[4].mxu1 %v6899_v44 }
  0x2b   :  { %676 = vmatpush1.bf16.msra.mxu0 %v7607_v45  ;;  %717 = vmatpush1.bf16.msra.mxu1 %v7612_v46 }
  0x2c   :  { %677 = vmatprep.subr.bf16.mxu0 %v7619_v47  ;;  %718 = vmatprep.subr.bf16.mxu1 %v7626_v48 }
  0x2d   :  { %343 = vmatprep.mubr.bf16.mxu0 %v9285_v1  ;;  %416 = vmatprep.mubr.bf16.mxu1 %v9285_v1 }
  0x2f   :  { %678 = vmatpush1.bf16.msra.mxu0 %v7631_v49  ;;  %719 = vmatpush1.bf16.msra.mxu1 %v7636_v50 }
  0x30   :  { %679 = vmatprep.subr.bf16.mxu0 %v7643_v51  ;;  %720 = vmatprep.subr.bf16.mxu1 %v7650_v52 }
  0x32   :  { %344 = vmatmul.mubr.bf16.gmra.mrb[8].mxu0 %v6912_v53  ;;  %417 = vmatmul.mubr.bf16.gmra.mrb[8].mxu1 %v6912_v53 }
  0x33   :  { %680 = vmatpush1.bf16.msra.mxu0 %v7660_v54  ;;  %721 = vmatpush1.bf16.msra.mxu1 %v7665_v55 }
  0x34   :  { %681 = vmatprep.subr.bf16.mxu0 %v7670_v56  ;;  %722 = vmatprep.subr.bf16.mxu1 %v7675_v57 }
  0x35   :  { %353 = vmatprep.mubr.bf16.mxu0 %v9285_v1  ;;  %426 = vmatprep.mubr.bf16.mxu1 %v9285_v1 }
  0x37   :  { %682 = vmatpush1.bf16.msra.mxu0 %v7690_v59  ;;  %723 = vmatpush1.bf16.msra.mxu1 %v7695_v60 }
  0x38   :  { %683 = vmatprep.subr.bf16.mxu0 %v7700_v61  ;;  %724 = vmatprep.subr.bf16.mxu1 %v7705_v62 }
  0x3a   :  { %354 = vmatmul.mubr.bf16.gmra.mrb[12].mxu0 %v6925_v63  ;;  %427 = vmatmul.mubr.bf16.gmra.mrb[12].mxu1 %v6925_v63 }
  0x3b   :  { %684 = vmatpush1.bf16.msra.mxu0 %v7719_v0  ;;  %725 = vmatpush1.bf16.msra.mxu1 %v7724_v2 }
  0x3c   :  { %685 = vmatprep.subr.bf16.mxu0 %v7729_v3  ;;  %726 = vmatprep.subr.bf16.mxu1 %v7734_v4 }
  0x3d   :  { %703 = vmatprep.mubr.bf16.mxu0 %v9285_v1  ;;  %744 = vmatprep.mubr.bf16.mxu1 %v9285_v1 }
  0x3f   :  { %686 = vmatpush1.bf16.msra.mxu0 %v7743_v5  ;;  %727 = vmatpush1.bf16.msra.mxu1 %v7748_v6 }
  0x40   :  { %982 = vmatprep.subr.bf16.mxu0 %v7543_v33  ;;  %1023 = vmatprep.subr.bf16.mxu1 %v7548_v34 }
  0x42   :  { %704 = vmatmul.mubr.bf16.vlgmr.msra.gmra.mrb[16].mxu0 %v478_v8  ;;  %745 = vmatmul.mubr.bf16.vlgmr.msra.gmra.mrb[16].mxu1 %v478_v8 }
  0x43   :  { %983 = vmatpush1.bf16.msra.mxu0 %v7556_v36  ;;  %1024 = vmatpush1.bf16.msra.mxu1 %v7561_v37 }
  0x44   :  { %984 = vmatprep.subr.bf16.mxu0 %v7568_v38  ;;  %1025 = vmatprep.subr.bf16.mxu1 %v7573_v39 }
  0x45   :  { %1014 = vmatprep.mubr.bf16.mxu0 %v9285_v1  ;;  %1055 = vmatprep.mubr.bf16.mxu1 %v9285_v1 }
  0x47   :  { %985 = vmatpush1.bf16.msra.mxu0 %v7578_v40  ;;  %1026 = vmatpush1.bf16.msra.mxu1 %v7585_v41 }
  0x48   :  { %986 = vmatprep.subr.bf16.mxu0 %v7592_v42  ;;  %1027 = vmatprep.subr.bf16.mxu1 %v7597_v43 }
  0x4b   :  { %987 = vmatpush1.bf16.msra.mxu0 %v7607_v45  ;;  %1028 = vmatpush1.bf16.msra.mxu1 %v7612_v46 }
  0x4c   :  { %988 = vmatprep.subr.bf16.mxu0 %v7619_v47  ;;  %1029 = vmatprep.subr.bf16.mxu1 %v7626_v48 }
  0x4f   :  { %989 = vmatpush1.bf16.msra.mxu0 %v7631_v49  ;;  %1030 = vmatpush1.bf16.msra.mxu1 %v7636_v50 }
  0x50   :  { %990 = vmatprep.subr.bf16.mxu0 %v7643_v51  ;;  %1031 = vmatprep.subr.bf16.mxu1 %v7650_v52 }
  0x53   :  { %991 = vmatpush1.bf16.msra.mxu0 %v7660_v54  ;;  %1032 = vmatpush1.bf16.msra.mxu1 %v7665_v55 }
  0x54   :  { %992 = vmatprep.subr.bf16.mxu0 %v7670_v56  ;;  %1033 = vmatprep.subr.bf16.mxu1 %v7675_v57 }
  0x57   :  { %993 = vmatpush1.bf16.msra.mxu0 %v7690_v59  ;;  %1034 = vmatpush1.bf16.msra.mxu1 %v7695_v60 }
  0x58   :  { %994 = vmatprep.subr.bf16.mxu0 %v7700_v61  ;;  %1035 = vmatprep.subr.bf16.mxu1 %v7705_v62 }
  0x5b   :  { %995 = vmatpush1.bf16.msra.mxu0 %v7719_v0  ;;  %1036 = vmatpush1.bf16.msra.mxu1 %v7724_v2 }
  0x5c   :  { %996 = vmatprep.subr.bf16.mxu0 %v7729_v3  ;;  %1037 = vmatprep.subr.bf16.mxu1 %v7734_v4 }
  0x5f   :  { %997 = vmatpush1.bf16.msra.mxu0 %v7743_v5  ;;  %1038 = vmatpush1.bf16.msra.mxu1 %v7748_v6 }
  0x60   :  { %1294 = vmatprep.subr.bf16.mxu0 %v7543_v33  ;;  %1335 = vmatprep.subr.bf16.mxu1 %v7548_v34 }
  0xf5   :  { %v7816_v18 = vpop.f32.mrb[0].mxu0  ;;  %v7818_v19 = vpop.f32.mrb[0].mxu1 }
  0xf6   :  { %v327_v22 = vpop.f32.mrb[1].mxu0  ;;  %v400_v23 = vpop.f32.mrb[1].mxu1 }
  0xf7   :  { %v329_v25 = vpop.f32.mrb[2].mxu0  ;;  %v402_v26 = vpop.f32.mrb[2].mxu1 }
  0xf8   :  { %v7828_v27 = vadd.f32 %v329_v25, %v90_v21  ;;  %v331_v28 = vpop.f32.mrb[3].mxu0  ;;  %v7831_v29 = vadd.f32 %v402_v26, %v7814_v17  ;;  %v404_v30 = vpop.f32.mrb[3].mxu1 }
  0xf9   :  { %v7833_v31 = vadd.f32 %v331_v28, %v94_v24  ;;  %v7836_v32 = vadd.f32 %v404_v30, %v7822_v20 }
  0xfd   :  { %v335_v35 = vpop.f32.mrb[4].mxu0  ;;  %v408_v44 = vpop.f32.mrb[4].mxu1 }
  0xfe   :  { %v7838_v53 = vadd.f32 %v335_v35, %v90_v21  ;;  %v337_v58 = vpop.f32.mrb[5].mxu0  ;;  %v7841_v63 = vadd.f32 %v408_v44, %v7814_v17  ;;  %v410_v7 = vpop.f32.mrb[5].mxu1 }
  0xff   :  { %v7843_v8 = vadd.f32 %v337_v58, %v94_v24  ;;  %v339_v9 = vpop.f32.mrb[6].mxu0  ;;  %v7846_v10 = vadd.f32 %v410_v7, %v7822_v20  ;;  %v412_v15 = vpop.f32.mrb[6].mxu1 }
 0x100   :  { %v7848_v25 = vadd.f32 %v339_v9, %v90_v21  ;;  %v341_v26 = vpop.f32.mrb[7].mxu0  ;;  %v7851_v28 = vadd.f32 %v412_v15, %v7814_v17  ;;  %v414_v30 = vpop.f32.mrb[7].mxu1 }
 0x101   :  { %9290 = vst [vmem:[#allocation5_spill] sm:$0xff] %v7846_v10  ;;  %v7853_v35 = vadd.f32 %v341_v26, %v94_v24  ;;  %v7856_v44 = vadd.f32 %v414_v30, %v7822_v20 }
 0x102   :  { %9291 = vst [vmem:[#allocation6_spill] sm:$0xff] %v7848_v25  ;;  %9292 = vst [vmem:[#allocation7_spill] sm:$0xff] %v7851_v28 }
 0x103   :  { %9293 = vst [vmem:[#allocation8_spill] sm:$0xff] %v7853_v35  ;;  %9294 = vst [vmem:[#allocation9_spill] sm:$0xff] %v7856_v44 }
 0x105   :  { %v345_v13 = vpop.f32.mrb[8].mxu0  ;;  %v418_v58 = vpop.f32.mrb[8].mxu1 }
 0x106   :  { %v7858_v16 = vadd.f32 %v345_v13, %v90_v21  ;;  %v347_v12 = vpop.f32.mrb[9].mxu0  ;;  %v7861_v7 = vadd.f32 %v418_v58, %v7814_v17  ;;  %v420_v9 = vpop.f32.mrb[9].mxu1 }
 0x107   :  { %v7863_v14 = vadd.f32 %v347_v12, %v94_v24  ;;  %v349_v1 = vpop.f32.mrb[10].mxu0  ;;  %v7866_v15 = vadd.f32 %v420_v9, %v7822_v20  ;;  %v422_v26 = vpop.f32.mrb[10].mxu1 }
 0x108   :  { %9295 = vst [vmem:[#allocation10_spill] sm:$0xff] %v7858_v16  ;;  %9296 = vst [vmem:[#allocation11_spill] sm:$0xff] %v7861_v7  ;;  %v7868_v11 = vadd.f32 %v349_v1, %v90_v21  ;;  %v351_v30 = vpop.f32.mrb[11].mxu0  ;;  %v7871_v44 = vadd.f32 %v422_v26, %v7814_v17  ;;  %v424_v13 = vpop.f32.mrb[11].mxu1 }
 0x109   :  { %9297 = vst [vmem:[#allocation12_spill] sm:$0xff] %v7863_v14  ;;  %9298 = vst [vmem:[#allocation13_spill] sm:$0xff] %v7866_v15  ;;  %v7873_v16 = vadd.f32 %v351_v30, %v94_v24  ;;  %v7876_v58 = vadd.f32 %v424_v13, %v7822_v20 }
 0x10a   :  { %9299 = vst [vmem:[#allocation14_spill] sm:$0xff] %v7868_v11  ;;  %9300 = vst [vmem:[#allocation15_spill] sm:$0xff] %v7871_v44 }
 0x10b   :  { %9301 = vst [vmem:[#allocation16_spill] sm:$0xff] %v7873_v16  ;;  %9302 = vst [vmem:[#allocation17_spill] sm:$0xff] %v7876_v58 }
 0x10d   :  { %v355_v7 = vpop.f32.mrb[12].mxu0  ;;  %v428_v12 = vpop.f32.mrb[12].mxu1 }
 0x10e   :  { %v7878_v14 = vadd.f32 %v355_v7, %v90_v21  ;;  %v357_v35 = vpop.f32.mrb[13].mxu0  ;;  %v7881_v9 = vadd.f32 %v428_v12, %v7814_v17  ;;  %v430_v1 = vpop.f32.mrb[13].mxu1 }
 0x10f   :  { %v7883_v11 = vadd.f32 %v357_v35, %v94_v24  ;;  %v359_v15 = vpop.f32.mrb[14].mxu0  ;;  %v7886_v26 = vadd.f32 %v430_v1, %v7822_v20  ;;  %v432_v30 = vpop.f32.mrb[14].mxu1  ;;  %v326_v35 = vadd.f32 %v7816_v18, %v90_v21  ;;  %v328_v1 = vadd.f32 %v327_v22, %v94_v24 }
 0x110   :  { %9303 = vst [vmem:[#allocation18_spill] sm:$0xff] %v7878_v14  ;;  %9304 = vst [vmem:[#allocation19_spill] sm:$0xff] %v7881_v9  ;;  %v7888_v16 = vadd.f32 %v359_v15, %v90_v21  ;;  %v361_v13 = vpop.f32.mrb[15].mxu0  ;;  %v7891_v58 = vadd.f32 %v432_v30, %v7814_v17  ;;  %v434_v7 = vpop.f32.mrb[15].mxu1 }
 0x111   :  { %9305 = vst [vmem:[#allocation20_spill] sm:$0xff] %v7883_v11  ;;  %9306 = vst [vmem:[#allocation21_spill] sm:$0xff] %v7886_v26  ;;  %v7893_v14 = vadd.f32 %v361_v13, %v94_v24  ;;  %v7896_v12 = vadd.f32 %v434_v7, %v7822_v20  ;;  %v399_v11 = vadd.f32 %v7818_v19, %v7814_v17 }
 0x112   :  { %9307 = vst [vmem:[#allocation22_spill] sm:$0xff] %v7888_v16  ;;  %9308 = vst [vmem:[#allocation23_spill] sm:$0xff] %v7891_v58  ;;  %v401_v26 = vadd.f32 %v400_v23, %v7822_v20 }
 0x113   :  { %9309 = vst [vmem:[#allocation24_spill] sm:$0xff] %v7893_v14  ;;  %9310 = vst [vmem:[#allocation25_spill] sm:$0xff] %v7896_v12 }
 0x115   :  { %v705_v15 = vpop.f32.mrb[16].mxu0  ;;  %v746_v16 = vpop.f32.mrb[16].mxu1 }
 0x116   :  { %v753_v9 = vadd.f32 %v705_v15, %v326_v35  ;;  %v755_v44 = vadd.f32 %v746_v16, %v399_v11  ;;  %v707_v30 = vpop.f32.mrb[17].mxu0  ;;  %v748_v58 = vpop.f32.mrb[17].mxu1  ;;  %v9311_v35 = vmov 0  }
 0x117   :  { %v754_v28 = vadd.f32 %v707_v30, %v328_v1  ;;  %v756_v13 = vadd.f32 %v748_v58, %v401_v26  ;;  %v709_v14 = vpop.f32.mrb[18].mxu0  ;;  %v750_v25 = vpop.f32.mrb[18].mxu1 }
 0x118   :  { %v5978_v7 = vmul.f32 -1.442695, %v753_v9  ;;  %v710_v12 = vpop.f32.mrb[19].mxu0  ;;  %v751_v10 = vpop.f32.mrb[19].mxu1  ;;  %v41_v14 = vld [vmem:[%s9275_s7] sm:$0xff] }
 0x119   :  { %v5979_v18 = vmul.f32 -1.442695, %v754_v28  ;;  %v5980_v17 = vmul.f32 -1.442695, %v756_v13 }
 0x11a   :  { %7130 = vpow2.f32 %v5978_v7 }
 0x11b   :  { %7132 = vpow2.f32 %v5979_v18 }
 0x11c   :  { %7134 = vpow2.f32 %v5980_v17 }
 0x11d   :  { %7136 = vtanh.f32 %v755_v44 }
 0x124   :  { %v7131_v19 = vpop.eup %7130 }
 0x125   :  { %v7133_v21 = vpop.eup %7132  ;;  %v760_v20 = vadd.f32 1.0, %v7131_v19 }
 0x126   :  { %v766_v22 = vadd.f32 1.0, %v7133_v21  ;;  %v7135_v11 = vpop.eup %7134 }
 0x127   :  { %7138 = vrcp.f32 %v760_v20  ;;  %v7137_v16 = vpop.eup %7136  ;;  %v773_v25 = vadd.f32 1.0, %v7135_v11 }
 0x128   :  { %7140 = vrcp.f32 %v766_v22 }
 0x129   :  { %7142 = vrcp.f32 %v773_v25 }
 0x131   :  { %v7139_v23 = vpop.eup %7138 }
 0x132   :  { %v7141_v24 = vpop.eup %7140  ;;  %v777_v10 = vmul.f32 %v7139_v23, %v7137_v16 }
 0x133   :  { %v776_v28 = vmul.f32 %v7141_v24, %v41_v14  ;;  %v7143_v44 = vpop.eup %7142 }
 0x135   :  { %v7905_v58 = vadd.f32 %v777_v10, %v776_v28 }
 0x137   :  { %7144 = vtanh.f32 %v7905_v58 }
 0x141   :  { %v7145_v9 = vpop.eup %7144 }
 0x142   :  { %v7908_v26 = vmul.f32 %v7145_v9, %v7143_v44 }
 0x144   :  { %v789_v12 = vpack.c.bf16 %v7908_v26, %v7908_v26 }
 0x146   :  { %1015 = vmatmul.mubr.bf16.vlgmr.msra.gmra.mrb[20].mxu0 %v789_v12  ;;  %1056 = vmatmul.mubr.bf16.vlgmr.msra.gmra.mrb[20].mxu1 %v789_v12 }
 0x147   :  { %1295 = vmatpush1.bf16.msra.mxu0 %v7556_v36  ;;  %1336 = vmatpush1.bf16.msra.mxu1 %v7561_v37 }
 0x148   :  { %1296 = vmatprep.subr.bf16.mxu0 %v7568_v38  ;;  %1337 = vmatprep.subr.bf16.mxu1 %v7573_v39 }
 0x149   :  { %1326 = vmatprep.mubr.bf16.mxu0 %v9311_v35  ;;  %1367 = vmatprep.mubr.bf16.mxu1 %v9311_v35 }
 0x14b   :  { %1297 = vmatpush1.bf16.msra.mxu0 %v7578_v40  ;;  %1338 = vmatpush1.bf16.msra.mxu1 %v7585_v41 }
 0x14c   :  { %1298 = vmatprep.subr.bf16.mxu0 %v7592_v42  ;;  %1339 = vmatprep.subr.bf16.mxu1 %v7597_v43 }
 0x14f   :  { %1299 = vmatpush1.bf16.msra.mxu0 %v7607_v45  ;;  %1340 = vmatpush1.bf16.msra.mxu1 %v7612_v46 }
 0x150   :  { %1300 = vmatprep.subr.bf16.mxu0 %v7619_v47  ;;  %1341 = vmatprep.subr.bf16.mxu1 %v7626_v48 }
 0x153   :  { %1301 = vmatpush1.bf16.msra.mxu0 %v7631_v49  ;;  %1342 = vmatpush1.bf16.msra.mxu1 %v7636_v50 }
 0x154   :  { %1302 = vmatprep.subr.bf16.mxu0 %v7643_v51  ;;  %1343 = vmatprep.subr.bf16.mxu1 %v7650_v52 }
 0x157   :  { %1303 = vmatpush1.bf16.msra.mxu0 %v7660_v54  ;;  %1344 = vmatpush1.bf16.msra.mxu1 %v7665_v55 }
 0x158   :  { %1304 = vmatprep.subr.bf16.mxu0 %v7670_v56  ;;  %1345 = vmatprep.subr.bf16.mxu1 %v7675_v57 }
 0x15b   :  { %1305 = vmatpush1.bf16.msra.mxu0 %v7690_v59  ;;  %1346 = vmatpush1.bf16.msra.mxu1 %v7695_v60 }
 0x15c   :  { %1306 = vmatprep.subr.bf16.mxu0 %v7700_v61  ;;  %1347 = vmatprep.subr.bf16.mxu1 %v7705_v62 }
 0x15f   :  { %1307 = vmatpush1.bf16.msra.mxu0 %v7719_v0  ;;  %1348 = vmatpush1.bf16.msra.mxu1 %v7724_v2 }
 0x160   :  { %1308 = vmatprep.subr.bf16.mxu0 %v7729_v3  ;;  %1349 = vmatprep.subr.bf16.mxu1 %v7734_v4 }
 0x163   :  { %1309 = vmatpush1.bf16.msra.mxu0 %v7743_v5  ;;  %1350 = vmatpush1.bf16.msra.mxu1 %v7748_v6 }
 0x164   :  { %1606 = vmatprep.subr.bf16.mxu0 %v7543_v33  ;;  %1647 = vmatprep.subr.bf16.mxu1 %v7548_v34 }
 0x219   :  { %v1016_v1 = vpop.f32.mrb[20].mxu0  ;;  %v1057_v15 = vpop.f32.mrb[20].mxu1 }
 0x21a   :  { %v1064_v30 = vadd.f32 %v1016_v1, %v7828_v27  ;;  %v1066_v13 = vadd.f32 %v1057_v15, %v7831_v29  ;;  %v1018_v7 = vpop.f32.mrb[21].mxu0  ;;  %v1059_v18 = vpop.f32.mrb[21].mxu1 }
 0x21b   :  { %v1065_v17 = vadd.f32 %v1018_v7, %v7833_v31  ;;  %v1067_v19 = vadd.f32 %v1059_v18, %v7836_v32  ;;  %v1020_v21 = vpop.f32.mrb[22].mxu0  ;;  %v1061_v20 = vpop.f32.mrb[22].mxu1  ;;  %v8022_v7 = vld [vmem:[%s9272_s5 + $0x8] ss:$16 sps:$4 sm:$0xff]   ;;  %v8031_v18 = vld [vmem:[%s9272_s5 + $0x24] ss:$16 sps:$4 sm:$0xff]  }
 0x21c   :  { %v6013_v22 = vmul.f32 -1.442695, %v1064_v30  ;;  %v1021_v11 = vpop.f32.mrb[23].mxu0  ;;  %v1062_v16 = vpop.f32.mrb[23].mxu1  ;;  %v8046_v21 = vld [vmem:[%s9272_s5 + $0x28] ss:$16 sps:$4 sm:$0xff]  }
 0x21d   :  { %v6014_v33 = vmul.f32 -1.442695, %v1065_v17  ;;  %v6015_v34 = vmul.f32 -1.442695, %v1067_v19  ;;  %v8036_v17 = vld [vmem:[%s9272_s5 + $0x2c] ss:$16 sps:$4 sm:$0xff]  }
 0x21e   :  { %7146 = vpow2.f32 %v6013_v22  ;;  %v8041_v19 = vld [vmem:[%s9272_s5 + $0x20] ss:$16 sps:$4 sm:$0xff]   ;;  %v8055_v20 = vld [vmem:[%s9272_s5 + $0x44] ss:$16 sps:$4 sm:$0xff]   ;;  %v8060_v22 = vld [vmem:[%s9272_s5 + $0x4c] ss:$16 sps:$4 sm:$0xff]  }
 0x21f   :  { %7148 = vpow2.f32 %v6014_v33  ;;  %v8065_v11 = vld [vmem:[%s9272_s5 + $0x40] ss:$16 sps:$4 sm:$0xff]   ;;  %v8070_v16 = vld [vmem:[%s9272_s5 + $0x48] ss:$16 sps:$4 sm:$0xff]   ;;  %v8079_v33 = vld [vmem:[%s9272_s5 + $0x64] ss:$16 sps:$4 sm:$0xff]  }
 0x220   :  { %7150 = vpow2.f32 %v6015_v34  ;;  %v8084_v34 = vld [vmem:[%s9272_s5 + $0x6c] ss:$16 sps:$4 sm:$0xff]  }
 0x221   :  { %7152 = vtanh.f32 %v1066_v13  ;;  %v8017_v13 = vld [vmem:[%s9272_s5] ss:$16 sps:$4 sm:$0xff]  }
 0x228   :  { %v7147_v14 = vpop.eup %7146 }
 0x229   :  { %v7149_v23 = vpop.eup %7148  ;;  %v1071_v27 = vadd.f32 1.0, %v7147_v14  ;;  %v8089_v14 = vld [vmem:[%s9272_s5 + $0x60] ss:$16 sps:$4 sm:$0xff]  }
 0x22a   :  { %v1077_v29 = vadd.f32 1.0, %v7149_v23  ;;  %v7151_v31 = vpop.eup %7150  ;;  %v8094_v23 = vld [vmem:[%s9272_s5 + $0x68] ss:$16 sps:$4 sm:$0xff]  }
 0x22b   :  { %7154 = vrcp.f32 %v1071_v27  ;;  %v7153_v24 = vpop.eup %7152  ;;  %v1084_v28 = vadd.f32 1.0, %v7151_v31  ;;  %v8103_v27 = vld [vmem:[%s9272_s5 + $0x84] ss:$16 sps:$4 sm:$0xff]   ;;  %v8113_v31 = vld [vmem:[%s9272_s5 + $0x80] ss:$16 sps:$4 sm:$0xff]  }
 0x22c   :  { %7156 = vrcp.f32 %v1077_v29  ;;  %v8108_v29 = vld [vmem:[%s9272_s5 + $0x8c] ss:$16 sps:$4 sm:$0xff]  }
 0x22d   :  { %7158 = vrcp.f32 %v1084_v28  ;;  %v8142_v28 = vld [vmem:[%s9272_s5 + $0xac] ss:$16 sps:$4 sm:$0xff]  }
 0x235   :  { %v7155_v32 = vpop.eup %7154 }
 0x236   :  { %v7157_v10 = vpop.eup %7156  ;;  %v1088_v25 = vmul.f32 %v7155_v32, %v7153_v24  ;;  %v8118_v24 = vld [vmem:[%s9272_s5 + $0x88] ss:$16 sps:$4 sm:$0xff]   ;;  %v8125_v32 = vld [vmem:[%s9272_s5 + $0xa4] ss:$16 sps:$4 sm:$0xff]  }
 0x237   :  { %v1087_v44 = vmul.f32 %v7157_v10, %v7905_v58  ;;  %v7159_v12 = vpop.eup %7158  ;;  %v8012_v58 = vld [vmem:[%s9272_s5 + $0xc] ss:$16 sps:$4 sm:$0xff]   ;;  %v8132_v10 = vld [vmem:[%s9272_s5 + $0xa0] ss:$16 sps:$4 sm:$0xff]  }
 0x239   :  { %v7951_v9 = vadd.f32 %v1088_v25, %v1087_v44  ;;  %v8137_v25 = vld [vmem:[%s9272_s5 + $0xa8] ss:$16 sps:$4 sm:$0xff]   ;;  %v8148_v44 = vld [vmem:[%s9272_s5 + $0xc4] ss:$16 sps:$4 sm:$0xff]  }
 0x23b   :  { %7160 = vtanh.f32 %v7951_v9 }
 0x245   :  { %v7161_v1 = vpop.eup %7160 }
 0x246   :  { %v7954_v15 = vmul.f32 %v7161_v1, %v7159_v12  ;;  %v8161_v12 = vld [vmem:[%s9272_s5 + $0xc0] ss:$16 sps:$4 sm:$0xff]   ;;  %v8166_v1 = vld [vmem:[%s9272_s5 + $0xc8] ss:$16 sps:$4 sm:$0xff]  }
 0x248   :  { %v1101_v30 = vpack.c.bf16 %v7954_v15, %v7954_v15 }
 0x24a   :  { %1327 = vmatmul.mubr.bf16.vlgmr.msra.gmra.mrb[24].mxu0 %v1101_v30  ;;  %1368 = vmatmul.mubr.bf16.vlgmr.msra.gmra.mrb[24].mxu1 %v1101_v30  ;;  %v8173_v30 = vld [vmem:[%s9272_s5 + $0xe4] ss:$16 sps:$4 sm:$0xff]  }
 0x24b   :  { %1607 = vmatpush1.bf16.msra.mxu0 %v7556_v36  ;;  %1648 = vmatpush1.bf16.msra.mxu1 %v7561_v37 }
 0x24c   :  { %1608 = vmatprep.subr.bf16.mxu0 %v7568_v38  ;;  %1649 = vmatprep.subr.bf16.mxu1 %v7573_v39 }
 0x24d   :  { %1638 = vmatprep.mubr.bf16.mxu0 %v9311_v35  ;;  %1679 = vmatprep.mubr.bf16.mxu1 %v9311_v35 }
 0x24f   :  { %1609 = vmatpush1.bf16.msra.mxu0 %v7578_v40  ;;  %1650 = vmatpush1.bf16.msra.mxu1 %v7585_v41 }
 0x250   :  { %1610 = vmatprep.subr.bf16.mxu0 %v7592_v42  ;;  %1651 = vmatprep.subr.bf16.mxu1 %v7597_v43  ;;  %v9312_v43 = vld [vmem:[#allocation5_spill] sm:$0xff] }
 0x253   :  { %1611 = vmatpush1.bf16.msra.mxu0 %v7607_v45  ;;  %1652 = vmatpush1.bf16.msra.mxu1 %v7612_v46 }
 0x254   :  { %1612 = vmatprep.subr.bf16.mxu0 %v7619_v47  ;;  %1653 = vmatprep.subr.bf16.mxu1 %v7626_v48 }
 0x257   :  { %1613 = vmatpush1.bf16.msra.mxu0 %v7631_v49  ;;  %1654 = vmatpush1.bf16.msra.mxu1 %v7636_v50 }
 0x258   :  { %1614 = vmatprep.subr.bf16.mxu0 %v7643_v51  ;;  %1655 = vmatprep.subr.bf16.mxu1 %v7650_v52 }
 0x25b   :  { %1615 = vmatpush1.bf16.msra.mxu0 %v7660_v54  ;;  %1656 = vmatpush1.bf16.msra.mxu1 %v7665_v55 }
 0x25c   :  { %1616 = vmatprep.subr.bf16.mxu0 %v7670_v56  ;;  %1657 = vmatprep.subr.bf16.mxu1 %v7675_v57 }
 0x25f   :  { %1617 = vmatpush1.bf16.msra.mxu0 %v7690_v59  ;;  %1658 = vmatpush1.bf16.msra.mxu1 %v7695_v60 }
 0x260   :  { %1618 = vmatprep.subr.bf16.mxu0 %v7700_v61  ;;  %1659 = vmatprep.subr.bf16.mxu1 %v7705_v62 }
 0x263   :  { %1619 = vmatpush1.bf16.msra.mxu0 %v7719_v0  ;;  %1660 = vmatpush1.bf16.msra.mxu1 %v7724_v2 }
 0x264   :  { %1620 = vmatprep.subr.bf16.mxu0 %v7729_v3  ;;  %1661 = vmatprep.subr.bf16.mxu1 %v7734_v4 }
 0x267   :  { %1621 = vmatpush1.bf16.msra.mxu0 %v7743_v5  ;;  %1662 = vmatpush1.bf16.msra.mxu1 %v7748_v6 }
 0x268   :  { %1959 = vmatprep.subr.bf16.mxu1 %v8012_v58 }
 0x31d   :  { %v1328_v36 = vpop.f32.mrb[24].mxu0  ;;  %v1369_v37 = vpop.f32.mrb[24].mxu1 }
 0x31e   :  { %v1376_v38 = vadd.f32 %v1328_v36, %v7838_v53  ;;  %v1378_v39 = vadd.f32 %v1369_v37, %v7841_v63  ;;  %v1330_v40 = vpop.f32.mrb[25].mxu0  ;;  %v1371_v41 = vpop.f32.mrb[25].mxu1  ;;  %v8178_v36 = vld [vmem:[%s9272_s5 + $0xec] ss:$16 sps:$4 sm:$0xff]   ;;  %v8185_v37 = vld [vmem:[%s9272_s5 + $0xe0] ss:$16 sps:$4 sm:$0xff]  }
 0x31f   :  { %v1377_v42 = vadd.f32 %v1330_v40, %v7843_v8  ;;  %v1379_v45 = vadd.f32 %v1371_v41, %v9312_v43  ;;  %v1332_v46 = vpop.f32.mrb[26].mxu0  ;;  %v1373_v47 = vpop.f32.mrb[26].mxu1  ;;  %v8007_v8 = vld [vmem:[%s9272_s5 + $0x4] ss:$16 sps:$4 sm:$0xff]   ;;  %v9314_v43 = vld [vmem:[#allocation7_spill] sm:$0xff] }
 0x320   :  { %v6048_v48 = vmul.f32 -1.442695, %v1376_v38  ;;  %v1333_v49 = vpop.f32.mrb[27].mxu0  ;;  %v1374_v50 = vpop.f32.mrb[27].mxu1  ;;  %1918 = vmatprep.subr.bf16.mxu0 %v8007_v8  ;;  %v8190_v38 = vld [vmem:[%s9272_s5 + $0xe8] ss:$16 sps:$4 sm:$0xff]  }
 0x321   :  { %v6049_v51 = vmul.f32 -1.442695, %v1377_v42  ;;  %v6050_v52 = vmul.f32 -1.442695, %v1379_v45  ;;  %v9313_v41 = vld [vmem:[#allocation6_spill] sm:$0xff]  ;;  %v9316_v50 = vld [vmem:[#allocation9_spill] sm:$0xff] }
 0x322   :  { %7162 = vpow2.f32 %v6048_v48  ;;  %v9315_v48 = vld [vmem:[#allocation8_spill] sm:$0xff] }
 0x323   :  { %7164 = vpow2.f32 %v6049_v51 }
 0x324   :  { %7166 = vpow2.f32 %v6050_v52 }
 0x325   :  { %7168 = vtanh.f32 %v1378_v39 }
 0x32c   :  { %v7163_v54 = vpop.eup %7162 }
 0x32d   :  { %v7165_v55 = vpop.eup %7164  ;;  %v1383_v56 = vadd.f32 1.0, %v7163_v54 }
 0x32e   :  { %v1389_v57 = vadd.f32 1.0, %v7165_v55  ;;  %v7167_v59 = vpop.eup %7166 }
 0x32f   :  { %7170 = vrcp.f32 %v1383_v56  ;;  %v7169_v60 = vpop.eup %7168  ;;  %v1396_v2 = vadd.f32 1.0, %v7167_v59 }
 0x330   :  { %7172 = vrcp.f32 %v1389_v57 }
 0x331   :  { %7174 = vrcp.f32 %v1396_v2 }
 0x339   :  { %v7171_v61 = vpop.eup %7170 }
 0x33a   :  { %v7173_v62 = vpop.eup %7172  ;;  %v1400_v0 = vmul.f32 %v7171_v61, %v7169_v60 }
 0x33b   :  { %v1399_v3 = vmul.f32 %v7173_v62, %v7951_v9  ;;  %v7175_v5 = vpop.eup %7174  ;;  %v8153_v9 = vld [vmem:[%s9272_s5 + $0xcc] ss:$16 sps:$4 sm:$0xff]  }
 0x33d   :  { %v7995_v4 = vadd.f32 %v1400_v0, %v1399_v3 }
 0x33f   :  { %7176 = vtanh.f32 %v7995_v4 }
 0x349   :  { %v7177_v6 = vpop.eup %7176 }
 0x34a   :  { %v7998_v53 = vmul.f32 %v7177_v6, %v7175_v5 }
 0x34c   :  { %v1413_v63 = vpack.c.bf16 %v7998_v53, %v7998_v53 }
 0x34e   :  { %1639 = vmatmul.mubr.bf16.vlgmr.msra.gmra.mrb[28].mxu0 %v1413_v63  ;;  %1680 = vmatmul.mubr.bf16.vlgmr.msra.gmra.mrb[28].mxu1 %v1413_v63 }
 0x34f   :  { %1950 = vmatprep.mubr.bf16.mxu0 %v9311_v35  ;;  %1991 = vmatprep.mubr.bf16.mxu1 %v9311_v35 }
 0x350   :  { %1919 = vmatpush1.bf16.msra.mxu0 %v8017_v13  ;;  %1960 = vmatpush1.bf16.msra.mxu1 %v8022_v7 }
 0x351   :  { %1920 = vmatprep.subr.bf16.mxu0 %v8031_v18  ;;  %1961 = vmatprep.subr.bf16.mxu1 %v8036_v17 }
 0x354   :  { %1921 = vmatpush1.bf16.msra.mxu0 %v8041_v19  ;;  %1962 = vmatpush1.bf16.msra.mxu1 %v8046_v21 }
 0x355   :  { %1922 = vmatprep.subr.bf16.mxu0 %v8055_v20  ;;  %1963 = vmatprep.subr.bf16.mxu1 %v8060_v22 }
 0x358   :  { %1923 = vmatpush1.bf16.msra.mxu0 %v8065_v11  ;;  %1964 = vmatpush1.bf16.msra.mxu1 %v8070_v16 }
 0x359   :  { %1924 = vmatprep.subr.bf16.mxu0 %v8079_v33  ;;  %1965 = vmatprep.subr.bf16.mxu1 %v8084_v34 }
 0x35c   :  { %1925 = vmatpush1.bf16.msra.mxu0 %v8089_v14  ;;  %1966 = vmatpush1.bf16.msra.mxu1 %v8094_v23 }
 0x35d   :  { %1926 = vmatprep.subr.bf16.mxu0 %v8103_v27  ;;  %1967 = vmatprep.subr.bf16.mxu1 %v8108_v29 }
 0x360   :  { %1927 = vmatpush1.bf16.msra.mxu0 %v8113_v31  ;;  %1968 = vmatpush1.bf16.msra.mxu1 %v8118_v24 }
 0x361   :  { %1928 = vmatprep.subr.bf16.mxu0 %v8125_v32  ;;  %1969 = vmatprep.subr.bf16.mxu1 %v8142_v28 }
 0x364   :  { %1929 = vmatpush1.bf16.msra.mxu0 %v8132_v10  ;;  %1970 = vmatpush1.bf16.msra.mxu1 %v8137_v25 }
 0x365   :  { %1930 = vmatprep.subr.bf16.mxu0 %v8148_v44  ;;  %1971 = vmatprep.subr.bf16.mxu1 %v8153_v9 }
 0x368   :  { %1931 = vmatpush1.bf16.msra.mxu0 %v8161_v12  ;;  %1972 = vmatpush1.bf16.msra.mxu1 %v8166_v1 }
 0x369   :  { %1932 = vmatprep.subr.bf16.mxu0 %v8173_v30  ;;  %1973 = vmatprep.subr.bf16.mxu1 %v8178_v36 }
 0x36c   :  { %1933 = vmatpush1.bf16.msra.mxu0 %v8185_v37  ;;  %1974 = vmatpush1.bf16.msra.mxu1 %v8190_v38 }
 0x36d   :  { %2230 = vmatprep.subr.bf16.mxu0 %v8007_v8  ;;  %2271 = vmatprep.subr.bf16.mxu1 %v8012_v58 }
 0x421   :  { %v1640_v39 = vpop.f32.mrb[28].mxu0  ;;  %v1681_v40 = vpop.f32.mrb[28].mxu1 }
 0x422   :  { %v1688_v42 = vadd.f32 %v1640_v39, %v9313_v41  ;;  %v1690_v45 = vadd.f32 %v1681_v40, %v9314_v43  ;;  %v1642_v46 = vpop.f32.mrb[29].mxu0  ;;  %v1683_v47 = vpop.f32.mrb[29].mxu1 }
 0x423   :  { %v1689_v49 = vadd.f32 %v1642_v46, %v9315_v48  ;;  %v1691_v51 = vadd.f32 %v1683_v47, %v9316_v50  ;;  %v1644_v52 = vpop.f32.mrb[30].mxu0  ;;  %v1685_v54 = vpop.f32.mrb[30].mxu1 }
 0x424   :  { %v6083_v55 = vmul.f32 -1.442695, %v1688_v42  ;;  %v1645_v56 = vpop.f32.mrb[31].mxu0  ;;  %v1686_v57 = vpop.f32.mrb[31].mxu1 }
 0x425   :  { %v6084_v59 = vmul.f32 -1.442695, %v1689_v49  ;;  %v6085_v60 = vmul.f32 -1.442695, %v1691_v51  ;;  %v9317_v49 = vld [vmem:[#allocation10_spill] sm:$0xff]  ;;  %v9318_v51 = vld [vmem:[#allocation11_spill] sm:$0xff] }
 0x426   :  { %7178 = vpow2.f32 %v6083_v55  ;;  %v9319_v56 = vld [vmem:[#allocation12_spill] sm:$0xff] }
 0x427   :  { %7180 = vpow2.f32 %v6084_v59  ;;  %v9320_v59 = vld [vmem:[#allocation13_spill] sm:$0xff] }
 0x428   :  { %7182 = vpow2.f32 %v6085_v60 }
 0x429   :  { %7184 = vtanh.f32 %v1690_v45 }
 0x430   :  { %v7179_v61 = vpop.eup %7178 }
 0x431   :  { %v7181_v62 = vpop.eup %7180  ;;  %v1695_v0 = vadd.f32 1.0, %v7179_v61 }
 0x432   :  { %v1701_v2 = vadd.f32 1.0, %v7181_v62  ;;  %v7183_v3 = vpop.eup %7182 }
 0x433   :  { %7186 = vrcp.f32 %v1695_v0  ;;  %v7185_v5 = vpop.eup %7184  ;;  %v1708_v40 = vadd.f32 1.0, %v7183_v3 }
 0x434   :  { %7188 = vrcp.f32 %v1701_v2 }
 0x435   :  { %7190 = vrcp.f32 %v1708_v40 }
 0x43d   :  { %v7187_v6 = vpop.eup %7186 }
 0x43e   :  { %v7189_v63 = vpop.eup %7188  ;;  %v1712_v39 = vmul.f32 %v7187_v6, %v7185_v5 }
 0x43f   :  { %v1711_v41 = vmul.f32 %v7189_v63, %v7995_v4  ;;  %v7191_v43 = vpop.eup %7190 }
 0x441   :  { %v8203_v42 = vadd.f32 %v1712_v39, %v1711_v41 }
 0x443   :  { %7192 = vtanh.f32 %v8203_v42 }
 0x44d   :  { %v7193_v46 = vpop.eup %7192 }
 0x44e   :  { %v8206_v47 = vmul.f32 %v7193_v46, %v7191_v43 }
 0x450   :  { %v1725_v45 = vpack.c.bf16 %v8206_v47, %v8206_v47 }
 0x452   :  { %1951 = vmatmul.mubr.bf16.vlgmr.msra.gmra.mrb[32].mxu0 %v1725_v45  ;;  %1992 = vmatmul.mubr.bf16.vlgmr.msra.gmra.mrb[32].mxu1 %v1725_v45 }
 0x453   :  { %2231 = vmatpush1.bf16.msra.mxu0 %v8017_v13  ;;  %2272 = vmatpush1.bf16.msra.mxu1 %v8022_v7 }
 0x454   :  { %2232 = vmatprep.subr.bf16.mxu0 %v8031_v18  ;;  %2273 = vmatprep.subr.bf16.mxu1 %v8036_v17 }
 0x455   :  { %2262 = vmatprep.mubr.bf16.mxu0 %v9311_v35  ;;  %2303 = vmatprep.mubr.bf16.mxu1 %v9311_v35 }
 0x457   :  { %2233 = vmatpush1.bf16.msra.mxu0 %v8041_v19  ;;  %2274 = vmatpush1.bf16.msra.mxu1 %v8046_v21 }
 0x458   :  { %2234 = vmatprep.subr.bf16.mxu0 %v8055_v20  ;;  %2275 = vmatprep.subr.bf16.mxu1 %v8060_v22 }
 0x45b   :  { %2235 = vmatpush1.bf16.msra.mxu0 %v8065_v11  ;;  %2276 = vmatpush1.bf16.msra.mxu1 %v8070_v16 }
 0x45c   :  { %2236 = vmatprep.subr.bf16.mxu0 %v8079_v33  ;;  %2277 = vmatprep.subr.bf16.mxu1 %v8084_v34 }
 0x45f   :  { %2237 = vmatpush1.bf16.msra.mxu0 %v8089_v14  ;;  %2278 = vmatpush1.bf16.msra.mxu1 %v8094_v23 }
 0x460   :  { %2238 = vmatprep.subr.bf16.mxu0 %v8103_v27  ;;  %2279 = vmatprep.subr.bf16.mxu1 %v8108_v29 }
 0x463   :  { %2239 = vmatpush1.bf16.msra.mxu0 %v8113_v31  ;;  %2280 = vmatpush1.bf16.msra.mxu1 %v8118_v24 }
 0x464   :  { %2240 = vmatprep.subr.bf16.mxu0 %v8125_v32  ;;  %2281 = vmatprep.subr.bf16.mxu1 %v8142_v28 }
 0x467   :  { %2241 = vmatpush1.bf16.msra.mxu0 %v8132_v10  ;;  %2282 = vmatpush1.bf16.msra.mxu1 %v8137_v25 }
 0x468   :  { %2242 = vmatprep.subr.bf16.mxu0 %v8148_v44  ;;  %2283 = vmatprep.subr.bf16.mxu1 %v8153_v9 }
 0x46b   :  { %2243 = vmatpush1.bf16.msra.mxu0 %v8161_v12  ;;  %2284 = vmatpush1.bf16.msra.mxu1 %v8166_v1 }
 0x46c   :  { %2244 = vmatprep.subr.bf16.mxu0 %v8173_v30  ;;  %2285 = vmatprep.subr.bf16.mxu1 %v8178_v36 }
 0x46f   :  { %2245 = vmatpush1.bf16.msra.mxu0 %v8185_v37  ;;  %2286 = vmatpush1.bf16.msra.mxu1 %v8190_v38 }
 0x470   :  { %2542 = vmatprep.subr.bf16.mxu0 %v8007_v8  ;;  %2583 = vmatprep.subr.bf16.mxu1 %v8012_v58 }
 0x525   :  { %v1952_v4 = vpop.f32.mrb[32].mxu0  ;;  %v1993_v48 = vpop.f32.mrb[32].mxu1 }
 0x526   :  { %v2000_v50 = vadd.f32 %v1952_v4, %v9317_v49  ;;  %v2002_v52 = vadd.f32 %v1993_v48, %v9318_v51  ;;  %v1954_v54 = vpop.f32.mrb[33].mxu0  ;;  %v1995_v55 = vpop.f32.mrb[33].mxu1 }
 0x527   :  { %v2001_v57 = vadd.f32 %v1954_v54, %v9319_v56  ;;  %v2003_v60 = vadd.f32 %v1995_v55, %v9320_v59  ;;  %v1956_v61 = vpop.f32.mrb[34].mxu0  ;;  %v1997_v62 = vpop.f32.mrb[34].mxu1  ;;  %v9321_v59 = vld [vmem:[#allocation14_spill] sm:$0xff] }
 0x528   :  { %v6118_v0 = vmul.f32 -1.442695, %v2000_v50  ;;  %v1957_v2 = vpop.f32.mrb[35].mxu0  ;;  %v1998_v3 = vpop.f32.mrb[35].mxu1  ;;  %v9322_v61 = vld [vmem:[#allocation15_spill] sm:$0xff] }
 0x529   :  { %v6119_v5 = vmul.f32 -1.442695, %v2001_v57  ;;  %v6120_v6 = vmul.f32 -1.442695, %v2003_v60  ;;  %v9323_v3 = vld [vmem:[#allocation16_spill] sm:$0xff] }
 0x52a   :  { %7194 = vpow2.f32 %v6118_v0 }
 0x52b   :  { %7196 = vpow2.f32 %v6119_v5 }
 0x52c   :  { %7198 = vpow2.f32 %v6120_v6  ;;  %v9324_v6 = vld [vmem:[#allocation17_spill] sm:$0xff] }
 0x52d   :  { %7200 = vtanh.f32 %v2002_v52 }
 0x534   :  { %v7195_v63 = vpop.eup %7194 }
 0x535   :  { %v7197_v39 = vpop.eup %7196  ;;  %v2007_v40 = vadd.f32 1.0, %v7195_v63 }
 0x536   :  { %v2013_v41 = vadd.f32 1.0, %v7197_v39  ;;  %v7199_v43 = vpop.eup %7198 }
 0x537   :  { %7202 = vrcp.f32 %v2007_v40  ;;  %v7201_v46 = vpop.eup %7200  ;;  %v2020_v49 = vadd.f32 1.0, %v7199_v43 }
 0x538   :  { %7204 = vrcp.f32 %v2013_v41 }
 0x539   :  { %7206 = vrcp.f32 %v2020_v49 }
 0x541   :  { %v7203_v45 = vpop.eup %7202 }
 0x542   :  { %v7205_v4 = vpop.eup %7204  ;;  %v2024_v48 = vmul.f32 %v7203_v45, %v7201_v46 }
 0x543   :  { %v2023_v50 = vmul.f32 %v7205_v4, %v8203_v42  ;;  %v7207_v54 = vpop.eup %7206 }
 0x545   :  { %v8249_v51 = vadd.f32 %v2024_v48, %v2023_v50 }
 0x547   :  { %7208 = vtanh.f32 %v8249_v51 }
 0x551   :  { %v7209_v55 = vpop.eup %7208 }
 0x552   :  { %v8252_v56 = vmul.f32 %v7209_v55, %v7207_v54 }
 0x554   :  { %v2037_v52 = vpack.c.bf16 %v8252_v56, %v8252_v56 }
 0x556   :  { %2263 = vmatmul.mubr.bf16.vlgmr.msra.gmra.mrb[36].mxu0 %v2037_v52  ;;  %2304 = vmatmul.mubr.bf16.vlgmr.msra.gmra.mrb[36].mxu1 %v2037_v52 }
 0x557   :  { %2543 = vmatpush1.bf16.msra.mxu0 %v8017_v13  ;;  %2584 = vmatpush1.bf16.msra.mxu1 %v8022_v7 }
 0x558   :  { %2544 = vmatprep.subr.bf16.mxu0 %v8031_v18  ;;  %2585 = vmatprep.subr.bf16.mxu1 %v8036_v17 }
 0x559   :  { %2574 = vmatprep.mubr.bf16.mxu0 %v9311_v35  ;;  %2615 = vmatprep.mubr.bf16.mxu1 %v9311_v35 }
 0x55b   :  { %2545 = vmatpush1.bf16.msra.mxu0 %v8041_v19  ;;  %2586 = vmatpush1.bf16.msra.mxu1 %v8046_v21 }
 0x55c   :  { %2546 = vmatprep.subr.bf16.mxu0 %v8055_v20  ;;  %2587 = vmatprep.subr.bf16.mxu1 %v8060_v22 }
 0x55f   :  { %2547 = vmatpush1.bf16.msra.mxu0 %v8065_v11  ;;  %2588 = vmatpush1.bf16.msra.mxu1 %v8070_v16 }
 0x560   :  { %2548 = vmatprep.subr.bf16.mxu0 %v8079_v33  ;;  %2589 = vmatprep.subr.bf16.mxu1 %v8084_v34 }
 0x563   :  { %2549 = vmatpush1.bf16.msra.mxu0 %v8089_v14  ;;  %2590 = vmatpush1.bf16.msra.mxu1 %v8094_v23 }
 0x564   :  { %2550 = vmatprep.subr.bf16.mxu0 %v8103_v27  ;;  %2591 = vmatprep.subr.bf16.mxu1 %v8108_v29 }
 0x567   :  { %2551 = vmatpush1.bf16.msra.mxu0 %v8113_v31  ;;  %2592 = vmatpush1.bf16.msra.mxu1 %v8118_v24 }
 0x568   :  { %2552 = vmatprep.subr.bf16.mxu0 %v8125_v32  ;;  %2593 = vmatprep.subr.bf16.mxu1 %v8142_v28 }
 0x56b   :  { %2553 = vmatpush1.bf16.msra.mxu0 %v8132_v10  ;;  %2594 = vmatpush1.bf16.msra.mxu1 %v8137_v25 }
 0x56c   :  { %2554 = vmatprep.subr.bf16.mxu0 %v8148_v44  ;;  %2595 = vmatprep.subr.bf16.mxu1 %v8153_v9 }
 0x56f   :  { %2555 = vmatpush1.bf16.msra.mxu0 %v8161_v12  ;;  %2596 = vmatpush1.bf16.msra.mxu1 %v8166_v1 }
 0x570   :  { %2556 = vmatprep.subr.bf16.mxu0 %v8173_v30  ;;  %2597 = vmatprep.subr.bf16.mxu1 %v8178_v36 }
 0x573   :  { %2557 = vmatpush1.bf16.msra.mxu0 %v8185_v37  ;;  %2598 = vmatpush1.bf16.msra.mxu1 %v8190_v38 }
 0x574   :  { %2854 = vmatprep.subr.bf16.mxu0 %v8007_v8  ;;  %2895 = vmatprep.subr.bf16.mxu1 %v8012_v58 }
 0x629   :  { %v2264_v42 = vpop.f32.mrb[36].mxu0  ;;  %v2305_v57 = vpop.f32.mrb[36].mxu1 }
 0x62a   :  { %v2312_v60 = vadd.f32 %v2264_v42, %v9321_v59  ;;  %v2314_v62 = vadd.f32 %v2305_v57, %v9322_v61  ;;  %v2266_v0 = vpop.f32.mrb[37].mxu0  ;;  %v2307_v2 = vpop.f32.mrb[37].mxu1 }
 0x62b   :  { %v2313_v5 = vadd.f32 %v2266_v0, %v9323_v3  ;;  %v2315_v63 = vadd.f32 %v2307_v2, %v9324_v6  ;;  %v2268_v39 = vpop.f32.mrb[38].mxu0  ;;  %v2309_v40 = vpop.f32.mrb[38].mxu1 }
 0x62c   :  { %v6153_v41 = vmul.f32 -1.442695, %v2312_v60  ;;  %v2269_v43 = vpop.f32.mrb[39].mxu0  ;;  %v2310_v46 = vpop.f32.mrb[39].mxu1  ;;  %v6986_v40 = vld [vmem:[%s9278_s3] ss:$16 sps:$4 sm:$0xff]  }
 0x62d   :  { %v6154_v8 = vmul.f32 -1.442695, %v2313_v5  ;;  %v6155_v58 = vmul.f32 -1.442695, %v2315_v63  ;;  %v6994_v46 = vld [vmem:[%s9278_s3 + $0x24] ss:$16 sps:$4 sm:$0xff]  }
 0x62e   :  { %7210 = vpow2.f32 %v6153_v41  ;;  %v6989_v41 = vld [vmem:[%s9278_s3 + $0x8] ss:$16 sps:$4 sm:$0xff]  }
 0x62f   :  { %7212 = vpow2.f32 %v6154_v8  ;;  %v6997_v8 = vld [vmem:[%s9278_s3 + $0x2c] ss:$16 sps:$4 sm:$0xff]  }
 0x630   :  { %7214 = vpow2.f32 %v6155_v58  ;;  %v6992_v58 = vld [vmem:[%s9278_s3 + $0x20] ss:$16 sps:$4 sm:$0xff]  }
 0x631   :  { %7216 = vtanh.f32 %v2314_v62 }
 0x638   :  { %v7211_v45 = vpop.eup %7210 }
 0x639   :  { %v7213_v4 = vpop.eup %7212  ;;  %v2319_v48 = vadd.f32 1.0, %v7211_v45  ;;  %v6995_v45 = vld [vmem:[%s9278_s3 + $0x28] ss:$16 sps:$4 sm:$0xff]  }
 0x63a   :  { %v2325_v49 = vadd.f32 1.0, %v7213_v4  ;;  %v7215_v50 = vpop.eup %7214  ;;  %v7000_v4 = vld [vmem:[%s9278_s3 + $0x44] ss:$16 sps:$4 sm:$0xff]  }
 0x63b   :  { %7218 = vrcp.f32 %v2319_v48  ;;  %v7217_v54 = vpop.eup %7216  ;;  %v2332_v57 = vadd.f32 1.0, %v7215_v50  ;;  %v7003_v48 = vld [vmem:[%s9278_s3 + $0x4c] ss:$16 sps:$4 sm:$0xff]   ;;  %v7001_v50 = vld [vmem:[%s9278_s3 + $0x48] ss:$16 sps:$4 sm:$0xff]  }
 0x63c   :  { %7220 = vrcp.f32 %v2325_v49  ;;  %v6998_v49 = vld [vmem:[%s9278_s3 + $0x40] ss:$16 sps:$4 sm:$0xff]  }
 0x63d   :  { %7222 = vrcp.f32 %v2332_v57  ;;  %v7012_v57 = vld [vmem:[%s9278_s3 + $0x84] ss:$16 sps:$4 sm:$0xff]  }
 0x645   :  { %v7219_v55 = vpop.eup %7218 }
 0x646   :  { %v7221_v52 = vpop.eup %7220  ;;  %v2336_v42 = vmul.f32 %v7219_v55, %v7217_v54  ;;  %v7006_v54 = vld [vmem:[%s9278_s3 + $0x64] ss:$16 sps:$4 sm:$0xff]   ;;  %v7009_v55 = vld [vmem:[%s9278_s3 + $0x6c] ss:$16 sps:$4 sm:$0xff]  }
 0x647   :  { %v2335_v59 = vmul.f32 %v7221_v52, %v8249_v51  ;;  %v7223_v61 = vpop.eup %7222  ;;  %v7004_v52 = vld [vmem:[%s9278_s3 + $0x60] ss:$16 sps:$4 sm:$0xff]  }
 0x649   :  { %v8295_v60 = vadd.f32 %v2336_v42, %v2335_v59  ;;  %v7007_v42 = vld [vmem:[%s9278_s3 + $0x68] ss:$16 sps:$4 sm:$0xff]   ;;  %v7015_v59 = vld [vmem:[%s9278_s3 + $0x8c] ss:$16 sps:$4 sm:$0xff]  }
 0x64b   :  { %7224 = vtanh.f32 %v8295_v60 }
 0x655   :  { %v7225_v0 = vpop.eup %7224 }
 0x656   :  { %v8298_v2 = vmul.f32 %v7225_v0, %v7223_v61  ;;  %v7013_v61 = vld [vmem:[%s9278_s3 + $0x88] ss:$16 sps:$4 sm:$0xff]   ;;  %v7018_v0 = vld [vmem:[%s9278_s3 + $0xa4] ss:$16 sps:$4 sm:$0xff]  }
 0x658   :  { %v2349_v62 = vpack.c.bf16 %v8298_v2, %v8298_v2 }
 0x65a   :  { %2575 = vmatmul.mubr.bf16.vlgmr.msra.gmra.mrb[40].mxu0 %v2349_v62  ;;  %2616 = vmatmul.mubr.bf16.vlgmr.msra.gmra.mrb[40].mxu1 %v2349_v62  ;;  %v7021_v62 = vld [vmem:[%s9278_s3 + $0xac] ss:$16 sps:$4 sm:$0xff]  }
 0x65b   :  { %2855 = vmatpush1.bf16.msra.mxu0 %v8017_v13  ;;  %2896 = vmatpush1.bf16.msra.mxu1 %v8022_v7  ;;  %v6988_v13 = vld [vmem:[%s9278_s3 + $0x4] ss:$16 sps:$4 sm:$0xff]   ;;  %v6991_v7 = vld [vmem:[%s9278_s3 + $0xc] ss:$16 sps:$4 sm:$0xff]  }
 0x65c   :  { %2856 = vmatprep.subr.bf16.mxu0 %v8031_v18  ;;  %2897 = vmatprep.subr.bf16.mxu1 %v8036_v17 }
 0x65d   :  { %2886 = vmatprep.mubr.bf16.mxu0 %v9311_v35  ;;  %2927 = vmatprep.mubr.bf16.mxu1 %v9311_v35 }
 0x65f   :  { %2857 = vmatpush1.bf16.msra.mxu0 %v8041_v19  ;;  %2898 = vmatpush1.bf16.msra.mxu1 %v8046_v21  ;;  %v9325_v19 = vld [vmem:[#allocation18_spill] sm:$0xff] }
 0x660   :  { %2858 = vmatprep.subr.bf16.mxu0 %v8055_v20  ;;  %2899 = vmatprep.subr.bf16.mxu1 %v8060_v22  ;;  %v9326_v20 = vld [vmem:[#allocation19_spill] sm:$0xff] }
 0x663   :  { %2859 = vmatpush1.bf16.msra.mxu0 %v8065_v11  ;;  %2900 = vmatpush1.bf16.msra.mxu1 %v8070_v16 }
 0x664   :  { %2860 = vmatprep.subr.bf16.mxu0 %v8079_v33  ;;  %2901 = vmatprep.subr.bf16.mxu1 %v8084_v34  ;;  %v9327_v33 = vld [vmem:[#allocation20_spill] sm:$0xff] }
 0x667   :  { %2861 = vmatpush1.bf16.msra.mxu0 %v8089_v14  ;;  %2902 = vmatpush1.bf16.msra.mxu1 %v8094_v23  ;;  %v9328_v14 = vld [vmem:[#allocation21_spill] sm:$0xff] }
 0x668   :  { %2862 = vmatprep.subr.bf16.mxu0 %v8103_v27  ;;  %2903 = vmatprep.subr.bf16.mxu1 %v8108_v29 }
 0x66b   :  { %2863 = vmatpush1.bf16.msra.mxu0 %v8113_v31  ;;  %2904 = vmatpush1.bf16.msra.mxu1 %v8118_v24 }
 0x66c   :  { %2864 = vmatprep.subr.bf16.mxu0 %v8125_v32  ;;  %2905 = vmatprep.subr.bf16.mxu1 %v8142_v28 }
 0x66f   :  { %2865 = vmatpush1.bf16.msra.mxu0 %v8132_v10  ;;  %2906 = vmatpush1.bf16.msra.mxu1 %v8137_v25 }
 0x670   :  { %2866 = vmatprep.subr.bf16.mxu0 %v8148_v44  ;;  %2907 = vmatprep.subr.bf16.mxu1 %v8153_v9 }
 0x673   :  { %2867 = vmatpush1.bf16.msra.mxu0 %v8161_v12  ;;  %2908 = vmatpush1.bf16.msra.mxu1 %v8166_v1 }
 0x674   :  { %2868 = vmatprep.subr.bf16.mxu0 %v8173_v30  ;;  %2909 = vmatprep.subr.bf16.mxu1 %v8178_v36 }
 0x677   :  { %2869 = vmatpush1.bf16.msra.mxu0 %v8185_v37  ;;  %2910 = vmatpush1.bf16.msra.mxu1 %v8190_v38 }
 0x678   :  { %3194 = vmatprep.subr.bf16.mxu0 %v6988_v13  ;;  %3267 = vmatprep.subr.bf16.mxu1 %v6991_v7  ;;  %v7016_v13 = vld [vmem:[%s9278_s3 + $0xa0] ss:$16 sps:$4 sm:$0xff]   ;;  %v7019_v7 = vld [vmem:[%s9278_s3 + $0xa8] ss:$16 sps:$4 sm:$0xff]  }
 0x72d   :  { %v2576_v18 = vpop.f32.mrb[40].mxu0  ;;  %v2617_v17 = vpop.f32.mrb[40].mxu1 }
 0x72e   :  { %v2624_v21 = vadd.f32 %v2576_v18, %v9325_v19  ;;  %v2626_v22 = vadd.f32 %v2617_v17, %v9326_v20  ;;  %v2578_v11 = vpop.f32.mrb[41].mxu0  ;;  %v2619_v16 = vpop.f32.mrb[41].mxu1  ;;  %v7024_v18 = vld [vmem:[%s9278_s3 + $0xc4] ss:$16 sps:$4 sm:$0xff]   ;;  %v7027_v17 = vld [vmem:[%s9278_s3 + $0xcc] ss:$16 sps:$4 sm:$0xff]  }
 0x72f   :  { %v2625_v34 = vadd.f32 %v2578_v11, %v9327_v33  ;;  %v2627_v23 = vadd.f32 %v2619_v16, %v9328_v14  ;;  %v2580_v27 = vpop.f32.mrb[42].mxu0  ;;  %v2621_v29 = vpop.f32.mrb[42].mxu1  ;;  %v7022_v19 = vld [vmem:[%s9278_s3 + $0xc0] ss:$16 sps:$4 sm:$0xff]   ;;  %v7030_v20 = vld [vmem:[%s9278_s3 + $0xe4] ss:$16 sps:$4 sm:$0xff]   ;;  %v2976_v33 = vpack.c.bf16 %v7954_v15, %v7908_v26  ;;  %v2978_v14 = vpack.c.bf16 %v8298_v2, %v8252_v56 }
 0x730   :  { %v6188_v31 = vmul.f32 -1.442695, %v2624_v21  ;;  %v2581_v24 = vpop.f32.mrb[43].mxu0  ;;  %v2622_v32 = vpop.f32.mrb[43].mxu1  ;;  %v7025_v21 = vld [vmem:[%s9278_s3 + $0xc8] ss:$16 sps:$4 sm:$0xff]  }
 0x731   :  { %v6189_v10 = vmul.f32 -1.442695, %v2625_v34  ;;  %v6190_v25 = vmul.f32 -1.442695, %v2627_v23  ;;  %v7028_v11 = vld [vmem:[%s9278_s3 + $0xe0] ss:$16 sps:$4 sm:$0xff]   ;;  %v2977_v34 = vpack.c.bf16 %v8206_v47, %v7998_v53 }
 0x732   :  { %7226 = vpow2.f32 %v6188_v31  ;;  %v7031_v16 = vld [vmem:[%s9278_s3 + $0xe8] ss:$16 sps:$4 sm:$0xff]   ;;  %v8459_v26 = vld [vmem:[%s9272_s5 + $0x104] ss:$16 sps:$4 sm:$0xff]   ;;  %v8464_v15 = vld [vmem:[%s9272_s5 + $0x10c] ss:$16 sps:$4 sm:$0xff]  }
 0x733   :  { %7228 = vpow2.f32 %v6189_v10  ;;  %v8469_v53 = vld [vmem:[%s9272_s5 + $0x100] ss:$16 sps:$4 sm:$0xff]   ;;  %v8474_v47 = vld [vmem:[%s9272_s5 + $0x108] ss:$16 sps:$4 sm:$0xff]   ;;  %v8483_v56 = vld [vmem:[%s9272_s5 + $0x124] ss:$16 sps:$4 sm:$0xff]  }
 0x734   :  { %7230 = vpow2.f32 %v6190_v25  ;;  %v8488_v2 = vld [vmem:[%s9272_s5 + $0x12c] ss:$16 sps:$4 sm:$0xff]   ;;  %v8493_v23 = vld [vmem:[%s9272_s5 + $0x120] ss:$16 sps:$4 sm:$0xff]   ;;  %v8498_v27 = vld [vmem:[%s9272_s5 + $0x128] ss:$16 sps:$4 sm:$0xff]  }
 0x735   :  { %7232 = vtanh.f32 %v2626_v22  ;;  %v7033_v22 = vld [vmem:[%s9278_s3 + $0xec] ss:$16 sps:$4 sm:$0xff]   ;;  %v8507_v29 = vld [vmem:[%s9272_s5 + $0x144] ss:$16 sps:$4 sm:$0xff]   ;;  %v8517_v24 = vld [vmem:[%s9272_s5 + $0x140] ss:$16 sps:$4 sm:$0xff]  }
 0x736   :  { %v8512_v31 = vld [vmem:[%s9272_s5 + $0x14c] ss:$16 sps:$4 sm:$0xff]   ;;  %v8522_v32 = vld [vmem:[%s9272_s5 + $0x148] ss:$16 sps:$4 sm:$0xff]   ;;  %v8531_v10 = vld [vmem:[%s9272_s5 + $0x160] ss:$16 sps:$4 sm:$0xff]  }
 0x737   :  { %v8536_v25 = vld [vmem:[%s9272_s5 + $0x164] ss:$16 sps:$4 sm:$0xff]  }
 0x73c   :  { %v7227_v28 = vpop.eup %7226 }
 0x73d   :  { %v7229_v44 = vpop.eup %7228  ;;  %v2631_v9 = vadd.f32 1.0, %v7227_v28  ;;  %v8541_v28 = vld [vmem:[%s9272_s5 + $0x168] ss:$16 sps:$4 sm:$0xff]  }
 0x73e   :  { %v2637_v12 = vadd.f32 1.0, %v7229_v44  ;;  %v7231_v1 = vpop.eup %7230  ;;  %v8546_v44 = vld [vmem:[%s9272_s5 + $0x16c] ss:$16 sps:$4 sm:$0xff]  }
 0x73f   :  { %7234 = vrcp.f32 %v2631_v9  ;;  %v7233_v30 = vpop.eup %7232  ;;  %v2644_v51 = vadd.f32 1.0, %v7231_v1  ;;  %v8555_v9 = vld [vmem:[%s9272_s5 + $0x184] ss:$16 sps:$4 sm:$0xff]   ;;  %v8565_v1 = vld [vmem:[%s9272_s5 + $0x180] ss:$16 sps:$4 sm:$0xff]  }
 0x740   :  { %7236 = vrcp.f32 %v2637_v12  ;;  %v8560_v12 = vld [vmem:[%s9272_s5 + $0x18c] ss:$16 sps:$4 sm:$0xff]  }
 0x741   :  { %7238 = vrcp.f32 %v2644_v51  ;;  %v8594_v51 = vld [vmem:[%s9272_s5 + $0x1ac] ss:$16 sps:$4 sm:$0xff]  }
 0x749   :  { %v7235_v36 = vpop.eup %7234 }
 0x74a   :  { %v7237_v37 = vpop.eup %7236  ;;  %v2648_v38 = vmul.f32 %v7235_v36, %v7233_v30  ;;  %v8570_v30 = vld [vmem:[%s9272_s5 + $0x188] ss:$16 sps:$4 sm:$0xff]   ;;  %v8579_v36 = vld [vmem:[%s9272_s5 + $0x1a0] ss:$16 sps:$4 sm:$0xff]  }
 0x74b   :  { %v2647_v3 = vmul.f32 %v7237_v37, %v8295_v60  ;;  %v7239_v6 = vpop.eup %7238  ;;  %v7010_v60 = vld [vmem:[%s9278_s3 + $0x80] ss:$16 sps:$4 sm:$0xff]   ;;  %v8584_v37 = vld [vmem:[%s9272_s5 + $0x1a4] ss:$16 sps:$4 sm:$0xff]  }
 0x74d   :  { %v8345_v5 = vadd.f32 %v2648_v38, %v2647_v3  ;;  %v8589_v38 = vld [vmem:[%s9272_s5 + $0x1a8] ss:$16 sps:$4 sm:$0xff]   ;;  %v8603_v3 = vld [vmem:[%s9272_s5 + $0x1c4] ss:$16 sps:$4 sm:$0xff]  }
 0x74f   :  { %7240 = vtanh.f32 %v8345_v5 }
 0x759   :  { %v7241_v63 = vpop.eup %7240 }
 0x75a   :  { %v8348_v39 = vmul.f32 %v7241_v63, %v7239_v6  ;;  %v8608_v6 = vld [vmem:[%s9272_s5 + $0x1cc] ss:$16 sps:$4 sm:$0xff]   ;;  %v8613_v63 = vld [vmem:[%s9272_s5 + $0x1c0] ss:$16 sps:$4 sm:$0xff]  }
 0x75c   :  { %v2661_v43 = vpack.c.bf16 %v8348_v39, %v8348_v39 }
 0x75e   :  { %2887 = vmatmul.mubr.bf16.vlgmr.msra.gmra.mrb[44].mxu0 %v2661_v43  ;;  %2928 = vmatmul.mubr.bf16.vlgmr.msra.gmra.mrb[44].mxu1 %v2661_v43  ;;  %v8632_v43 = vld [vmem:[%s9272_s5 + $0x1e4] ss:$16 sps:$4 sm:$0xff]  }
 0x75f   :  { %3195 = vmatpush1.bf16.msra.mxu0 %v6986_v40  ;;  %3268 = vmatpush1.bf16.msra.mxu1 %v6989_v41  ;;  %v8618_v40 = vld [vmem:[%s9272_s5 + $0x1c8] ss:$16 sps:$4 sm:$0xff]   ;;  %v8627_v41 = vld [vmem:[%s9272_s5 + $0x1e0] ss:$16 sps:$4 sm:$0xff]  }
 0x760   :  { %3196 = vmatprep.subr.bf16.mxu0 %v6994_v46  ;;  %3269 = vmatprep.subr.bf16.mxu1 %v6997_v8  ;;  %v8637_v46 = vld [vmem:[%s9272_s5 + $0x1e8] ss:$16 sps:$4 sm:$0xff]   ;;  %v8642_v8 = vld [vmem:[%s9272_s5 + $0x1ec] ss:$16 sps:$4 sm:$0xff]  }
 0x761   :  { %3226 = vmatprep.mubr.bf16.mxu0 %v9311_v35  ;;  %3299 = vmatprep.mubr.bf16.mxu1 %v9311_v35 }
 0x763   :  { %3197 = vmatpush1.bf16.msra.mxu0 %v6992_v58  ;;  %3270 = vmatpush1.bf16.msra.mxu1 %v6995_v45 }
 0x764   :  { %3198 = vmatprep.subr.bf16.mxu0 %v7000_v4  ;;  %3271 = vmatprep.subr.bf16.mxu1 %v7003_v48  ;;  %v9329_v4 = vld [vmem:[#allocation22_spill] sm:$0xff] }
 0x767   :  { %3199 = vmatpush1.bf16.msra.mxu0 %v6998_v49  ;;  %3272 = vmatpush1.bf16.msra.mxu1 %v7001_v50  ;;  %v9330_v49 = vld [vmem:[#allocation23_spill] sm:$0xff] }
 0x768   :  { %3200 = vmatprep.subr.bf16.mxu0 %v7006_v54  ;;  %3273 = vmatprep.subr.bf16.mxu1 %v7009_v55 }
 0x76b   :  { %3201 = vmatpush1.bf16.msra.mxu0 %v7004_v52  ;;  %3274 = vmatpush1.bf16.msra.mxu1 %v7007_v42  ;;  %v9331_v52 = vld [vmem:[#allocation24_spill] sm:$0xff] }
 0x76c   :  { %3202 = vmatprep.subr.bf16.mxu0 %v7012_v57  ;;  %3275 = vmatprep.subr.bf16.mxu1 %v7015_v59  ;;  %v9332_v57 = vld [vmem:[#allocation25_spill] sm:$0xff] }
 0x76f   :  { %3203 = vmatpush1.bf16.msra.mxu0 %v7010_v60  ;;  %3276 = vmatpush1.bf16.msra.mxu1 %v7013_v61 }
 0x770   :  { %3204 = vmatprep.subr.bf16.mxu0 %v7018_v0  ;;  %3277 = vmatprep.subr.bf16.mxu1 %v7021_v62 }
 0x773   :  { %3205 = vmatpush1.bf16.msra.mxu0 %v7016_v13  ;;  %3278 = vmatpush1.bf16.msra.mxu1 %v7019_v7 }
 0x774   :  { %3206 = vmatprep.subr.bf16.mxu0 %v7024_v18  ;;  %3279 = vmatprep.subr.bf16.mxu1 %v7027_v17 }
 0x777   :  { %3207 = vmatpush1.bf16.msra.mxu0 %v7022_v19  ;;  %3280 = vmatpush1.bf16.msra.mxu1 %v7025_v21 }
 0x778   :  { %3208 = vmatprep.subr.bf16.mxu0 %v7030_v20  ;;  %3281 = vmatprep.subr.bf16.mxu1 %v7033_v22 }
 0x77b   :  { %3209 = vmatpush1.bf16.msra.mxu0 %v7028_v11  ;;  %3282 = vmatpush1.bf16.msra.mxu1 %v7031_v16 }
 0x77c   :  { %3574 = vmatprep.subr.bf16.mxu0 %v8459_v26  ;;  %3615 = vmatprep.subr.bf16.mxu1 %v8464_v15 }
 0x77e   :  { %3227 = vmatmul.mubr.bf16.vlgmr.msra.gmra.mrb[48].mxu0 %v2976_v33  ;;  %3300 = vmatmul.mubr.bf16.vlgmr.msra.gmra.mrb[48].mxu1 %v2976_v33 }
 0x77f   :  { %3236 = vmatprep.mubr.bf16.mxu0 %v9311_v35  ;;  %3309 = vmatprep.mubr.bf16.mxu1 %v9311_v35 }
 0x780   :  { %3575 = vmatpush1.bf16.msra.mxu0 %v8469_v53  ;;  %3616 = vmatpush1.bf16.msra.mxu1 %v8474_v47 }
 0x781   :  { %3576 = vmatprep.subr.bf16.mxu0 %v8483_v56  ;;  %3617 = vmatprep.subr.bf16.mxu1 %v8488_v2 }
 0x784   :  { %3577 = vmatpush1.bf16.msra.mxu0 %v8493_v23  ;;  %3618 = vmatpush1.bf16.msra.mxu1 %v8498_v27 }
 0x785   :  { %3578 = vmatprep.subr.bf16.mxu0 %v8507_v29  ;;  %3619 = vmatprep.subr.bf16.mxu1 %v8512_v31 }
 0x786   :  { %3237 = vmatmul.mubr.bf16.gmra.mrb[52].mxu0 %v2977_v34  ;;  %3310 = vmatmul.mubr.bf16.gmra.mrb[52].mxu1 %v2977_v34 }
 0x787   :  { %3246 = vmatprep.mubr.bf16.mxu0 %v9311_v35  ;;  %3319 = vmatprep.mubr.bf16.mxu1 %v9311_v35 }
 0x788   :  { %3579 = vmatpush1.bf16.msra.mxu0 %v8517_v24  ;;  %3620 = vmatpush1.bf16.msra.mxu1 %v8522_v32 }
 0x789   :  { %3580 = vmatprep.subr.bf16.mxu0 %v8536_v25  ;;  %3621 = vmatprep.subr.bf16.mxu1 %v8546_v44 }
 0x78c   :  { %3581 = vmatpush1.bf16.msra.mxu0 %v8531_v10  ;;  %3622 = vmatpush1.bf16.msra.mxu1 %v8541_v28 }
 0x78d   :  { %3582 = vmatprep.subr.bf16.mxu0 %v8555_v9  ;;  %3623 = vmatprep.subr.bf16.mxu1 %v8560_v12 }
 0x78e   :  { %3247 = vmatmul.mubr.bf16.gmra.mrb[56].mxu0 %v2978_v14  ;;  %3320 = vmatmul.mubr.bf16.gmra.mrb[56].mxu1 %v2978_v14 }
 0x78f   :  { %3256 = vmatprep.mubr.bf16.mxu0 %v9311_v35  ;;  %3329 = vmatprep.mubr.bf16.mxu1 %v9311_v35 }
 0x790   :  { %3583 = vmatpush1.bf16.msra.mxu0 %v8565_v1  ;;  %3624 = vmatpush1.bf16.msra.mxu1 %v8570_v30 }
 0x791   :  { %3584 = vmatprep.subr.bf16.mxu0 %v8584_v37  ;;  %3625 = vmatprep.subr.bf16.mxu1 %v8594_v51 }
 0x794   :  { %3585 = vmatpush1.bf16.msra.mxu0 %v8579_v36  ;;  %3626 = vmatpush1.bf16.msra.mxu1 %v8589_v38 }
 0x795   :  { %3586 = vmatprep.subr.bf16.mxu0 %v8603_v3  ;;  %3627 = vmatprep.subr.bf16.mxu1 %v8608_v6 }
 0x798   :  { %3587 = vmatpush1.bf16.msra.mxu0 %v8613_v63  ;;  %3628 = vmatpush1.bf16.msra.mxu1 %v8618_v40 }
 0x799   :  { %3588 = vmatprep.subr.bf16.mxu0 %v8632_v43  ;;  %3629 = vmatprep.subr.bf16.mxu1 %v8642_v8 }
 0x79c   :  { %3589 = vmatpush1.bf16.msra.mxu0 %v8627_v41  ;;  %3630 = vmatpush1.bf16.msra.mxu1 %v8637_v46 }
 0x79d   :  { %3882 = vmatprep.subr.bf16.mxu0 %v8459_v26  ;;  %3923 = vmatprep.subr.bf16.mxu1 %v8464_v15 }
 0x831   :  { %v2888_v58 = vpop.f32.mrb[44].mxu0  ;;  %v2929_v45 = vpop.f32.mrb[44].mxu1 }
 0x832   :  { %v2936_v48 = vadd.f32 %v2888_v58, %v9329_v4  ;;  %v2938_v50 = vadd.f32 %v2929_v45, %v9330_v49  ;;  %v2890_v54 = vpop.f32.mrb[45].mxu0  ;;  %v2931_v55 = vpop.f32.mrb[45].mxu1 }
 0x833   :  { %v2937_v42 = vadd.f32 %v2890_v54, %v9331_v52  ;;  %v2939_v59 = vadd.f32 %v2931_v55, %v9332_v57  ;;  %v2892_v60 = vpop.f32.mrb[46].mxu0  ;;  %v2933_v61 = vpop.f32.mrb[46].mxu1 }
 0x834   :  { %v6223_v0 = vmul.f32 -1.442695, %v2936_v48  ;;  %v2893_v62 = vpop.f32.mrb[47].mxu0  ;;  %v2934_v13 = vpop.f32.mrb[47].mxu1 }
 0x835   :  { %v6224_v7 = vmul.f32 -1.442695, %v2937_v42  ;;  %v6225_v18 = vmul.f32 -1.442695, %v2939_v59 }
 0x836   :  { %7242 = vpow2.f32 %v6223_v0 }
 0x837   :  { %7244 = vpow2.f32 %v6224_v7 }
 0x838   :  { %7246 = vpow2.f32 %v6225_v18 }
 0x839   :  { %7248 = vtanh.f32 %v2938_v50 }
 0x840   :  { %v7243_v17 = vpop.eup %7242 }
 0x841   :  { %v7245_v19 = vpop.eup %7244  ;;  %v2943_v21 = vadd.f32 1.0, %v7243_v17 }
 0x842   :  { %v2949_v20 = vadd.f32 1.0, %v7245_v19  ;;  %v7247_v22 = vpop.eup %7246 }
 0x843   :  { %7250 = vrcp.f32 %v2943_v21  ;;  %v7249_v11 = vpop.eup %7248  ;;  %v2956_v14 = vadd.f32 1.0, %v7247_v22 }
 0x844   :  { %7252 = vrcp.f32 %v2949_v20 }
 0x845   :  { %7254 = vrcp.f32 %v2956_v14 }
 0x84d   :  { %v7251_v16 = vpop.eup %7250 }
 0x84e   :  { %v7253_v33 = vpop.eup %7252  ;;  %v2960_v34 = vmul.f32 %v7251_v16, %v7249_v11 }
 0x84f   :  { %v2959_v58 = vmul.f32 %v7253_v33, %v8345_v5  ;;  %v7255_v62 = vpop.eup %7254 }
 0x851   :  { %v2961_v45 = vadd.f32 %v2960_v34, %v2959_v58  ;;  %v8655_v4 = vpop.f32.mrb[48].mxu0  ;;  %v8657_v48 = vpop.f32.mrb[48].mxu1 }
 0x852   :  { %v8659_v49 = vpop.f32.mrb[49].mxu0  ;;  %v8661_v50 = vpop.f32.mrb[49].mxu1 }
 0x853   :  { %2967 = vst [vmem:[%s9276_s10] sm:$0xff] %v2961_v45  ;;  %v8666_v54 = vpop.f32.mrb[50].mxu0  ;;  %v8668_v55 = vpop.f32.mrb[50].mxu1  ;;  %7256 = vtanh.f32 %v2961_v45  ;;  %v3012_v45 = vld [vmem:[%s9279_s4] sm:$0xf] }
 0x854   :  { %v8670_v5 = vpop.f32.mrb[51].mxu0  ;;  %v8672_v52 = vpop.f32.mrb[51].mxu1 }
 0x859   :  { %v8674_v42 = vpop.f32.mrb[52].mxu0  ;;  %v8676_v57 = vpop.f32.mrb[52].mxu1 }
 0x85a   :  { %9333 = vst [vmem:[#allocation5_spill] sm:$0xff] %v8676_v57  ;;  %v8678_v59 = vpop.f32.mrb[53].mxu0  ;;  %v8680_v60 = vpop.f32.mrb[53].mxu1 }
 0x85b   :  { %9334 = vst [vmem:[#allocation6_spill] sm:$0xff] %v8678_v59  ;;  %9335 = vst [vmem:[#allocation7_spill] sm:$0xff] %v8680_v60  ;;  %v8682_v61 = vpop.f32.mrb[54].mxu0  ;;  %v8684_v0 = vpop.f32.mrb[54].mxu1 }
 0x85c   :  { %9336 = vst [vmem:[#allocation8_spill] sm:$0xff] %v8682_v61  ;;  %9337 = vst [vmem:[#allocation9_spill] sm:$0xff] %v8684_v0  ;;  %v8686_v13 = vpop.f32.mrb[55].mxu0  ;;  %v8688_v7 = vpop.f32.mrb[55].mxu1 }
 0x85d   :  { %9338 = vst [vmem:[#allocation10_spill] sm:$0xff] %v8686_v13  ;;  %9339 = vst [vmem:[#allocation11_spill] sm:$0xff] %v8688_v7  ;;  %v7257_v18 = vpop.eup %7256 }
 0x85e   :  { %v2963_v17 = vmul.f32 %v7257_v18, %v7255_v62 }
 0x860   :  { %2966 = vst [vmem:[%s9273_s9] sm:$0xff] %v2963_v17  ;;  %v2979_v19 = vpack.c.bf16 %v2963_v17, %v8348_v39  ;;  %v6258_v39 = vld [vmem:[%s9273_s9 + $0x8] sm:$0xff] }
 0x861   :  { %v8694_v21 = vpop.f32.mrb[56].mxu0  ;;  %v8696_v20 = vpop.f32.mrb[56].mxu1  ;;  %v3380_v58 = vpack.c.bf16 %v6258_v39, %v6258_v39 }
 0x862   :  { %9340 = vst [vmem:[#allocation12_spill] sm:$0xff] %v8694_v21  ;;  %9341 = vst [vmem:[#allocation13_spill] sm:$0xff] %v8696_v20  ;;  %v8698_v22 = vpop.f32.mrb[57].mxu0  ;;  %v8700_v11 = vpop.f32.mrb[57].mxu1  ;;  %3257 = vmatmul.mubr.bf16.gmra.mrb[60].mxu0 %v2979_v19  ;;  %3330 = vmatmul.mubr.bf16.gmra.mrb[60].mxu1 %v2979_v19 }
 0x863   :  { %9342 = vst [vmem:[#allocation14_spill] sm:$0xff] %v8698_v22  ;;  %9343 = vst [vmem:[#allocation15_spill] sm:$0xff] %v8700_v11  ;;  %v8702_v16 = vpop.f32.mrb[58].mxu0  ;;  %v8704_v33 = vpop.f32.mrb[58].mxu1  ;;  %3606 = vmatprep.mubr.bf16.mxu0 %v9311_v35  ;;  %3647 = vmatprep.mubr.bf16.mxu1 %v9311_v35 }
 0x864   :  { %9344 = vst [vmem:[#allocation16_spill] sm:$0xff] %v8702_v16  ;;  %9345 = vst [vmem:[#allocation17_spill] sm:$0xff] %v8704_v33  ;;  %v8711_v34 = vpop.f32.mrb[59].mxu0  ;;  %v8713_v14 = vpop.f32.mrb[59].mxu1 }
 0x865   :  { %9346 = vst [vmem:[#allocation18_spill] sm:$0xff] %v8711_v34  ;;  %9347 = vst [vmem:[#allocation19_spill] sm:$0xff] %v8713_v14  ;;  %v9354_v14 = vld [vmem:[#allocation4_spill] sm:$0xff] }
 0x866   :  { %v9355_v34 = vsub.s32 0, %v9354_v14  ;;  %v9356_v16 = vsub.s32 2, %v9354_v14 }
 0x868   :  { %v8766_v33 = vrot.slane %v3012_v45, %v9355_v34  ;;  %v8770_v11 = vrot.slane %v3012_v45, %v9356_v16 }
 0x86a   :  { %3607 = vmatmul.mubr.bf16.vlgmr.msra.gmra.mrb[64].mxu0 %v3380_v58  ;;  %3648 = vmatmul.mubr.bf16.vlgmr.msra.gmra.mrb[64].mxu1 %v3380_v58  ;;  %v3229_v34 = vadd.f32 %v8655_v4, %v8766_v33 }
 0x86b   :  { %3883 = vmatpush1.bf16.msra.mxu0 %v8469_v53  ;;  %3924 = vmatpush1.bf16.msra.mxu1 %v8474_v47 }
 0x86c   :  { %3884 = vmatprep.subr.bf16.mxu0 %v8483_v56  ;;  %3925 = vmatprep.subr.bf16.mxu1 %v8488_v2 }
 0x86d   :  { %3914 = vmatprep.mubr.bf16.mxu0 %v9311_v35  ;;  %3955 = vmatprep.mubr.bf16.mxu1 %v9311_v35 }
 0x86f   :  { %3885 = vmatpush1.bf16.msra.mxu0 %v8493_v23  ;;  %3926 = vmatpush1.bf16.msra.mxu1 %v8498_v27 }
 0x870   :  { %3886 = vmatprep.subr.bf16.mxu0 %v8507_v29  ;;  %3927 = vmatprep.subr.bf16.mxu1 %v8512_v31 }
 0x873   :  { %3887 = vmatpush1.bf16.msra.mxu0 %v8517_v24  ;;  %3928 = vmatpush1.bf16.msra.mxu1 %v8522_v32 }
 0x874   :  { %3888 = vmatprep.subr.bf16.mxu0 %v8536_v25  ;;  %3929 = vmatprep.subr.bf16.mxu1 %v8546_v44 }
 0x877   :  { %3889 = vmatpush1.bf16.msra.mxu0 %v8531_v10  ;;  %3930 = vmatpush1.bf16.msra.mxu1 %v8541_v28 }
 0x878   :  { %3890 = vmatprep.subr.bf16.mxu0 %v8555_v9  ;;  %3931 = vmatprep.subr.bf16.mxu1 %v8560_v12 }
 0x87b   :  { %3891 = vmatpush1.bf16.msra.mxu0 %v8565_v1  ;;  %3932 = vmatpush1.bf16.msra.mxu1 %v8570_v30 }
 0x87c   :  { %3892 = vmatprep.subr.bf16.mxu0 %v8584_v37  ;;  %3933 = vmatprep.subr.bf16.mxu1 %v8594_v51 }
 0x87f   :  { %3893 = vmatpush1.bf16.msra.mxu0 %v8579_v36  ;;  %3934 = vmatpush1.bf16.msra.mxu1 %v8589_v38 }
 0x880   :  { %3894 = vmatprep.subr.bf16.mxu0 %v8603_v3  ;;  %3935 = vmatprep.subr.bf16.mxu1 %v8608_v6 }
 0x883   :  { %3895 = vmatpush1.bf16.msra.mxu0 %v8613_v63  ;;  %3936 = vmatpush1.bf16.msra.mxu1 %v8618_v40 }
 0x884   :  { %3896 = vmatprep.subr.bf16.mxu0 %v8632_v43  ;;  %3937 = vmatprep.subr.bf16.mxu1 %v8642_v8 }
 0x887   :  { %3897 = vmatpush1.bf16.msra.mxu0 %v8627_v41  ;;  %3938 = vmatpush1.bf16.msra.mxu1 %v8637_v46 }
 0x888   :  { %4190 = vmatprep.subr.bf16.mxu0 %v8459_v26  ;;  %4231 = vmatprep.subr.bf16.mxu1 %v8464_v15 }
 0x935   :  { %v8752_v62 = vpop.f32.mrb[60].mxu0  ;;  %v8754_v18 = vpop.f32.mrb[60].mxu1 }
 0x936   :  { %9348 = vst [vmem:[#allocation20_spill] sm:$0xff] %v8752_v62  ;;  %9349 = vst [vmem:[#allocation21_spill] sm:$0xff] %v8754_v18  ;;  %v8756_v17 = vpop.f32.mrb[61].mxu0  ;;  %v8758_v19 = vpop.f32.mrb[61].mxu1 }
 0x937   :  { %9350 = vst [vmem:[#allocation22_spill] sm:$0xff] %v8756_v17  ;;  %9351 = vst [vmem:[#allocation23_spill] sm:$0xff] %v8758_v19  ;;  %v8760_v39 = vpop.f32.mrb[62].mxu0  ;;  %v8762_v58 = vpop.f32.mrb[62].mxu1  ;;  %v9359_v17 = vsub.s32 1, %v9354_v14 }
 0x938   :  { %9352 = vst [vmem:[#allocation24_spill] sm:$0xff] %v8760_v39  ;;  %9353 = vst [vmem:[#allocation25_spill] sm:$0xff] %v8762_v58  ;;  %v8772_v22 = vpop.f32.mrb[63].mxu0  ;;  %v8774_v62 = vpop.f32.mrb[63].mxu1  ;;  %v9360_v39 = vsub.s32 3, %v9354_v14  ;;  %v3302_v58 = vadd.f32 %v8657_v48, %v8770_v11 }
 0x939   :  { %9357 = vst [vmem:[#allocation4_spill] sm:$0xff] %v8772_v22  ;;  %9358 = vst [vmem:[#allocation26_spill] sm:$0xff] %v8774_v62  ;;  %v8778_v18 = vrot.slane %v3012_v45, %v9359_v17 }
 0x93a   :  { %v8782_v19 = vrot.slane %v3012_v45, %v9360_v39 }
 0x93b   :  { %v3231_v16 = vadd.f32 %v8659_v49, %v8778_v18 }
 0x93c   :  { %v3304_v62 = vadd.f32 %v8661_v50, %v8782_v19 }
 0x93d   :  { %v3608_v22 = vpop.f32.mrb[64].mxu0  ;;  %v3649_v20 = vpop.f32.mrb[64].mxu1 }
 0x93e   :  { %v3656_v17 = vadd.f32 %v3608_v22, %v3229_v34  ;;  %v3658_v21 = vadd.f32 %v3649_v20, %v3302_v58  ;;  %v3610_v7 = vpop.f32.mrb[65].mxu0  ;;  %v3651_v14 = vpop.f32.mrb[65].mxu1 }
 0x93f   :  { %v3657_v45 = vadd.f32 %v3610_v7, %v3231_v16  ;;  %v3659_v39 = vadd.f32 %v3651_v14, %v3304_v62  ;;  %v3612_v13 = vpop.f32.mrb[66].mxu0  ;;  %v3653_v0 = vpop.f32.mrb[66].mxu1  ;;  %v3306_v14 = vadd.f32 %v8668_v55, %v8770_v11 }
 0x940   :  { %v6324_v4 = vmul.f32 -1.442695, %v3656_v17  ;;  %v3613_v61 = vpop.f32.mrb[67].mxu0  ;;  %v3654_v60 = vpop.f32.mrb[67].mxu1  ;;  %v6259_v0 = vld [vmem:[%s9276_s10 + $0x8] sm:$0xff]  ;;  %v3233_v17 = vadd.f32 %v8666_v54, %v8766_v33 }
 0x941   :  { %v6325_v48 = vmul.f32 -1.442695, %v3657_v45  ;;  %v6326_v49 = vmul.f32 -1.442695, %v3659_v39  ;;  %v3235_v45 = vadd.f32 %v8670_v5, %v8778_v18  ;;  %v3308_v39 = vadd.f32 %v8672_v52, %v8782_v19 }
 0x942   :  { %7258 = vpow2.f32 %v6324_v4 }
 0x943   :  { %7260 = vpow2.f32 %v6325_v48 }
 0x944   :  { %7262 = vpow2.f32 %v6326_v49 }
 0x945   :  { %7264 = vtanh.f32 %v3658_v21 }
 0x94c   :  { %v7259_v59 = vpop.eup %7258 }
 0x94d   :  { %v7261_v57 = vpop.eup %7260  ;;  %v3663_v50 = vadd.f32 1.0, %v7259_v59 }
 0x94e   :  { %v3669_v22 = vadd.f32 1.0, %v7261_v57  ;;  %v7263_v20 = vpop.eup %7262 }
 0x94f   :  { %7266 = vrcp.f32 %v3663_v50  ;;  %v7265_v7 = vpop.eup %7264  ;;  %v3676_v62 = vadd.f32 1.0, %v7263_v20 }
 0x950   :  { %7268 = vrcp.f32 %v3669_v22 }
 0x951   :  { %7270 = vrcp.f32 %v3676_v62 }
 0x959   :  { %v7267_v61 = vpop.eup %7266 }
 0x95a   :  { %v7269_v60 = vpop.eup %7268  ;;  %v3680_v13 = vmul.f32 %v7267_v61, %v7265_v7 }
 0x95b   :  { %v3679_v58 = vmul.f32 %v7269_v60, %v6259_v0  ;;  %v7271_v59 = vpop.eup %7270 }
 0x95d   :  { %v8795_v34 = vadd.f32 %v3680_v13, %v3679_v58 }
 0x95f   :  { %7272 = vtanh.f32 %v8795_v34 }
 0x969   :  { %v7273_v57 = vpop.eup %7272 }
 0x96a   :  { %v8798_v21 = vmul.f32 %v7273_v57, %v7271_v59 }
 0x96c   :  { %v3689_v16 = vpack.c.bf16 %v8798_v21, %v8798_v21 }
 0x96e   :  { %3915 = vmatmul.mubr.bf16.vlgmr.msra.gmra.mrb[68].mxu0 %v3689_v16  ;;  %3956 = vmatmul.mubr.bf16.vlgmr.msra.gmra.mrb[68].mxu1 %v3689_v16 }
 0x96f   :  { %4191 = vmatpush1.bf16.msra.mxu0 %v8469_v53  ;;  %4232 = vmatpush1.bf16.msra.mxu1 %v8474_v47 }
 0x970   :  { %4192 = vmatprep.subr.bf16.mxu0 %v8483_v56  ;;  %4233 = vmatprep.subr.bf16.mxu1 %v8488_v2 }
 0x971   :  { %4222 = vmatprep.mubr.bf16.mxu0 %v9311_v35  ;;  %4263 = vmatprep.mubr.bf16.mxu1 %v9311_v35 }
 0x973   :  { %4193 = vmatpush1.bf16.msra.mxu0 %v8493_v23  ;;  %4234 = vmatpush1.bf16.msra.mxu1 %v8498_v27 }
 0x974   :  { %4194 = vmatprep.subr.bf16.mxu0 %v8507_v29  ;;  %4235 = vmatprep.subr.bf16.mxu1 %v8512_v31 }
 0x977   :  { %4195 = vmatpush1.bf16.msra.mxu0 %v8517_v24  ;;  %4236 = vmatpush1.bf16.msra.mxu1 %v8522_v32 }
 0x978   :  { %4196 = vmatprep.subr.bf16.mxu0 %v8536_v25  ;;  %4237 = vmatprep.subr.bf16.mxu1 %v8546_v44 }
 0x97b   :  { %4197 = vmatpush1.bf16.msra.mxu0 %v8531_v10  ;;  %4238 = vmatpush1.bf16.msra.mxu1 %v8541_v28 }
 0x97c   :  { %4198 = vmatprep.subr.bf16.mxu0 %v8555_v9  ;;  %4239 = vmatprep.subr.bf16.mxu1 %v8560_v12 }
 0x97f   :  { %4199 = vmatpush1.bf16.msra.mxu0 %v8565_v1  ;;  %4240 = vmatpush1.bf16.msra.mxu1 %v8570_v30 }
 0x980   :  { %4200 = vmatprep.subr.bf16.mxu0 %v8584_v37  ;;  %4241 = vmatprep.subr.bf16.mxu1 %v8594_v51 }
 0x983   :  { %4201 = vmatpush1.bf16.msra.mxu0 %v8579_v36  ;;  %4242 = vmatpush1.bf16.msra.mxu1 %v8589_v38 }
 0x984   :  { %4202 = vmatprep.subr.bf16.mxu0 %v8603_v3  ;;  %4243 = vmatprep.subr.bf16.mxu1 %v8608_v6 }
 0x987   :  { %4203 = vmatpush1.bf16.msra.mxu0 %v8613_v63  ;;  %4244 = vmatpush1.bf16.msra.mxu1 %v8618_v40 }
 0x988   :  { %4204 = vmatprep.subr.bf16.mxu0 %v8632_v43  ;;  %4245 = vmatprep.subr.bf16.mxu1 %v8642_v8 }
 0x98b   :  { %4205 = vmatpush1.bf16.msra.mxu0 %v8627_v41  ;;  %4246 = vmatpush1.bf16.msra.mxu1 %v8637_v46 }
 0x98c   :  { %4498 = vmatprep.subr.bf16.mxu0 %v8459_v26  ;;  %4539 = vmatprep.subr.bf16.mxu1 %v8464_v15 }
 0xa41   :  { %v3916_v4 = vpop.f32.mrb[68].mxu0  ;;  %v3957_v48 = vpop.f32.mrb[68].mxu1 }
 0xa42   :  { %v3964_v49 = vadd.f32 %v3916_v4, %v3233_v17  ;;  %v3966_v50 = vadd.f32 %v3957_v48, %v3306_v14  ;;  %v3918_v22 = vpop.f32.mrb[69].mxu0  ;;  %v3959_v26 = vpop.f32.mrb[69].mxu1 }
 0xa43   :  { %v3965_v20 = vadd.f32 %v3918_v22, %v3235_v45  ;;  %v3967_v15 = vadd.f32 %v3959_v26, %v3308_v39  ;;  %v3920_v7 = vpop.f32.mrb[70].mxu0  ;;  %v3961_v0 = vpop.f32.mrb[70].mxu1 }
 0xa44   :  { %v6391_v54 = vmul.f32 -1.442695, %v3964_v49  ;;  %v3921_v61 = vpop.f32.mrb[71].mxu0  ;;  %v3962_v60 = vpop.f32.mrb[71].mxu1 }
 0xa45   :  { %v6392_v55 = vmul.f32 -1.442695, %v3965_v20  ;;  %v6393_v5 = vmul.f32 -1.442695, %v3967_v15  ;;  %v8905_v61 = vld [vmem:[%s9272_s5 + $0x104] ss:$16 sps:$4 sm:$0xff]  }
 0xa46   :  { %7274 = vpow2.f32 %v6391_v54  ;;  %v8910_v60 = vld [vmem:[%s9272_s5 + $0x10c] ss:$16 sps:$4 sm:$0xff]  }
 0xa47   :  { %7276 = vpow2.f32 %v6392_v55  ;;  %v8915_v55 = vld [vmem:[%s9272_s5 + $0x100] ss:$16 sps:$4 sm:$0xff]  }
 0xa48   :  { %7278 = vpow2.f32 %v6393_v5  ;;  %v8920_v5 = vld [vmem:[%s9272_s5 + $0x108] ss:$16 sps:$4 sm:$0xff]  }
 0xa49   :  { %7280 = vtanh.f32 %v3966_v50 }
 0xa50   :  { %v7275_v13 = vpop.eup %7274 }
 0xa51   :  { %v7277_v62 = vpop.eup %7276  ;;  %v3971_v52 = vadd.f32 1.0, %v7275_v13  ;;  %v8929_v13 = vld [vmem:[%s9272_s5 + $0x124] ss:$16 sps:$4 sm:$0xff]  }
 0xa52   :  { %v3977_v58 = vadd.f32 1.0, %v7277_v62  ;;  %v7279_v59 = vpop.eup %7278  ;;  %v8934_v62 = vld [vmem:[%s9272_s5 + $0x12c] ss:$16 sps:$4 sm:$0xff]  }
 0xa53   :  { %7282 = vrcp.f32 %v3971_v52  ;;  %v7281_v57 = vpop.eup %7280  ;;  %v3984_v45 = vadd.f32 1.0, %v7279_v59  ;;  %v8939_v52 = vld [vmem:[%s9272_s5 + $0x120] ss:$16 sps:$4 sm:$0xff]   ;;  %v8953_v59 = vld [vmem:[%s9272_s5 + $0x144] ss:$16 sps:$4 sm:$0xff]  }
 0xa54   :  { %7284 = vrcp.f32 %v3977_v58  ;;  %v8944_v58 = vld [vmem:[%s9272_s5 + $0x128] ss:$16 sps:$4 sm:$0xff]  }
 0xa55   :  { %7286 = vrcp.f32 %v3984_v45  ;;  %v8982_v45 = vld [vmem:[%s9272_s5 + $0x16c] ss:$16 sps:$4 sm:$0xff]  }
 0xa5d   :  { %v7283_v16 = vpop.eup %7282 }
 0xa5e   :  { %v7285_v17 = vpop.eup %7284  ;;  %v3988_v14 = vmul.f32 %v7283_v16, %v7281_v57  ;;  %v8958_v57 = vld [vmem:[%s9272_s5 + $0x14c] ss:$16 sps:$4 sm:$0xff]   ;;  %v8963_v16 = vld [vmem:[%s9272_s5 + $0x140] ss:$16 sps:$4 sm:$0xff]  }
 0xa5f   :  { %v3987_v39 = vmul.f32 %v7285_v17, %v8795_v34  ;;  %v7287_v48 = vpop.eup %7286  ;;  %v8968_v17 = vld [vmem:[%s9272_s5 + $0x148] ss:$16 sps:$4 sm:$0xff]  }
 0xa61   :  { %v8845_v4 = vadd.f32 %v3988_v14, %v3987_v39  ;;  %v8977_v14 = vld [vmem:[%s9272_s5 + $0x164] ss:$16 sps:$4 sm:$0xff]   ;;  %v8987_v39 = vld [vmem:[%s9272_s5 + $0x160] ss:$16 sps:$4 sm:$0xff]  }
 0xa63   :  { %7288 = vtanh.f32 %v8845_v4 }
 0xa6d   :  { %v7289_v49 = vpop.eup %7288 }
 0xa6e   :  { %v3991_v22 = vmul.f32 %v7289_v49, %v7287_v48  ;;  %v9001_v48 = vld [vmem:[%s9272_s5 + $0x184] ss:$16 sps:$4 sm:$0xff]   ;;  %v9006_v49 = vld [vmem:[%s9272_s5 + $0x18c] ss:$16 sps:$4 sm:$0xff]  }
 0xa70   :  { %v3997_v50 = vpack.c.bf16 %v3991_v22, %v3991_v22  ;;  %v6817_v26 = vpack.c.bf16 %v3991_v22, %v8798_v21  ;;  %v9011_v22 = vld [vmem:[%s9272_s5 + $0x180] ss:$16 sps:$4 sm:$0xff]  }
 0xa72   :  { %4223 = vmatmul.mubr.bf16.vlgmr.msra.gmra.mrb[72].mxu0 %v3997_v50  ;;  %6818 = vst [vmem:[%s9280_s8] sm:$0xff] %v6817_v26   ;;  %4264 = vmatmul.mubr.bf16.vlgmr.msra.gmra.mrb[72].mxu1 %v3997_v50  ;;  %v9016_v50 = vld [vmem:[%s9272_s5 + $0x188] ss:$16 sps:$4 sm:$0xff]   ;;  %v9023_v26 = vld [vmem:[%s9272_s5 + $0x1a4] ss:$16 sps:$4 sm:$0xff]  }
 0xa73   :  { %4499 = vmatpush1.bf16.msra.mxu0 %v8469_v53  ;;  %4540 = vmatpush1.bf16.msra.mxu1 %v8474_v47  ;;  %v3239_v53 = vadd.f32 %v8674_v42, %v8766_v33  ;;  %v9361_v47 = vld [vmem:[#allocation5_spill] sm:$0xff] }
 0xa74   :  { %4500 = vmatprep.subr.bf16.mxu0 %v8483_v56  ;;  %4541 = vmatprep.subr.bf16.mxu1 %v8488_v2  ;;  %v3312_v56 = vadd.f32 %v9361_v47, %v8770_v11  ;;  %v9362_v2 = vld [vmem:[#allocation6_spill] sm:$0xff]  ;;  %v9035_v47 = vld [vmem:[%s9272_s5 + $0x1a8] ss:$16 sps:$4 sm:$0xff]  }
 0xa75   :  { %4530 = vmatprep.mubr.bf16.mxu0 %v9311_v35  ;;  %4571 = vmatprep.mubr.bf16.mxu1 %v9311_v35 }
 0xa77   :  { %4501 = vmatpush1.bf16.msra.mxu0 %v8493_v23  ;;  %4542 = vmatpush1.bf16.msra.mxu1 %v8498_v27  ;;  %v3241_v23 = vadd.f32 %v9362_v2, %v8778_v18  ;;  %v9363_v27 = vld [vmem:[#allocation7_spill] sm:$0xff]  ;;  %v9046_v2 = vld [vmem:[%s9272_s5 + $0x1c4] ss:$16 sps:$4 sm:$0xff]  }
 0xa78   :  { %4502 = vmatprep.subr.bf16.mxu0 %v8507_v29  ;;  %4543 = vmatprep.subr.bf16.mxu1 %v8512_v31  ;;  %v3314_v29 = vadd.f32 %v9363_v27, %v8782_v19  ;;  %v9059_v27 = vld [vmem:[%s9272_s5 + $0x1c0] ss:$16 sps:$4 sm:$0xff]  }
 0xa7b   :  { %4503 = vmatpush1.bf16.msra.mxu0 %v8517_v24  ;;  %4544 = vmatpush1.bf16.msra.mxu1 %v8522_v32 }
 0xa7c   :  { %4504 = vmatprep.subr.bf16.mxu0 %v8536_v25  ;;  %4545 = vmatprep.subr.bf16.mxu1 %v8546_v44 }
 0xa7f   :  { %4505 = vmatpush1.bf16.msra.mxu0 %v8531_v10  ;;  %4546 = vmatpush1.bf16.msra.mxu1 %v8541_v28 }
 0xa80   :  { %4506 = vmatprep.subr.bf16.mxu0 %v8555_v9  ;;  %4547 = vmatprep.subr.bf16.mxu1 %v8560_v12 }
 0xa83   :  { %4507 = vmatpush1.bf16.msra.mxu0 %v8565_v1  ;;  %4548 = vmatpush1.bf16.msra.mxu1 %v8570_v30 }
 0xa84   :  { %4508 = vmatprep.subr.bf16.mxu0 %v8584_v37  ;;  %4549 = vmatprep.subr.bf16.mxu1 %v8594_v51 }
 0xa87   :  { %4509 = vmatpush1.bf16.msra.mxu0 %v8579_v36  ;;  %4550 = vmatpush1.bf16.msra.mxu1 %v8589_v38 }
 0xa88   :  { %4510 = vmatprep.subr.bf16.mxu0 %v8603_v3  ;;  %4551 = vmatprep.subr.bf16.mxu1 %v8608_v6 }
 0xa8b   :  { %4511 = vmatpush1.bf16.msra.mxu0 %v8613_v63  ;;  %4552 = vmatpush1.bf16.msra.mxu1 %v8618_v40 }
 0xa8c   :  { %4512 = vmatprep.subr.bf16.mxu0 %v8632_v43  ;;  %4553 = vmatprep.subr.bf16.mxu1 %v8642_v8 }
 0xa8f   :  { %4513 = vmatpush1.bf16.msra.mxu0 %v8627_v41  ;;  %4554 = vmatpush1.bf16.msra.mxu1 %v8637_v46 }
 0xa90   :  { %4806 = vmatprep.subr.bf16.mxu0 %v8905_v61  ;;  %4847 = vmatprep.subr.bf16.mxu1 %v8910_v60 }
 0xb45   :  { %v4224_v31 = vpop.f32.mrb[72].mxu0  ;;  %v4265_v24 = vpop.f32.mrb[72].mxu1 }
 0xb46   :  { %v4272_v32 = vadd.f32 %v4224_v31, %v3239_v53  ;;  %v4274_v10 = vadd.f32 %v4265_v24, %v3312_v56  ;;  %v4226_v25 = vpop.f32.mrb[73].mxu0  ;;  %v4267_v28 = vpop.f32.mrb[73].mxu1  ;;  %v9030_v53 = vld [vmem:[%s9272_s5 + $0x1a0] ss:$16 sps:$4 sm:$0xff]   ;;  %v9040_v56 = vld [vmem:[%s9272_s5 + $0x1ac] ss:$16 sps:$4 sm:$0xff]  }
 0xb47   :  { %v4273_v44 = vadd.f32 %v4226_v25, %v3241_v23  ;;  %v4275_v9 = vadd.f32 %v4267_v28, %v3314_v29  ;;  %v4228_v12 = vpop.f32.mrb[74].mxu0  ;;  %v4269_v1 = vpop.f32.mrb[74].mxu1  ;;  %v9051_v23 = vld [vmem:[%s9272_s5 + $0x1cc] ss:$16 sps:$4 sm:$0xff]   ;;  %v9064_v29 = vld [vmem:[%s9272_s5 + $0x1c8] ss:$16 sps:$4 sm:$0xff]  }
 0xb48   :  { %v6458_v30 = vmul.f32 -1.442695, %v4272_v32  ;;  %v4229_v36 = vpop.f32.mrb[75].mxu0  ;;  %v4270_v37 = vpop.f32.mrb[75].mxu1  ;;  %v9071_v31 = vld [vmem:[%s9272_s5 + $0x1e4] ss:$16 sps:$4 sm:$0xff]  }
 0xb49   :  { %v6459_v38 = vmul.f32 -1.442695, %v4273_v44  ;;  %v6460_v51 = vmul.f32 -1.442695, %v4275_v9  ;;  %v9076_v24 = vld [vmem:[%s9272_s5 + $0x1ec] ss:$16 sps:$4 sm:$0xff]  }
 0xb4a   :  { %7290 = vpow2.f32 %v6458_v30  ;;  %v9083_v32 = vld [vmem:[%s9272_s5 + $0x1e0] ss:$16 sps:$4 sm:$0xff]   ;;  %v9365_v44 = vld [vmem:[#allocation9_spill] sm:$0xff]  ;;  %v9367_v30 = vld [vmem:[#allocation11_spill] sm:$0xff] }
 0xb4b   :  { %7292 = vpow2.f32 %v6459_v38  ;;  %v9364_v25 = vld [vmem:[#allocation8_spill] sm:$0xff]  ;;  %v3316_v9 = vadd.f32 %v9365_v44, %v8770_v11  ;;  %v9366_v12 = vld [vmem:[#allocation10_spill] sm:$0xff]  ;;  %v3318_v36 = vadd.f32 %v9367_v30, %v8782_v19 }
 0xb4c   :  { %7294 = vpow2.f32 %v6460_v51  ;;  %v3243_v28 = vadd.f32 %v9364_v25, %v8766_v33  ;;  %v3245_v1 = vadd.f32 %v9366_v12, %v8778_v18 }
 0xb4d   :  { %7296 = vtanh.f32 %v4274_v10  ;;  %v9088_v10 = vld [vmem:[%s9272_s5 + $0x1e8] ss:$16 sps:$4 sm:$0xff]  }
 0xb54   :  { %v7291_v3 = vpop.eup %7290 }
 0xb55   :  { %v7293_v6 = vpop.eup %7292  ;;  %v4279_v63 = vadd.f32 1.0, %v7291_v3 }
 0xb56   :  { %v4285_v40 = vadd.f32 1.0, %v7293_v6  ;;  %v7295_v41 = vpop.eup %7294 }
 0xb57   :  { %7298 = vrcp.f32 %v4279_v63  ;;  %v7297_v43 = vpop.eup %7296  ;;  %v4292_v34 = vadd.f32 1.0, %v7295_v41 }
 0xb58   :  { %7300 = vrcp.f32 %v4285_v40 }
 0xb59   :  { %7302 = vrcp.f32 %v4292_v34 }
 0xb61   :  { %v7299_v46 = vpop.eup %7298 }
 0xb62   :  { %v7301_v8 = vpop.eup %7300  ;;  %v4296_v42 = vmul.f32 %v7299_v46, %v7297_v43 }
 0xb63   :  { %v4295_v21 = vmul.f32 %v7301_v8, %v8845_v4  ;;  %v7303_v15 = vpop.eup %7302  ;;  %v8992_v4 = vld [vmem:[%s9272_s5 + $0x168] ss:$16 sps:$4 sm:$0xff]  }
 0xb65   :  { %v8893_v20 = vadd.f32 %v4296_v42, %v4295_v21 }
 0xb67   :  { %7304 = vtanh.f32 %v8893_v20 }
 0xb71   :  { %v7305_v7 = vpop.eup %7304 }
 0xb72   :  { %v8896_v0 = vmul.f32 %v7305_v7, %v7303_v15 }
 0xb74   :  { %v4305_v54 = vpack.c.bf16 %v8896_v0, %v8896_v0 }
 0xb76   :  { %4531 = vmatmul.mubr.bf16.vlgmr.msra.gmra.mrb[76].mxu0 %v4305_v54  ;;  %4572 = vmatmul.mubr.bf16.vlgmr.msra.gmra.mrb[76].mxu1 %v4305_v54 }
 0xb77   :  { %4838 = vmatprep.mubr.bf16.mxu0 %v9311_v35  ;;  %4879 = vmatprep.mubr.bf16.mxu1 %v9311_v35 }
 0xb78   :  { %4807 = vmatpush1.bf16.msra.mxu0 %v8915_v55  ;;  %4848 = vmatpush1.bf16.msra.mxu1 %v8920_v5 }
 0xb79   :  { %4808 = vmatprep.subr.bf16.mxu0 %v8929_v13  ;;  %4849 = vmatprep.subr.bf16.mxu1 %v8934_v62 }
 0xb7c   :  { %4809 = vmatpush1.bf16.msra.mxu0 %v8939_v52  ;;  %4850 = vmatpush1.bf16.msra.mxu1 %v8944_v58 }
 0xb7d   :  { %4810 = vmatprep.subr.bf16.mxu0 %v8953_v59  ;;  %4851 = vmatprep.subr.bf16.mxu1 %v8958_v57 }
 0xb80   :  { %4811 = vmatpush1.bf16.msra.mxu0 %v8963_v16  ;;  %4852 = vmatpush1.bf16.msra.mxu1 %v8968_v17 }
 0xb81   :  { %4812 = vmatprep.subr.bf16.mxu0 %v8977_v14  ;;  %4853 = vmatprep.subr.bf16.mxu1 %v8982_v45 }
 0xb84   :  { %4813 = vmatpush1.bf16.msra.mxu0 %v8987_v39  ;;  %4854 = vmatpush1.bf16.msra.mxu1 %v8992_v4 }
 0xb85   :  { %4814 = vmatprep.subr.bf16.mxu0 %v9001_v48  ;;  %4855 = vmatprep.subr.bf16.mxu1 %v9006_v49 }
 0xb88   :  { %4815 = vmatpush1.bf16.msra.mxu0 %v9011_v22  ;;  %4856 = vmatpush1.bf16.msra.mxu1 %v9016_v50 }
 0xb89   :  { %4816 = vmatprep.subr.bf16.mxu0 %v9023_v26  ;;  %4857 = vmatprep.subr.bf16.mxu1 %v9040_v56 }
 0xb8c   :  { %4817 = vmatpush1.bf16.msra.mxu0 %v9030_v53  ;;  %4858 = vmatpush1.bf16.msra.mxu1 %v9035_v47 }
 0xb8d   :  { %4818 = vmatprep.subr.bf16.mxu0 %v9046_v2  ;;  %4859 = vmatprep.subr.bf16.mxu1 %v9051_v23 }
 0xb90   :  { %4819 = vmatpush1.bf16.msra.mxu0 %v9059_v27  ;;  %4860 = vmatpush1.bf16.msra.mxu1 %v9064_v29 }
 0xb91   :  { %4820 = vmatprep.subr.bf16.mxu0 %v9071_v31  ;;  %4861 = vmatprep.subr.bf16.mxu1 %v9076_v24 }
 0xb94   :  { %4821 = vmatpush1.bf16.msra.mxu0 %v9083_v32  ;;  %4862 = vmatpush1.bf16.msra.mxu1 %v9088_v10 }
 0xb95   :  { %5114 = vmatprep.subr.bf16.mxu0 %v8905_v61  ;;  %5155 = vmatprep.subr.bf16.mxu1 %v8910_v60 }
 0xc49   :  { %v4532_v37 = vpop.f32.mrb[76].mxu0  ;;  %v4573_v38 = vpop.f32.mrb[76].mxu1 }
 0xc4a   :  { %v4580_v51 = vadd.f32 %v4532_v37, %v3243_v28  ;;  %v4582_v3 = vadd.f32 %v4573_v38, %v3316_v9  ;;  %v4534_v6 = vpop.f32.mrb[77].mxu0  ;;  %v4575_v63 = vpop.f32.mrb[77].mxu1 }
 0xc4b   :  { %v4581_v40 = vadd.f32 %v4534_v6, %v3245_v1  ;;  %v4583_v41 = vadd.f32 %v4575_v63, %v3318_v36  ;;  %v4536_v43 = vpop.f32.mrb[78].mxu0  ;;  %v4577_v46 = vpop.f32.mrb[78].mxu1 }
 0xc4c   :  { %v6525_v8 = vmul.f32 -1.442695, %v4580_v51  ;;  %v4537_v42 = vpop.f32.mrb[79].mxu0  ;;  %v4578_v34 = vpop.f32.mrb[79].mxu1  ;;  %v9370_v46 = vld [vmem:[#allocation14_spill] sm:$0xff] }
 0xc4d   :  { %v6526_v21 = vmul.f32 -1.442695, %v4581_v40  ;;  %v6527_v15 = vmul.f32 -1.442695, %v4583_v41  ;;  %v9369_v41 = vld [vmem:[#allocation13_spill] sm:$0xff]  ;;  %v9371_v42 = vld [vmem:[#allocation15_spill] sm:$0xff] }
 0xc4e   :  { %7306 = vpow2.f32 %v6525_v8  ;;  %v3322_v43 = vadd.f32 %v9369_v41, %v8770_v11  ;;  %v3251_v8 = vadd.f32 %v9370_v46, %v8778_v18  ;;  %v3324_v34 = vadd.f32 %v9371_v42, %v8782_v19 }
 0xc4f   :  { %7308 = vpow2.f32 %v6526_v21 }
 0xc50   :  { %7310 = vpow2.f32 %v6527_v15 }
 0xc51   :  { %7312 = vtanh.f32 %v4582_v3 }
 0xc58   :  { %v7307_v7 = vpop.eup %7306 }
 0xc59   :  { %v7309_v54 = vpop.eup %7308  ;;  %v4587_v25 = vadd.f32 1.0, %v7307_v7 }
 0xc5a   :  { %v4593_v28 = vadd.f32 1.0, %v7309_v54  ;;  %v7311_v44 = vpop.eup %7310 }
 0xc5b   :  { %7314 = vrcp.f32 %v4587_v25  ;;  %v7313_v9 = vpop.eup %7312  ;;  %v4600_v36 = vadd.f32 1.0, %v7311_v44 }
 0xc5c   :  { %7316 = vrcp.f32 %v4593_v28 }
 0xc5d   :  { %7318 = vrcp.f32 %v4600_v36 }
 0xc65   :  { %v7315_v12 = vpop.eup %7314 }
 0xc66   :  { %v7317_v1 = vpop.eup %7316  ;;  %v4604_v30 = vmul.f32 %v7315_v12, %v7313_v9 }
 0xc67   :  { %v4603_v37 = vmul.f32 %v7317_v1, %v8893_v20  ;;  %v7319_v51 = vpop.eup %7318  ;;  %v9368_v20 = vld [vmem:[#allocation12_spill] sm:$0xff] }
 0xc69   :  { %v9105_v38 = vadd.f32 %v4604_v30, %v4603_v37 }
 0xc6b   :  { %7320 = vtanh.f32 %v9105_v38 }
 0xc75   :  { %v7321_v6 = vpop.eup %7320 }
 0xc76   :  { %v4607_v63 = vmul.f32 %v7321_v6, %v7319_v51 }
 0xc78   :  { %v4613_v3 = vpack.c.bf16 %v4607_v63, %v4607_v63  ;;  %v6822_v40 = vpack.c.bf16 %v4607_v63, %v8896_v0  ;;  %v3249_v0 = vadd.f32 %v9368_v20, %v8766_v33 }
 0xc7a   :  { %4839 = vmatmul.mubr.bf16.vlgmr.msra.gmra.mrb[80].mxu0 %v4613_v3  ;;  %6834 = vst [vmem:[%s9280_s8 + $0x8] sm:$0xff] %v6822_v40   ;;  %4880 = vmatmul.mubr.bf16.vlgmr.msra.gmra.mrb[80].mxu1 %v4613_v3 }
 0xc7b   :  { %5115 = vmatpush1.bf16.msra.mxu0 %v8915_v55  ;;  %5156 = vmatpush1.bf16.msra.mxu1 %v8920_v5 }
 0xc7c   :  { %5116 = vmatprep.subr.bf16.mxu0 %v8929_v13  ;;  %5157 = vmatprep.subr.bf16.mxu1 %v8934_v62 }
 0xc7d   :  { %5146 = vmatprep.mubr.bf16.mxu0 %v9311_v35  ;;  %5187 = vmatprep.mubr.bf16.mxu1 %v9311_v35 }
 0xc7f   :  { %5117 = vmatpush1.bf16.msra.mxu0 %v8939_v52  ;;  %5158 = vmatpush1.bf16.msra.mxu1 %v8944_v58 }
 0xc80   :  { %5118 = vmatprep.subr.bf16.mxu0 %v8953_v59  ;;  %5159 = vmatprep.subr.bf16.mxu1 %v8958_v57 }
 0xc83   :  { %5119 = vmatpush1.bf16.msra.mxu0 %v8963_v16  ;;  %5160 = vmatpush1.bf16.msra.mxu1 %v8968_v17 }
 0xc84   :  { %5120 = vmatprep.subr.bf16.mxu0 %v8977_v14  ;;  %5161 = vmatprep.subr.bf16.mxu1 %v8982_v45 }
 0xc87   :  { %5121 = vmatpush1.bf16.msra.mxu0 %v8987_v39  ;;  %5162 = vmatpush1.bf16.msra.mxu1 %v8992_v4 }
 0xc88   :  { %5122 = vmatprep.subr.bf16.mxu0 %v9001_v48  ;;  %5163 = vmatprep.subr.bf16.mxu1 %v9006_v49 }
 0xc8b   :  { %5123 = vmatpush1.bf16.msra.mxu0 %v9011_v22  ;;  %5164 = vmatpush1.bf16.msra.mxu1 %v9016_v50 }
 0xc8c   :  { %5124 = vmatprep.subr.bf16.mxu0 %v9023_v26  ;;  %5165 = vmatprep.subr.bf16.mxu1 %v9040_v56 }
 0xc8f   :  { %5125 = vmatpush1.bf16.msra.mxu0 %v9030_v53  ;;  %5166 = vmatpush1.bf16.msra.mxu1 %v9035_v47 }
 0xc90   :  { %5126 = vmatprep.subr.bf16.mxu0 %v9046_v2  ;;  %5167 = vmatprep.subr.bf16.mxu1 %v9051_v23 }
 0xc93   :  { %5127 = vmatpush1.bf16.msra.mxu0 %v9059_v27  ;;  %5168 = vmatpush1.bf16.msra.mxu1 %v9064_v29 }
 0xc94   :  { %5128 = vmatprep.subr.bf16.mxu0 %v9071_v31  ;;  %5169 = vmatprep.subr.bf16.mxu1 %v9076_v24 }
 0xc97   :  { %5129 = vmatpush1.bf16.msra.mxu0 %v9083_v32  ;;  %5170 = vmatpush1.bf16.msra.mxu1 %v9088_v10 }
 0xc98   :  { %5422 = vmatprep.subr.bf16.mxu0 %v8905_v61  ;;  %5463 = vmatprep.subr.bf16.mxu1 %v8910_v60 }
 0xd4d   :  { %v4840_v21 = vpop.f32.mrb[80].mxu0  ;;  %v4881_v15 = vpop.f32.mrb[80].mxu1 }
 0xd4e   :  { %v4888_v7 = vadd.f32 %v4840_v21, %v3249_v0  ;;  %v4890_v54 = vadd.f32 %v4881_v15, %v3322_v43  ;;  %v4842_v25 = vpop.f32.mrb[81].mxu0  ;;  %v4883_v28 = vpop.f32.mrb[81].mxu1 }
 0xd4f   :  { %v4889_v44 = vadd.f32 %v4842_v25, %v3251_v8  ;;  %v4891_v9 = vadd.f32 %v4883_v28, %v3324_v34  ;;  %v4844_v12 = vpop.f32.mrb[82].mxu0  ;;  %v4885_v1 = vpop.f32.mrb[82].mxu1 }
 0xd50   :  { %v6592_v30 = vmul.f32 -1.442695, %v4888_v7  ;;  %v4845_v36 = vpop.f32.mrb[83].mxu0  ;;  %v4886_v37 = vpop.f32.mrb[83].mxu1  ;;  %v9374_v12 = vld [vmem:[#allocation18_spill] sm:$0xff] }
 0xd51   :  { %v6593_v51 = vmul.f32 -1.442695, %v4889_v44  ;;  %v6594_v6 = vmul.f32 -1.442695, %v4891_v9  ;;  %v9373_v44 = vld [vmem:[#allocation17_spill] sm:$0xff]  ;;  %v3255_v1 = vadd.f32 %v9374_v12, %v8778_v18 }
 0xd52   :  { %7322 = vpow2.f32 %v6592_v30  ;;  %v3326_v9 = vadd.f32 %v9373_v44, %v8770_v11  ;;  %v9375_v30 = vld [vmem:[#allocation19_spill] sm:$0xff] }
 0xd53   :  { %7324 = vpow2.f32 %v6593_v51  ;;  %v3328_v36 = vadd.f32 %v9375_v30, %v8782_v19 }
 0xd54   :  { %7326 = vpow2.f32 %v6594_v6 }
 0xd55   :  { %7328 = vtanh.f32 %v4890_v54 }
 0xd5c   :  { %v7323_v63 = vpop.eup %7322 }
 0xd5d   :  { %v7325_v3 = vpop.eup %7324  ;;  %v4895_v40 = vadd.f32 1.0, %v7323_v63 }
 0xd5e   :  { %v4901_v20 = vadd.f32 1.0, %v7325_v3  ;;  %v7327_v0 = vpop.eup %7326 }
 0xd5f   :  { %7330 = vrcp.f32 %v4895_v40  ;;  %v7329_v41 = vpop.eup %7328  ;;  %v4908_v42 = vadd.f32 1.0, %v7327_v0 }
 0xd60   :  { %7332 = vrcp.f32 %v4901_v20 }
 0xd61   :  { %7334 = vrcp.f32 %v4908_v42 }
 0xd69   :  { %v7331_v43 = vpop.eup %7330 }
 0xd6a   :  { %v7333_v46 = vpop.eup %7332  ;;  %v4912_v8 = vmul.f32 %v7331_v43, %v7329_v41 }
 0xd6b   :  { %v4911_v34 = vmul.f32 %v7333_v46, %v9105_v38  ;;  %v7335_v15 = vpop.eup %7334  ;;  %v9372_v38 = vld [vmem:[#allocation16_spill] sm:$0xff] }
 0xd6c   :  { %v3253_v28 = vadd.f32 %v9372_v38, %v8766_v33 }
 0xd6d   :  { %v9155_v21 = vadd.f32 %v4912_v8, %v4911_v34 }
 0xd6f   :  { %7336 = vtanh.f32 %v9155_v21 }
 0xd79   :  { %v7337_v7 = vpop.eup %7336 }
 0xd7a   :  { %v9158_v25 = vmul.f32 %v7337_v7, %v7335_v15 }
 0xd7c   :  { %v4921_v54 = vpack.c.bf16 %v9158_v25, %v9158_v25 }
 0xd7e   :  { %5147 = vmatmul.mubr.bf16.vlgmr.msra.gmra.mrb[84].mxu0 %v4921_v54  ;;  %5188 = vmatmul.mubr.bf16.vlgmr.msra.gmra.mrb[84].mxu1 %v4921_v54 }
 0xd7f   :  { %5423 = vmatpush1.bf16.msra.mxu0 %v8915_v55  ;;  %5464 = vmatpush1.bf16.msra.mxu1 %v8920_v5 }
 0xd80   :  { %5424 = vmatprep.subr.bf16.mxu0 %v8929_v13  ;;  %5465 = vmatprep.subr.bf16.mxu1 %v8934_v62 }
 0xd81   :  { %5454 = vmatprep.mubr.bf16.mxu0 %v9311_v35  ;;  %5495 = vmatprep.mubr.bf16.mxu1 %v9311_v35 }
 0xd83   :  { %5425 = vmatpush1.bf16.msra.mxu0 %v8939_v52  ;;  %5466 = vmatpush1.bf16.msra.mxu1 %v8944_v58 }
 0xd84   :  { %5426 = vmatprep.subr.bf16.mxu0 %v8953_v59  ;;  %5467 = vmatprep.subr.bf16.mxu1 %v8958_v57 }
 0xd87   :  { %5427 = vmatpush1.bf16.msra.mxu0 %v8963_v16  ;;  %5468 = vmatpush1.bf16.msra.mxu1 %v8968_v17 }
 0xd88   :  { %5428 = vmatprep.subr.bf16.mxu0 %v8977_v14  ;;  %5469 = vmatprep.subr.bf16.mxu1 %v8982_v45 }
 0xd8b   :  { %5429 = vmatpush1.bf16.msra.mxu0 %v8987_v39  ;;  %5470 = vmatpush1.bf16.msra.mxu1 %v8992_v4 }
 0xd8c   :  { %5430 = vmatprep.subr.bf16.mxu0 %v9001_v48  ;;  %5471 = vmatprep.subr.bf16.mxu1 %v9006_v49 }
 0xd8f   :  { %5431 = vmatpush1.bf16.msra.mxu0 %v9011_v22  ;;  %5472 = vmatpush1.bf16.msra.mxu1 %v9016_v50 }
 0xd90   :  { %5432 = vmatprep.subr.bf16.mxu0 %v9023_v26  ;;  %5473 = vmatprep.subr.bf16.mxu1 %v9040_v56 }
 0xd93   :  { %5433 = vmatpush1.bf16.msra.mxu0 %v9030_v53  ;;  %5474 = vmatpush1.bf16.msra.mxu1 %v9035_v47 }
 0xd94   :  { %5434 = vmatprep.subr.bf16.mxu0 %v9046_v2  ;;  %5475 = vmatprep.subr.bf16.mxu1 %v9051_v23 }
 0xd97   :  { %5435 = vmatpush1.bf16.msra.mxu0 %v9059_v27  ;;  %5476 = vmatpush1.bf16.msra.mxu1 %v9064_v29 }
 0xd98   :  { %5436 = vmatprep.subr.bf16.mxu0 %v9071_v31  ;;  %5477 = vmatprep.subr.bf16.mxu1 %v9076_v24 }
 0xd9b   :  { %5437 = vmatpush1.bf16.msra.mxu0 %v9083_v32  ;;  %5478 = vmatpush1.bf16.msra.mxu1 %v9088_v10 }
 0xd9c   :  { %5730 = vmatprep.subr.bf16.mxu0 %v8905_v61  ;;  %5771 = vmatprep.subr.bf16.mxu1 %v8910_v60 }
 0xe51   :  { %v5148_v37 = vpop.f32.mrb[84].mxu0  ;;  %v5189_v51 = vpop.f32.mrb[84].mxu1 }
 0xe52   :  { %v5196_v6 = vadd.f32 %v5148_v37, %v3253_v28  ;;  %v5198_v63 = vadd.f32 %v5189_v51, %v3326_v9  ;;  %v5150_v3 = vpop.f32.mrb[85].mxu0  ;;  %v5191_v61 = vpop.f32.mrb[85].mxu1 }
 0xe53   :  { %v5197_v40 = vadd.f32 %v5150_v3, %v3255_v1  ;;  %v5199_v60 = vadd.f32 %v5191_v61, %v3328_v36  ;;  %v5152_v20 = vpop.f32.mrb[86].mxu0  ;;  %v5193_v0 = vpop.f32.mrb[86].mxu1 }
 0xe54   :  { %v6659_v41 = vmul.f32 -1.442695, %v5196_v6  ;;  %v5153_v43 = vpop.f32.mrb[87].mxu0  ;;  %v5194_v46 = vpop.f32.mrb[87].mxu1 }
 0xe55   :  { %v6660_v8 = vmul.f32 -1.442695, %v5197_v40  ;;  %v6661_v42 = vmul.f32 -1.442695, %v5199_v60  ;;  %v9380_v43 = vld [vmem:[#allocation24_spill] sm:$0xff] }
 0xe56   :  { %7338 = vpow2.f32 %v6659_v41  ;;  %v3263_v46 = vadd.f32 %v9380_v43, %v8766_v33 }
 0xe57   :  { %7340 = vpow2.f32 %v6660_v8  ;;  %v9381_v8 = vld [vmem:[#allocation25_spill] sm:$0xff] }
 0xe58   :  { %7342 = vpow2.f32 %v6661_v42  ;;  %v3336_v42 = vadd.f32 %v9381_v8, %v8770_v11 }
 0xe59   :  { %7344 = vtanh.f32 %v5198_v63 }
 0xe60   :  { %v7339_v34 = vpop.eup %7338 }
 0xe61   :  { %v7341_v15 = vpop.eup %7340  ;;  %v5203_v7 = vadd.f32 1.0, %v7339_v34  ;;  %v9382_v34 = vld [vmem:[#allocation4_spill] sm:$0xff] }
 0xe62   :  { %v5209_v54 = vadd.f32 1.0, %v7341_v15  ;;  %v7343_v38 = vpop.eup %7342  ;;  %v3265_v15 = vadd.f32 %v9382_v34, %v8778_v18 }
 0xe63   :  { %7346 = vrcp.f32 %v5203_v7  ;;  %v7345_v28 = vpop.eup %7344  ;;  %v5216_v1 = vadd.f32 1.0, %v7343_v38  ;;  %v9383_v7 = vld [vmem:[#allocation26_spill] sm:$0xff] }
 0xe64   :  { %7348 = vrcp.f32 %v5209_v54  ;;  %v3338_v54 = vadd.f32 %v9383_v7, %v8782_v19 }
 0xe65   :  { %7350 = vrcp.f32 %v5216_v1 }
 0xe6d   :  { %v7347_v44 = vpop.eup %7346 }
 0xe6e   :  { %v7349_v9 = vpop.eup %7348  ;;  %v5220_v12 = vmul.f32 %v7347_v44, %v7345_v28 }
 0xe6f   :  { %v5219_v30 = vmul.f32 %v7349_v9, %v9155_v21  ;;  %v7351_v37 = vpop.eup %7350 }
 0xe71   :  { %v9205_v36 = vadd.f32 %v5220_v12, %v5219_v30 }
 0xe73   :  { %7352 = vtanh.f32 %v9205_v36 }
 0xe7d   :  { %v7353_v51 = vpop.eup %7352 }
 0xe7e   :  { %v5223_v6 = vmul.f32 %v7353_v51, %v7351_v37 }
 0xe80   :  { %v5229_v63 = vpack.c.bf16 %v5223_v6, %v5223_v6  ;;  %v6827_v3 = vpack.c.bf16 %v5223_v6, %v9158_v25 }
 0xe82   :  { %5455 = vmatmul.mubr.bf16.vlgmr.msra.gmra.mrb[88].mxu0 %v5229_v63  ;;  %6835 = vst [vmem:[%s9280_s8 + $0x10] sm:$0xff] %v6827_v3   ;;  %5496 = vmatmul.mubr.bf16.vlgmr.msra.gmra.mrb[88].mxu1 %v5229_v63 }
 0xe83   :  { %5731 = vmatpush1.bf16.msra.mxu0 %v8915_v55  ;;  %5772 = vmatpush1.bf16.msra.mxu1 %v8920_v5  ;;  %v9377_v5 = vld [vmem:[#allocation21_spill] sm:$0xff] }
 0xe84   :  { %5732 = vmatprep.subr.bf16.mxu0 %v8929_v13  ;;  %5773 = vmatprep.subr.bf16.mxu1 %v8934_v62  ;;  %v3332_v13 = vadd.f32 %v9377_v5, %v8770_v11  ;;  %v9378_v62 = vld [vmem:[#allocation22_spill] sm:$0xff] }
 0xe85   :  { %5762 = vmatprep.mubr.bf16.mxu0 %v9311_v35  ;;  %5803 = vmatprep.mubr.bf16.mxu1 %v9311_v35  ;;  %v9376_v35 = vld [vmem:[#allocation20_spill] sm:$0xff] }
 0xe86   :  { %v3259_v55 = vadd.f32 %v9376_v35, %v8766_v33 }
 0xe87   :  { %5733 = vmatpush1.bf16.msra.mxu0 %v8939_v52  ;;  %5774 = vmatpush1.bf16.msra.mxu1 %v8944_v58  ;;  %v3261_v52 = vadd.f32 %v9378_v62, %v8778_v18  ;;  %v9379_v58 = vld [vmem:[#allocation23_spill] sm:$0xff] }
 0xe88   :  { %5734 = vmatprep.subr.bf16.mxu0 %v8953_v59  ;;  %5775 = vmatprep.subr.bf16.mxu1 %v8958_v57  ;;  %v3334_v59 = vadd.f32 %v9379_v58, %v8782_v19 }
 0xe8b   :  { %5735 = vmatpush1.bf16.msra.mxu0 %v8963_v16  ;;  %5776 = vmatpush1.bf16.msra.mxu1 %v8968_v17 }
 0xe8c   :  { %5736 = vmatprep.subr.bf16.mxu0 %v8977_v14  ;;  %5777 = vmatprep.subr.bf16.mxu1 %v8982_v45 }
 0xe8f   :  { %5737 = vmatpush1.bf16.msra.mxu0 %v8987_v39  ;;  %5778 = vmatpush1.bf16.msra.mxu1 %v8992_v4 }
 0xe90   :  { %5738 = vmatprep.subr.bf16.mxu0 %v9001_v48  ;;  %5779 = vmatprep.subr.bf16.mxu1 %v9006_v49 }
 0xe93   :  { %5739 = vmatpush1.bf16.msra.mxu0 %v9011_v22  ;;  %5780 = vmatpush1.bf16.msra.mxu1 %v9016_v50 }
 0xe94   :  { %5740 = vmatprep.subr.bf16.mxu0 %v9023_v26  ;;  %5781 = vmatprep.subr.bf16.mxu1 %v9040_v56 }
 0xe97   :  { %5741 = vmatpush1.bf16.msra.mxu0 %v9030_v53  ;;  %5782 = vmatpush1.bf16.msra.mxu1 %v9035_v47 }
 0xe98   :  { %5742 = vmatprep.subr.bf16.mxu0 %v9046_v2  ;;  %5783 = vmatprep.subr.bf16.mxu1 %v9051_v23 }
 0xe9b   :  { %5743 = vmatpush1.bf16.msra.mxu0 %v9059_v27  ;;  %5784 = vmatpush1.bf16.msra.mxu1 %v9064_v29 }
 0xe9c   :  { %5744 = vmatprep.subr.bf16.mxu0 %v9071_v31  ;;  %5785 = vmatprep.subr.bf16.mxu1 %v9076_v24 }
 0xe9f   :  { %5745 = vmatpush1.bf16.msra.mxu0 %v9083_v32  ;;  %5786 = vmatpush1.bf16.msra.mxu1 %v9088_v10 }
 0xf55   :  { %v5456_v57 = vpop.f32.mrb[88].mxu0  ;;  %v5497_v16 = vpop.f32.mrb[88].mxu1 }
 0xf56   :  { %v5504_v17 = vadd.f32 %v5456_v57, %v3259_v55  ;;  %v5506_v14 = vadd.f32 %v5497_v16, %v3332_v13  ;;  %v5458_v45 = vpop.f32.mrb[89].mxu0  ;;  %v5499_v39 = vpop.f32.mrb[89].mxu1 }
 0xf57   :  { %v5505_v4 = vadd.f32 %v5458_v45, %v3261_v52  ;;  %v5507_v48 = vadd.f32 %v5499_v39, %v3334_v59  ;;  %v5460_v49 = vpop.f32.mrb[90].mxu0  ;;  %v5501_v22 = vpop.f32.mrb[90].mxu1 }
 0xf58   :  { %v6726_v50 = vmul.f32 -1.442695, %v5504_v17  ;;  %v5461_v26 = vpop.f32.mrb[91].mxu0  ;;  %v5502_v53 = vpop.f32.mrb[91].mxu1 }
 0xf59   :  { %v6727_v47 = vmul.f32 -1.442695, %v5505_v4  ;;  %v6728_v56 = vmul.f32 -1.442695, %v5507_v48 }
 0xf5a   :  { %7354 = vpow2.f32 %v6726_v50 }
 0xf5b   :  { %7356 = vpow2.f32 %v6727_v47 }
 0xf5c   :  { %7358 = vpow2.f32 %v6728_v56 }
 0xf5d   :  { %7360 = vtanh.f32 %v5506_v14 }
 0xf64   :  { %v7355_v2 = vpop.eup %7354 }
 0xf65   :  { %v7357_v23 = vpop.eup %7356  ;;  %v5511_v27 = vadd.f32 1.0, %v7355_v2 }
 0xf66   :  { %v5517_v29 = vadd.f32 1.0, %v7357_v23  ;;  %v7359_v31 = vpop.eup %7358 }
 0xf67   :  { %7362 = vrcp.f32 %v5511_v27  ;;  %v7361_v24 = vpop.eup %7360  ;;  %v5524_v25 = vadd.f32 1.0, %v7359_v31 }
 0xf68   :  { %7364 = vrcp.f32 %v5517_v29 }
 0xf69   :  { %7366 = vrcp.f32 %v5524_v25 }
 0xf71   :  { %v7363_v32 = vpop.eup %7362 }
 0xf72   :  { %v7365_v10 = vpop.eup %7364  ;;  %v5528_v21 = vmul.f32 %v7363_v32, %v7361_v24 }
 0xf73   :  { %v5527_v61 = vmul.f32 %v7365_v10, %v9205_v36  ;;  %v7367_v60 = vpop.eup %7366 }
 0xf75   :  { %v5529_v40 = vadd.f32 %v5528_v21, %v5527_v61 }
 0xf77   :  { %7368 = vtanh.f32 %v5529_v40 }
 0xf81   :  { %v7369_v20 = vpop.eup %7368 }
 0xf82   :  { %v5531_v0 = vmul.f32 %v7369_v20, %v7367_v60 }
 0xf84   :  { %v5537_v41 = vpack.c.bf16 %v5531_v0, %v5531_v0 }
 0xf86   :  { %5763 = vmatmul.mubr.bf16.vlgmr.msra.gmra.mrb[92].mxu0 %v5537_v41  ;;  %5804 = vmatmul.mubr.bf16.vlgmr.msra.gmra.mrb[92].mxu1 %v5537_v41 }
0x1059   :  { %v5764_v38 = vpop.f32.mrb[92].mxu0  ;;  %v5805_v28 = vpop.f32.mrb[92].mxu1 }
0x105a   :  { %v5812_v44 = vadd.f32 %v5764_v38, %v3263_v46  ;;  %v5814_v9 = vadd.f32 %v5805_v28, %v3336_v42  ;;  %v5766_v12 = vpop.f32.mrb[93].mxu0  ;;  %v5807_v1 = vpop.f32.mrb[93].mxu1 }
0x105b   :  { %v5813_v30 = vadd.f32 %v5766_v12, %v3265_v15  ;;  %v5815_v36 = vadd.f32 %v5807_v1, %v3338_v54  ;;  %v5768_v37 = vpop.f32.mrb[94].mxu0  ;;  %v5809_v51 = vpop.f32.mrb[94].mxu1 }
0x105c   :  { %v6793_v33 = vmul.f32 -1.442695, %v5812_v44  ;;  %v5769_v6 = vpop.f32.mrb[95].mxu0  ;;  %v5810_v63 = vpop.f32.mrb[95].mxu1 }
0x105d   :  { %v6794_v11 = vmul.f32 -1.442695, %v5813_v30  ;;  %v6795_v18 = vmul.f32 -1.442695, %v5815_v36 }
0x105e   :  { %7370 = vpow2.f32 %v6793_v33 }
0x105f   :  { %7372 = vpow2.f32 %v6794_v11 }
0x1060   :  { %7374 = vpow2.f32 %v6795_v18 }
0x1061   :  { %7376 = vtanh.f32 %v5814_v9 }
0x1068   :  { %v7371_v3 = vpop.eup %7370 }
0x1069   :  { %v7373_v35 = vpop.eup %7372  ;;  %v5819_v19 = vadd.f32 1.0, %v7371_v3 }
0x106a   :  { %v5825_v55 = vadd.f32 1.0, %v7373_v35  ;;  %v7375_v5 = vpop.eup %7374 }
0x106b   :  { %7378 = vrcp.f32 %v5819_v19  ;;  %v7377_v13 = vpop.eup %7376  ;;  %v5832_v59 = vadd.f32 1.0, %v7375_v5 }
0x106c   :  { %7380 = vrcp.f32 %v5825_v55 }
0x106d   :  { %7382 = vrcp.f32 %v5832_v59 }
0x1075   :  { %v7379_v62 = vpop.eup %7378 }
0x1076   :  { %v7381_v52 = vpop.eup %7380  ;;  %v5836_v58 = vmul.f32 %v7379_v62, %v7377_v13 }
0x1077   :  { %v5835_v57 = vmul.f32 %v7381_v52, %v5529_v40  ;;  %v7383_v17 = vpop.eup %7382 }
0x1079   :  { %v5837_v16 = vadd.f32 %v5836_v58, %v5835_v57 }
0x107b   :  { %7384 = vtanh.f32 %v5837_v16  ;;  %6797 = vst [vmem:[%s9276_s10 + $0x8] sm:$0xff] %v5837_v16 }
0x1085   :  { %v7385_v14 = vpop.eup %7384 }
0x1086   :  { %v5839_v45 = vmul.f32 %v7385_v14, %v7383_v17 }
0x1088   :  { %6796 = vst [vmem:[%s9273_s9 + $0x8] sm:$0xff] %v5839_v45  ;;  %v6832_v39 = vpack.c.bf16 %v5839_v45, %v5531_v0 }
0x108a   :  { %6836 = vst [vmem:[%s9280_s8 + $0x18] sm:$0xff] %v6832_v39  }

</bundles_post_ra>
